<compile_context>
chip_gen: v5e
topology: v5e:2x2
jax: 0.10.0
libtpu: 0.0.40
codegen_flags: <defaults>
</compile_context>

<pallas_src>
import math
import jax
import jax.numpy as jnp
from jax import lax
from jax.experimental import pallas as pl
from jax.experimental.pallas import tpu as pltpu


def _round_up(n, m):
    return ((n + m - 1) // m) * m


# ----------------------------------------------------------------------------
# char_cnn (spec module): Embedding -> Conv1d(k=3, pad=1) -> max-pool over time
# -> ReLU.  One grid step processes TN words with a single MXU matmul.
# ----------------------------------------------------------------------------
def _char_cnn_kernel(x_ref, w_ref, b_ref, o_ref):
    # x_ref: (Wp, TN, E) zero-padded, time-major embedding block
    # w_ref: (E, K*Cp)   taps stacked along output lanes
    # b_ref: (1, Cp)     lane-padded bias
    # o_ref: (TN, Cp)    lane-dense output block
    Wp, TN, E = x_ref.shape
    KCp = w_ref.shape[1]
    Cp = b_ref.shape[1]
    K = KCp // Cp
    W = Wp - (K - 1)

    # one big matmul: M = Wp*TN rows, all K taps computed at once
    x_flat = x_ref[...].reshape(Wp * TN, E)          # tile-aligned (TN % 8 == 0)
    a = jnp.dot(x_flat, w_ref[...], preferred_element_type=jnp.float32)  # (Wp*TN, K*Cp)

    # tap-k contribution to conv position t is a[(t+k)*TN + n, k*Cp:(k+1)*Cp];
    # every slice below is (8,128)-tile-aligned (offsets TN*k / Cp*k).
    conv = a[0:W * TN, 0:Cp]
    for k in range(1, K):
        conv = conv + a[k * TN:(k + W) * TN, k * Cp:(k + 1) * Cp]

    # max-pool over time, then bias, then ReLU (max_t(c_t)+b == max_t(c_t+b))
    pooled = jnp.max(conv.reshape(W, TN, Cp), axis=0)
    o_ref[...] = jnp.maximum(pooled + b_ref[...], 0.0)


def char_cnn_forward(word_idx, emb_table, conv_w, conv_b):
    # word_idx: (B, S, W) int32 ; emb_table: (V, E) ; conv_w: (K, E, C) ; conv_b: (1, C)
    # returns (B, S, C) -- exactly the PyTorch char_cnn.forward (eval mode).
    B, S, W = word_idx.shape
    K, E, C = conv_w.shape
    P = (K - 1) // 2
    N = B * S

    # time-major embedding gather: only the tiny int index matrix is transposed,
    # no float transpose and no HBM im2col (review item: drop im2col/transpose).
    idx_t = word_idx.reshape(N, W).T                          # (W, N) int32
    x_t = jnp.take(emb_table, idx_t, axis=0)                  # (W, N, E)
    x_t = jnp.pad(x_t, ((P, P), (0, 0), (0, 0)))              # conv zero padding
    Wp = W + 2 * P

    TN = min(512, _round_up(N, 8))                            # big tile, no pad blow-up
    Npad = _round_up(N, TN)
    if Npad != N:
        x_t = jnp.pad(x_t, ((0, 0), (0, Npad - N), (0, 0)))

    # lane-dense output store: pad C -> Cp = 128 lanes, slice after the call
    Cp = _round_up(max(C, 128), 128)
    w_pad = jnp.pad(conv_w, ((0, 0), (0, 0), (0, Cp - C)))    # (K, E, Cp)
    w_cat = jnp.concatenate([w_pad[k] for k in range(K)], axis=1)  # (E, K*Cp)
    b_pad = jnp.pad(conv_b, ((0, 0), (0, Cp - C)))            # (1, Cp)

    out = pl.pallas_call(
        _char_cnn_kernel,
        out_shape=jax.ShapeDtypeStruct((Npad, Cp), jnp.float32),
        grid_spec=pltpu.PrefetchScalarGridSpec(
            num_scalar_prefetch=0,
            grid=(Npad // TN,),
            in_specs=[
                pl.BlockSpec((Wp, TN, E), lambda n: (0, n, 0)),
                pl.BlockSpec((E, K * Cp), lambda n: (0, 0)),
                pl.BlockSpec((1, Cp), lambda n: (0, 0)),
            ],
            out_specs=pl.BlockSpec((TN, Cp), lambda n: (n, 0)),
        ),
        compiler_params=pltpu.CompilerParams(
            dimension_semantics=("parallel",),
            vmem_limit_bytes=64 * 1024 * 1024,
        ),
    )(x_t, w_cat, b_pad)
    return out[:N, :C].reshape(B, S, C)


# ----------------------------------------------------------------------------
# word encoder: 2 x [Conv1d(k=5, pad=2) -> ReLU] fused with the LSTM input
# projection:  out[b] = [conv_out | x] @ w_ih_x + b_lstm   (shape (S, 4H))
# Blocks TB sentences per grid step; conv1 / projection are flat (TB*S, .) dots.
# ----------------------------------------------------------------------------
def _word_enc_kernel(x_ref, xc_ref, w1_ref, b1_ref, w2_ref, b2_ref,
                     wpc_ref, wpf_ref, bp_ref, o_ref):
    # x_ref: (TB, S, F) raw features ; xc_ref: (TB, S, K*F) conv1 im2col
    # w1: (K*F, C) b1: (1, C) ; w2: (K, C, C) b2: (1, C)
    # wpc: (C, 4H) proj weight for conv_out ; wpf: (F, 4H) for raw x ; bp: (1, 4H)
    TB, S, F = x_ref.shape
    KF, C = w1_ref.shape
    K = w2_ref.shape[0]
    P = (K - 1) // 2
    G = bp_ref.shape[1]

    # conv1: one flat matmul (contraction K*F), ReLU (dropout = identity in eval)
    y = jnp.maximum(
        jnp.dot(xc_ref[...].reshape(TB * S, KF), w1_ref[...],
                preferred_element_type=jnp.float32) + b1_ref[...], 0.0)   # (TB*S, C)

    # conv2: K shifted matmuls on per-sentence zero-padded activations (no bleed)
    y3 = y.reshape(TB, S, C)
    zp = jnp.zeros((TB, P, C), jnp.float32)
    yp = jnp.concatenate([zp, y3, zp], axis=1)                            # (TB, S+2P, C)
    y2 = jnp.zeros((TB * S, C), jnp.float32)
    for k in range(K):
        y2 = y2 + jnp.dot(yp[:, k:k + S, :].reshape(TB * S, C), w2_ref[k],
                          preferred_element_type=jnp.float32)
    conv_out = jnp.maximum(y2 + b2_ref[...], 0.0)                         # (TB*S, C)

    # fused LSTM input projection: [conv_out | x] @ w_ih_x + b_lstm
    proj = (jnp.dot(conv_out, wpc_ref[...], preferred_element_type=jnp.float32)
            + jnp.dot(x_ref[...].reshape(TB * S, F), wpf_ref[...],
                      preferred_element_type=jnp.float32)
            + bp_ref[...])                                                # (TB*S, 4H)
    o_ref[...] = proj.reshape(TB, S, G)


def word_encoder_forward(x, w1, b1, w2, b2, w_ih_x, b_lstm):
    # x: (B, S, F) f32 -> returns xproj: (B, S, 4H)
    B, S, F = x.shape
    K = w1.shape[0]
    C = w1.shape[2]
    G = w_ih_x.shape[1]
    P = (K - 1) // 2
    assert S % 8 == 0  # TODO(synk): pad S for general sequence lengths

    # wrapper-side im2col for conv layer 1 (contraction depth K*F)
    xp = jnp.pad(x, ((0, 0), (P, P), (0, 0)))
    xcols = jnp.concatenate([xp[:, k:k + S, :] for k in range(K)], axis=-1)  # (B,S,K*F)
    w1_flat = w1.reshape(K * F, C)
    # NOTE: hard-codes the LSTM input ordering [conv_out ; w_copy] used by make_params.
    wpc = w_ih_x[:C]                                          # (C, 4H)
    wpf = w_ih_x[C:]                                          # (F, 4H)

    TB = min(64, B)                                           # TB sentences per grid step
    Bpad = _round_up(B, TB)
    if Bpad != B:
        x = jnp.pad(x, ((0, Bpad - B), (0, 0), (0, 0)))
        xcols = jnp.pad(xcols, ((0, Bpad - B), (0, 0), (0, 0)))

    out = pl.pallas_call(
        _word_enc_kernel,
        out_shape=jax.ShapeDtypeStruct((Bpad, S, G), jnp.float32),
        grid_spec=pltpu.PrefetchScalarGridSpec(
            num_scalar_prefetch=0,
            grid=(Bpad // TB,),
            in_specs=[
                pl.BlockSpec((TB, S, F), lambda b: (b, 0, 0)),
                pl.BlockSpec((TB, S, K * F), lambda b: (b, 0, 0)),
                pl.BlockSpec((K * F, C), lambda b: (0, 0)),
                pl.BlockSpec((1, C), lambda b: (0, 0)),
                pl.BlockSpec((K, C, C), lambda b: (0, 0, 0)),
                pl.BlockSpec((1, C), lambda b: (0, 0)),
                pl.BlockSpec((C, G), lambda b: (0, 0)),
                pl.BlockSpec((F, G), lambda b: (0, 0)),
                pl.BlockSpec((1, G), lambda b: (0, 0)),
            ],
            out_specs=pl.BlockSpec((TB, S, G), lambda b: (b, 0, 0)),
        ),
        compiler_params=pltpu.CompilerParams(dimension_semantics=("parallel",)),
    )(x, xcols, w1_flat, b1, w2, b2, wpc, wpf, b_lstm)
    return out[:B]


# ----------------------------------------------------------------------------
# decoder: greedy LSTM decoding + Linear + argmax feedback + summed CE loss.
# Grid = (batch blocks ["parallel"], time chunks ["arbitrary"]); h/c/prev-tag
# and the per-sentence loss are carried in VMEM scratch across time chunks.
# (single-layer LSTM; decoder_layers=1)
# TODO(synk): multi-layer LSTM stacking (decoder_layers > 1) not implemented.
# ----------------------------------------------------------------------------
def _decoder_kernel(xp_ref, tag_ref, wt_ref, whh_ref, wlin_ref, blin_ref,
                    loss_ref, h_sc, c_sc, t_sc, lacc_sc):
    TS, TB, G = xp_ref.shape
    H = whh_ref.shape[0]
    NC = wlin_ref.shape[1]
    s = pl.program_id(1)

    @pl.when(s == 0)
    def _():
        h_sc[...] = jnp.zeros_like(h_sc)
        c_sc[...] = jnp.zeros_like(c_sc)
        t_sc[...] = jnp.broadcast_to(wt_ref[0:1, :], t_sc.shape)   # prev_tag = 0
        lacc_sc[...] = jnp.zeros_like(lacc_sc)

    # hoist all loop-invariant loads out of the recurrent loop
    wt = wt_ref[...]                                         # (NC, 4H)
    whh = whh_ref[...]                                       # (H, 4H)
    wlin = wlin_ref[...]                                     # (H, NC)
    blin = blin_ref[...]                                     # (1, NC)
    iota = lax.broadcasted_iota(jnp.int32, (TB, NC), 1)

    def step(i, carry):
        h, c, tcon, lacc = carry
        gates = xp_ref[i] + tcon + jnp.dot(h, whh, preferred_element_type=jnp.float32)
        sig = jax.nn.sigmoid(gates)                          # gate order i, f, g, o
        i_g = sig[:, 0:H]
        f_g = sig[:, H:2 * H]
        o_g = sig[:, 3 * H:4 * H]
        g_g = jnp.tanh(gates[:, 2 * H:3 * H])                # tanh only on g lanes
        c_new = f_g * c + i_g * g_g
        h_new = o_g * jnp.tanh(c_new)
        # dropout(p=0.5) on the LSTM output -> identity in eval mode
        logits = jnp.dot(h_new, wlin, preferred_element_type=jnp.float32) + blin
        maxv = jnp.max(logits, axis=1, keepdims=True)
        # greedy prediction (ties -> lowest index; PyTorch argmax tie order unspecified)
        pred = jnp.min(jnp.where(logits == maxv, iota, NC), axis=1, keepdims=True)
        # previous-tag contribution for the next step: masked row-select of w_ih_t
        tnew = jnp.zeros((TB, G), jnp.float32)
        for k in range(NC):
            tnew = tnew + jnp.where(pred == k, 1.0, 0.0) * wt[k:k + 1, :]
        # CrossEntropyLoss(ignore_index=0, reduction='sum'), per-sentence accumulation
        ti = tag_ref[i]                                      # (TB, 1) int32
        lse = maxv + jnp.log(jnp.sum(jnp.exp(logits - maxv), axis=1, keepdims=True))
        tgt = jnp.sum(jnp.where(iota == ti, logits, 0.0), axis=1, keepdims=True)
        nll = (lse - tgt) * (ti != 0).astype(jnp.float32)
        return h_new, c_new, tnew, lacc + nll

    carry0 = (h_sc[...], c_sc[...], t_sc[...], lacc_sc[...])
    h, c, tcon, lacc = lax.fori_loop(0, TS, step, carry0, unroll=True)
    h_sc[...] = h
    c_sc[...] = c
    t_sc[...] = tcon
    lacc_sc[...] = lacc

    @pl.when(s == pl.num_programs(1) - 1)
    def _():
        # lane-dense store of the per-sentence loss (column 0 is consumed)
        loss_ref[...] = jnp.broadcast_to(lacc, loss_ref.shape)


def decoder_forward(xproj, tag, w_ih_t, w_hh, w_lin, b_lin):
    # xproj: (B, S, 4H) precomputed input projection ; tag: (B, S) int
    B, S, G = xproj.shape
    H = w_hh.shape[0]
    NC = w_lin.shape[1]

    TBd = min(128, _round_up(B, 8))
    Bpad = _round_up(B, TBd)
    TS = min(64, S)
    Spad = _round_up(S, TS)

    xp = jnp.transpose(xproj, (1, 0, 2))                     # (S, B, 4H) time-major
    tg = jnp.transpose(tag, (1, 0)).astype(jnp.int32)[:, :, None]
    xp = jnp.pad(xp, ((0, Spad - S), (0, Bpad - B), (0, 0)))
    tg = jnp.pad(tg, ((0, Spad - S), (0, Bpad - B), (0, 0)))  # pad tag = 0 -> masked

    loss = pl.pallas_call(
        _decoder_kernel,
        out_shape=jax.ShapeDtypeStruct((Bpad, 128), jnp.float32),
        grid_spec=pltpu.PrefetchScalarGridSpec(
            num_scalar_prefetch=0,
            grid=(Bpad // TBd, Spad // TS),
            in_specs=[
                pl.BlockSpec((TS, TBd, G), lambda b, s: (s, b, 0)),
                pl.BlockSpec((TS, TBd, 1), lambda b, s: (s, b, 0)),
                pl.BlockSpec((NC, G), lambda b, s: (0, 0)),
                pl.BlockSpec((H, G), lambda b, s: (0, 0)),
                pl.BlockSpec((H, NC), lambda b, s: (0, 0)),
                pl.BlockSpec((1, NC), lambda b, s: (0, 0)),
            ],
            out_specs=pl.BlockSpec((TBd, 128), lambda b, s: (b, 0)),
            scratch_shapes=[
                pltpu.VMEM((TBd, H), jnp.float32),     # h
                pltpu.VMEM((TBd, H), jnp.float32),     # c
                pltpu.VMEM((TBd, G), jnp.float32),     # prev-tag contribution
                pltpu.VMEM((TBd, 1), jnp.float32),     # per-sentence loss accumulator
            ],
        ),
        compiler_params=pltpu.CompilerParams(
            dimension_semantics=("parallel", "arbitrary")),
    )(xp, tg, w_ih_t, w_hh, w_lin, b_lin)
    return jnp.sum(loss[:B, 0])


# ----------------------------------------------------------------------------
# Full model glue (embedding lookups, small pads / im2col are plain JAX)
# ----------------------------------------------------------------------------
def cnn_cnn_lstm_forward(params, sentence, word, tag, mask):
    # --- char encoder (the `char_cnn` spec module, eval mode) ---
    char_feat = char_cnn_forward(word, params["char_emb"],
                                 params["char_conv_w"], params["char_conv_b"])  # (B,S,Cc)
    # --- word encoder (+ fused LSTM input projection) ---
    word_emb = jnp.take(params["word_emb"], sentence, axis=0)                   # (B,S,Ew)
    x = jnp.concatenate([word_emb, char_feat], axis=2)
    xproj = word_encoder_forward(x, params["wc1_w"], params["wc1_b"],
                                 params["wc2_w"], params["wc2_b"],
                                 params["w_ih_x"], params["b_lstm"])            # (B,S,4H)
    # --- decoder (loss mask derived from tag != 0; `mask` kept for API parity) ---
    return decoder_forward(xproj, tag, params["w_ih_t"], params["w_hh"],
                           params["w_lin"], params["b_lin"])


# ----------------------------------------------------------------------------
# deterministic synthetic parameters + example run
# ----------------------------------------------------------------------------
def make_params(key, char_vocab, char_E, char_C, word_vocab, word_E,
                word_C, feat, NC, H):
    ks = jax.random.split(key, 12)
    full_E = word_E + char_C

    def uni(k, shape, a):
        return jax.random.uniform(k, shape, jnp.float32, -a, a)

    params = {}
    params["char_emb"] = uni(ks[0], (char_vocab, char_E), math.sqrt(3.0 / char_E))
    params["char_emb"] = params["char_emb"].at[0].set(0.0)   # padding_idx=0
    params["char_conv_w"] = uni(ks[1], (3, char_E, char_C), math.sqrt(1.0 / (3 * char_E)))
    params["char_conv_b"] = uni(ks[2], (1, char_C), math.sqrt(1.0 / (3 * char_E)))
    params["word_emb"] = jax.random.normal(ks[3], (word_vocab, word_E), jnp.float32) * 0.1
    params["wc1_w"] = uni(ks[4], (5, full_E, word_C), math.sqrt(1.0 / (5 * full_E)))
    params["wc1_b"] = uni(ks[5], (1, word_C), math.sqrt(1.0 / (5 * full_E)))
    params["wc2_w"] = uni(ks[6], (5, word_C, word_C), math.sqrt(1.0 / (5 * word_C)))
    params["wc2_b"] = uni(ks[7], (1, word_C), math.sqrt(1.0 / (5 * word_C)))
    # LSTM (PyTorch gate order i, f, g, o), input = [conv_out ; w_copy ; onehot(prev_tag)]
    a_ih = math.sqrt(6.0 / (4 * H + feat + NC))
    a_hh = math.sqrt(6.0 / (4 * H + H))
    params["w_ih_x"] = uni(ks[8], (feat, 4 * H), a_ih)
    params["w_ih_t"] = uni(ks[9], (NC, 4 * H), a_ih)
    params["w_hh"] = uni(ks[10], (H, 4 * H), a_hh)
    b = jnp.zeros((1, 4 * H), jnp.float32)
    b = b.at[:, H:2 * H].set(2.0)                 # b_ih + b_hh forget-gate bias = 1+1
    params["b_lstm"] = b
    a_lin = math.sqrt(6.0 / (NC + H))
    params["w_lin"] = uni(ks[11], (H, NC), a_lin)
    params["b_lin"] = jnp.zeros((1, NC), jnp.float32)
    return params


if __name__ == "__main__":
    # small config consistent with the module's constructor
    B, S, W = 2, 8, 12
    char_vocab, char_E, char_C = 30, 16, 16
    word_vocab, word_E = 50, 32
    word_conv_layers, word_C = 2, 32
    NC, H, decoder_layers = 5, 32, 1
    full_E = word_E + char_C
    feat = word_C + full_E                       # 80  ([conv_out ; w_copy])

    key = jax.random.PRNGKey(0)
    kp, k1, k2, k3 = jax.random.split(key, 4)
    params = make_params(kp, char_vocab, char_E, char_C, word_vocab, word_E,
                         word_C, feat, NC, H)

    sentence = jax.random.randint(k1, (B, S), 1, word_vocab, dtype=jnp.int32)
    word = jax.random.randint(k2, (B, S, W), 0, char_vocab, dtype=jnp.int32)
    tag = jax.random.randint(k3, (B, S), 0, NC, dtype=jnp.int32)
    mask = (tag != 0)

    fwd = jax.jit(cnn_cnn_lstm_forward)
    loss = fwd(params, sentence, word, tag, mask)
    jax.block_until_ready(loss)
    assert loss.shape == () and jnp.isfinite(loss)
    print("KERNEL_OK")
</pallas_src>

<mosaic_0001>
module attributes {stable_mosaic.version = 11 : i64} {
  func.func @_char_cnn_kernel(%arg0: i32, %arg1: memref<14x16x16xf32, #tpu.memory_space<vmem>>, %arg2: memref<16x384xf32, #tpu.memory_space<vmem>>, %arg3: memref<1x128xf32, #tpu.memory_space<vmem>>, %arg4: memref<16x128xf32, #tpu.memory_space<vmem>>) attributes {dimension_semantics = [#tpu.dimension_semantics<parallel>], iteration_bounds = array<i64: 1>, scalar_prefetch = 0 : i64, scratch_operands = 0 : i64, tpu.core_type = #tpu.core_type<tc>, window_params = [{transform_indices = @transform_0, window_bounds = array<i64: 14, 16, 16>}, {pipeline_mode = #tpu.pipeline_mode<synchronous>, transform_indices = @transform_1, window_bounds = array<i64: 16, 384>}, {pipeline_mode = #tpu.pipeline_mode<synchronous>, transform_indices = @transform_2, window_bounds = array<i64: 1, 128>}, {transform_indices = @transform_3, window_bounds = array<i64: 16, 128>}]} {
    %c0 = arith.constant 0 : index
    %c0_0 = arith.constant 0 : index
    %c0_1 = arith.constant 0 : index
    %0 = vector.load %arg1[%c0, %c0_0, %c0_1] : memref<14x16x16xf32, #tpu.memory_space<vmem>>, vector<14x16x16xf32>
    %1 = vector.shape_cast %0 : vector<14x16x16xf32> to vector<224x16xf32>
    %c0_2 = arith.constant 0 : index
    %c0_3 = arith.constant 0 : index
    %2 = vector.load %arg2[%c0_2, %c0_3] : memref<16x384xf32, #tpu.memory_space<vmem>>, vector<16x384xf32>
    %cst = arith.constant dense<0.000000e+00> : vector<224x384xf32>
    %3 = tpu.matmul %1, %2, %cst {dimension_numbers = #tpu.dot_dimension_numbers<[1], [0], [0], [1], [0, 0, 1, 1], [], []>} : vector<224x16xf32>, vector<16x384xf32>, vector<224x384xf32> -> vector<224x384xf32>
    %4 = vector.extract_strided_slice %3 {offsets = [0, 0], sizes = [192, 128], strides = [1, 1]} : vector<224x384xf32> to vector<192x128xf32>
    %5 = vector.extract_strided_slice %3 {offsets = [16, 128], sizes = [192, 128], strides = [1, 1]} : vector<224x384xf32> to vector<192x128xf32>
    %6 = arith.addf %4, %5 : vector<192x128xf32>
    %7 = vector.extract_strided_slice %3 {offsets = [32, 256], sizes = [192, 128], strides = [1, 1]} : vector<224x384xf32> to vector<192x128xf32>
    %8 = arith.addf %6, %7 : vector<192x128xf32>
    %9 = vector.shape_cast %8 : vector<192x128xf32> to vector<12x16x128xf32>
    %cst_4 = arith.constant dense<0xFF800000> : vector<16x128xf32>
    %10 = vector.multi_reduction <maximumf>, %9, %cst_4 [0] : vector<12x16x128xf32> to vector<16x128xf32>
    %c0_5 = arith.constant 0 : index
    %c0_6 = arith.constant 0 : index
    %11 = vector.load %arg3[%c0_5, %c0_6] : memref<1x128xf32, #tpu.memory_space<vmem>>, vector<1x128xf32>
    %12 = vector.broadcast %11 : vector<1x128xf32> to vector<16x128xf32>
    %13 = arith.addf %10, %12 : vector<16x128xf32>
    %cst_7 = arith.constant 0.000000e+00 : f32
    %14 = vector.broadcast %cst_7 : f32 to vector<16x128xf32>
    %15 = arith.maximumf %13, %14 : vector<16x128xf32>
    %c0_8 = arith.constant 0 : index
    %c0_9 = arith.constant 0 : index
    %16 = vector.load %arg4[%c0_8, %c0_9] : memref<16x128xf32, #tpu.memory_space<vmem>>, vector<16x128xf32>
    tpu.vector_store %arg4[%c0_8, %c0_9], %15 {strides = array<i32>} : memref<16x128xf32, #tpu.memory_space<vmem>>, vector<16x128xf32>,
    return
  }
  func.func @transform_0(%arg0: i32) -> (i32, i32, i32) {
    %c0_i32 = arith.constant 0 : i32
    %c0_i32_0 = arith.constant 0 : i32
    %c0_i32_1 = arith.constant 0 : i32
    return %c0_i32, %arg0, %c0_i32_0 : i32, i32, i32
  }
  func.func @transform_1(%arg0: i32) -> (i32, i32) {
    %c0_i32 = arith.constant 0 : i32
    %c0_i32_0 = arith.constant 0 : i32
    %c0_i32_1 = arith.constant 0 : i32
    return %c0_i32, %c0_i32_0 : i32, i32
  }
  func.func @transform_2(%arg0: i32) -> (i32, i32) {
    %c0_i32 = arith.constant 0 : i32
    %c0_i32_0 = arith.constant 0 : i32
    %c0_i32_1 = arith.constant 0 : i32
    return %c0_i32, %c0_i32_0 : i32, i32
  }
  func.func @transform_3(%arg0: i32) -> (i32, i32) {
    %c0_i32 = arith.constant 0 : i32
    %c0_i32_0 = arith.constant 0 : i32
    return %arg0, %c0_i32 : i32, i32
  }
}

module attributes {stable_mosaic.version = 11 : i64} {
  func.func @_word_enc_kernel(%arg0: i32, %arg1: memref<2x8x48xf32, #tpu.memory_space<vmem>>, %arg2: memref<2x8x240xf32, #tpu.memory_space<vmem>>, %arg3: memref<240x32xf32, #tpu.memory_space<vmem>>, %arg4: memref<1x32xf32, #tpu.memory_space<vmem>>, %arg5: memref<5x32x32xf32, #tpu.memory_space<vmem>>, %arg6: memref<1x32xf32, #tpu.memory_space<vmem>>, %arg7: memref<32x128xf32, #tpu.memory_space<vmem>>, %arg8: memref<48x128xf32, #tpu.memory_space<vmem>>, %arg9: memref<1x128xf32, #tpu.memory_space<vmem>>, %arg10: memref<2x8x128xf32, #tpu.memory_space<vmem>>) attributes {dimension_semantics = [#tpu.dimension_semantics<parallel>], iteration_bounds = array<i64: 1>, scalar_prefetch = 0 : i64, scratch_operands = 0 : i64, tpu.core_type = #tpu.core_type<tc>, window_params = [{transform_indices = @transform_0, window_bounds = array<i64: 2, 8, 48>}, {transform_indices = @transform_1, window_bounds = array<i64: 2, 8, 240>}, {pipeline_mode = #tpu.pipeline_mode<synchronous>, transform_indices = @transform_2, window_bounds = array<i64: 240, 32>}, {pipeline_mode = #tpu.pipeline_mode<synchronous>, transform_indices = @transform_3, window_bounds = array<i64: 1, 32>}, {pipeline_mode = #tpu.pipeline_mode<synchronous>, transform_indices = @transform_4, window_bounds = array<i64: 5, 32, 32>}, {pipeline_mode = #tpu.pipeline_mode<synchronous>, transform_indices = @transform_5, window_bounds = array<i64: 1, 32>}, {pipeline_mode = #tpu.pipeline_mode<synchronous>, transform_indices = @transform_6, window_bounds = array<i64: 32, 128>}, {pipeline_mode = #tpu.pipeline_mode<synchronous>, transform_indices = @transform_7, window_bounds = array<i64: 48, 128>}, {pipeline_mode = #tpu.pipeline_mode<synchronous>, transform_indices = @transform_8, window_bounds = array<i64: 1, 128>}, {transform_indices = @transform_9, window_bounds = array<i64: 2, 8, 128>}]} {
    %c0 = arith.constant 0 : index
    %c0_0 = arith.constant 0 : index
    %c0_1 = arith.constant 0 : index
    %0 = vector.load %arg2[%c0, %c0_0, %c0_1] : memref<2x8x240xf32, #tpu.memory_space<vmem>>, vector<2x8x240xf32>
    %1 = vector.shape_cast %0 : vector<2x8x240xf32> to vector<16x240xf32>
    %c0_2 = arith.constant 0 : index
    %c0_3 = arith.constant 0 : index
    %2 = vector.load %arg3[%c0_2, %c0_3] : memref<240x32xf32, #tpu.memory_space<vmem>>, vector<240x32xf32>
    %cst = arith.constant dense<0.000000e+00> : vector<16x32xf32>
    %3 = tpu.matmul %1, %2, %cst {dimension_numbers = #tpu.dot_dimension_numbers<[1], [0], [0], [1], [0, 0, 1, 1], [], []>} : vector<16x240xf32>, vector<240x32xf32>, vector<16x32xf32> -> vector<16x32xf32>
    %c0_4 = arith.constant 0 : index
    %c0_5 = arith.constant 0 : index
    %4 = vector.load %arg4[%c0_4, %c0_5] : memref<1x32xf32, #tpu.memory_space<vmem>>, vector<1x32xf32>
    %5 = vector.broadcast %4 : vector<1x32xf32> to vector<16x32xf32>
    %6 = arith.addf %3, %5 : vector<16x32xf32>
    %cst_6 = arith.constant 0.000000e+00 : f32
    %7 = vector.broadcast %cst_6 : f32 to vector<16x32xf32>
    %8 = arith.maximumf %6, %7 : vector<16x32xf32>
    %9 = vector.shape_cast %8 : vector<16x32xf32> to vector<2x8x32xf32>
    %cst_7 = arith.constant 0.000000e+00 : f32
    %10 = vector.broadcast %cst_7 : f32 to vector<2x2x32xf32>
    %11 = tpu.concatenate %10, %9, %10 in 1 : vector<2x2x32xf32>, vector<2x8x32xf32>, vector<2x2x32xf32> -> vector<2x12x32xf32>
    %cst_8 = arith.constant 0.000000e+00 : f32
    %12 = vector.broadcast %cst_8 : f32 to vector<16x32xf32>
    %13 = vector.extract_strided_slice %11 {offsets = [0, 0, 0], sizes = [2, 8, 32], strides = [1, 1, 1]} : vector<2x12x32xf32> to vector<2x8x32xf32>
    %14 = vector.shape_cast %13 : vector<2x8x32xf32> to vector<16x32xf32>
    %c0_9 = arith.constant 0 : index
    %c0_10 = arith.constant 0 : index
    %c0_11 = arith.constant 0 : index
    %15 = vector.load %arg5[%c0_9, %c0_10, %c0_11] : memref<5x32x32xf32, #tpu.memory_space<vmem>>, vector<1x32x32xf32>
    %16 = vector.shape_cast %15 : vector<1x32x32xf32> to vector<32x32xf32>
    %cst_12 = arith.constant dense<0.000000e+00> : vector<16x32xf32>
    %17 = tpu.matmul %14, %16, %cst_12 {dimension_numbers = #tpu.dot_dimension_numbers<[1], [0], [0], [1], [0, 0, 1, 1], [], []>} : vector<16x32xf32>, vector<32x32xf32>, vector<16x32xf32> -> vector<16x32xf32>
    %18 = arith.addf %12, %17 : vector<16x32xf32>
    %19 = vector.extract_strided_slice %11 {offsets = [0, 1, 0], sizes = [2, 8, 32], strides = [1, 1, 1]} : vector<2x12x32xf32> to vector<2x8x32xf32>
    %20 = vector.shape_cast %19 : vector<2x8x32xf32> to vector<16x32xf32>
    %c1 = arith.constant 1 : index
    %c0_13 = arith.constant 0 : index
    %c0_14 = arith.constant 0 : index
    %21 = vector.load %arg5[%c1, %c0_13, %c0_14] : memref<5x32x32xf32, #tpu.memory_space<vmem>>, vector<1x32x32xf32>
    %22 = vector.shape_cast %21 : vector<1x32x32xf32> to vector<32x32xf32>
    %cst_15 = arith.constant dense<0.000000e+00> : vector<16x32xf32>
    %23 = tpu.matmul %20, %22, %cst_15 {dimension_numbers = #tpu.dot_dimension_numbers<[1], [0], [0], [1], [0, 0, 1, 1], [], []>} : vector<16x32xf32>, vector<32x32xf32>, vector<16x32xf32> -> vector<16x32xf32>
    %24 = arith.addf %18, %23 : vector<16x32xf32>
    %25 = vector.extract_strided_slice %11 {offsets = [0, 2, 0], sizes = [2, 8, 32], strides = [1, 1, 1]} : vector<2x12x32xf32> to vector<2x8x32xf32>
    %26 = vector.shape_cast %25 : vector<2x8x32xf32> to vector<16x32xf32>
    %c2 = arith.constant 2 : index
    %c0_16 = arith.constant 0 : index
    %c0_17 = arith.constant 0 : index
    %27 = vector.load %arg5[%c2, %c0_16, %c0_17] : memref<5x32x32xf32, #tpu.memory_space<vmem>>, vector<1x32x32xf32>
    %28 = vector.shape_cast %27 : vector<1x32x32xf32> to vector<32x32xf32>
    %cst_18 = arith.constant dense<0.000000e+00> : vector<16x32xf32>
    %29 = tpu.matmul %26, %28, %cst_18 {dimension_numbers = #tpu.dot_dimension_numbers<[1], [0], [0], [1], [0, 0, 1, 1], [], []>} : vector<16x32xf32>, vector<32x32xf32>, vector<16x32xf32> -> vector<16x32xf32>
    %30 = arith.addf %24, %29 : vector<16x32xf32>
    %31 = vector.extract_strided_slice %11 {offsets = [0, 3, 0], sizes = [2, 8, 32], strides = [1, 1, 1]} : vector<2x12x32xf32> to vector<2x8x32xf32>
    %32 = vector.shape_cast %31 : vector<2x8x32xf32> to vector<16x32xf32>
    %c3 = arith.constant 3 : index
    %c0_19 = arith.constant 0 : index
    %c0_20 = arith.constant 0 : index
    %33 = vector.load %arg5[%c3, %c0_19, %c0_20] : memref<5x32x32xf32, #tpu.memory_space<vmem>>, vector<1x32x32xf32>
    %34 = vector.shape_cast %33 : vector<1x32x32xf32> to vector<32x32xf32>
    %cst_21 = arith.constant dense<0.000000e+00> : vector<16x32xf32>
    %35 = tpu.matmul %32, %34, %cst_21 {dimension_numbers = #tpu.dot_dimension_numbers<[1], [0], [0], [1], [0, 0, 1, 1], [], []>} : vector<16x32xf32>, vector<32x32xf32>, vector<16x32xf32> -> vector<16x32xf32>
    %36 = arith.addf %30, %35 : vector<16x32xf32>
    %37 = vector.extract_strided_slice %11 {offsets = [0, 4, 0], sizes = [2, 8, 32], strides = [1, 1, 1]} : vector<2x12x32xf32> to vector<2x8x32xf32>
    %38 = vector.shape_cast %37 : vector<2x8x32xf32> to vector<16x32xf32>
    %c4 = arith.constant 4 : index
    %c0_22 = arith.constant 0 : index
    %c0_23 = arith.constant 0 : index
    %39 = vector.load %arg5[%c4, %c0_22, %c0_23] : memref<5x32x32xf32, #tpu.memory_space<vmem>>, vector<1x32x32xf32>
    %40 = vector.shape_cast %39 : vector<1x32x32xf32> to vector<32x32xf32>
    %cst_24 = arith.constant dense<0.000000e+00> : vector<16x32xf32>
    %41 = tpu.matmul %38, %40, %cst_24 {dimension_numbers = #tpu.dot_dimension_numbers<[1], [0], [0], [1], [0, 0, 1, 1], [], []>} : vector<16x32xf32>, vector<32x32xf32>, vector<16x32xf32> -> vector<16x32xf32>
    %42 = arith.addf %36, %41 : vector<16x32xf32>
    %c0_25 = arith.constant 0 : index
    %c0_26 = arith.constant 0 : index
    %43 = vector.load %arg6[%c0_25, %c0_26] : memref<1x32xf32, #tpu.memory_space<vmem>>, vector<1x32xf32>
    %44 = vector.broadcast %43 : vector<1x32xf32> to vector<16x32xf32>
    %45 = arith.addf %42, %44 : vector<16x32xf32>
    %cst_27 = arith.constant 0.000000e+00 : f32
    %46 = vector.broadcast %cst_27 : f32 to vector<16x32xf32>
    %47 = arith.maximumf %45, %46 : vector<16x32xf32>
    %c0_28 = arith.constant 0 : index
    %c0_29 = arith.constant 0 : index
    %48 = vector.load %arg7[%c0_28, %c0_29] : memref<32x128xf32, #tpu.memory_space<vmem>>, vector<32x128xf32>
    %cst_30 = arith.constant dense<0.000000e+00> : vector<16x128xf32>
    %49 = tpu.matmul %47, %48, %cst_30 {dimension_numbers = #tpu.dot_dimension_numbers<[1], [0], [0], [1], [0, 0, 1, 1], [], []>} : vector<16x32xf32>, vector<32x128xf32>, vector<16x128xf32> -> vector<16x128xf32>
    %c0_31 = arith.constant 0 : index
    %c0_32 = arith.constant 0 : index
    %c0_33 = arith.constant 0 : index
    %50 = vector.load %arg1[%c0_31, %c0_32, %c0_33] : memref<2x8x48xf32, #tpu.memory_space<vmem>>, vector<2x8x48xf32>
    %51 = vector.shape_cast %50 : vector<2x8x48xf32> to vector<16x48xf32>
    %c0_34 = arith.constant 0 : index
    %c0_35 = arith.constant 0 : index
    %52 = vector.load %arg8[%c0_34, %c0_35] : memref<48x128xf32, #tpu.memory_space<vmem>>, vector<48x128xf32>
    %cst_36 = arith.constant dense<0.000000e+00> : vector<16x128xf32>
    %53 = tpu.matmul %51, %52, %cst_36 {dimension_numbers = #tpu.dot_dimension_numbers<[1], [0], [0], [1], [0, 0, 1, 1], [], []>} : vector<16x48xf32>, vector<48x128xf32>, vector<16x128xf32> -> vector<16x128xf32>
    %54 = arith.addf %49, %53 : vector<16x128xf32>
    %c0_37 = arith.constant 0 : index
    %c0_38 = arith.constant 0 : index
    %55 = vector.load %arg9[%c0_37, %c0_38] : memref<1x128xf32, #tpu.memory_space<vmem>>, vector<1x128xf32>
    %56 = vector.broadcast %55 : vector<1x128xf32> to vector<16x128xf32>
    %57 = arith.addf %54, %56 : vector<16x128xf32>
    %58 = vector.shape_cast %57 : vector<16x128xf32> to vector<2x8x128xf32>
    %c0_39 = arith.constant 0 : index
    %c0_40 = arith.constant 0 : index
    %c0_41 = arith.constant 0 : index
    %59 = vector.load %arg10[%c0_39, %c0_40, %c0_41] : memref<2x8x128xf32, #tpu.memory_space<vmem>>, vector<2x8x128xf32>
    tpu.vector_store %arg10[%c0_39, %c0_40, %c0_41], %58 {strides = array<i32>} : memref<2x8x128xf32, #tpu.memory_space<vmem>>, vector<2x8x128xf32>,
    return
  }
  func.func @transform_0(%arg0: i32) -> (i32, i32, i32) {
    %c0_i32 = arith.constant 0 : i32
    %c0_i32_0 = arith.constant 0 : i32
    %c0_i32_1 = arith.constant 0 : i32
    return %arg0, %c0_i32, %c0_i32_0 : i32, i32, i32
  }
  func.func @transform_1(%arg0: i32) -> (i32, i32, i32) {
    %c0_i32 = arith.constant 0 : i32
    %c0_i32_0 = arith.constant 0 : i32
    %c0_i32_1 = arith.constant 0 : i32
    return %arg0, %c0_i32, %c0_i32_0 : i32, i32, i32
  }
  func.func @transform_2(%arg0: i32) -> (i32, i32) {
    %c0_i32 = arith.constant 0 : i32
    %c0_i32_0 = arith.constant 0 : i32
    %c0_i32_1 = arith.constant 0 : i32
    return %c0_i32, %c0_i32_0 : i32, i32
  }
  func.func @transform_3(%arg0: i32) -> (i32, i32) {
    %c0_i32 = arith.constant 0 : i32
    %c0_i32_0 = arith.constant 0 : i32
    %c0_i32_1 = arith.constant 0 : i32
    return %c0_i32, %c0_i32_0 : i32, i32
  }
  func.func @transform_4(%arg0: i32) -> (i32, i32, i32) {
    %c0_i32 = arith.constant 0 : i32
    %c0_i32_0 = arith.constant 0 : i32
    %c0_i32_1 = arith.constant 0 : i32
    %c0_i32_2 = arith.constant 0 : i32
    return %c0_i32, %c0_i32_0, %c0_i32_1 : i32, i32, i32
  }
  func.func @transform_5(%arg0: i32) -> (i32, i32) {
    %c0_i32 = arith.constant 0 : i32
    %c0_i32_0 = arith.constant 0 : i32
    %c0_i32_1 = arith.constant 0 : i32
    return %c0_i32, %c0_i32_0 : i32, i32
  }
  func.func @transform_6(%arg0: i32) -> (i32, i32) {
    %c0_i32 = arith.constant 0 : i32
    %c0_i32_0 = arith.constant 0 : i32
    %c0_i32_1 = arith.constant 0 : i32
    return %c0_i32, %c0_i32_0 : i32, i32
  }
  func.func @transform_7(%arg0: i32) -> (i32, i32) {
    %c0_i32 = arith.constant 0 : i32
    %c0_i32_0 = arith.constant 0 : i32
    %c0_i32_1 = arith.constant 0 : i32
    return %c0_i32, %c0_i32_0 : i32, i32
  }
  func.func @transform_8(%arg0: i32) -> (i32, i32) {
    %c0_i32 = arith.constant 0 : i32
    %c0_i32_0 = arith.constant 0 : i32
    %c0_i32_1 = arith.constant 0 : i32
    return %c0_i32, %c0_i32_0 : i32, i32
  }
  func.func @transform_9(%arg0: i32) -> (i32, i32, i32) {
    %c0_i32 = arith.constant 0 : i32
    %c0_i32_0 = arith.constant 0 : i32
    %c0_i32_1 = arith.constant 0 : i32
    return %arg0, %c0_i32, %c0_i32_0 : i32, i32, i32
  }
}

module attributes {stable_mosaic.version = 11 : i64} {
  func.func @_decoder_kernel(%arg0: i32, %arg1: i32, %arg2: memref<8x8x128xf32, #tpu.memory_space<vmem>>, %arg3: memref<8x8x1xi32, #tpu.memory_space<vmem>>, %arg4: memref<5x128xf32, #tpu.memory_space<vmem>>, %arg5: memref<32x128xf32, #tpu.memory_space<vmem>>, %arg6: memref<32x5xf32, #tpu.memory_space<vmem>>, %arg7: memref<1x5xf32, #tpu.memory_space<vmem>>, %arg8: memref<8x128xf32, #tpu.memory_space<vmem>>, %arg9: memref<8x32xf32, #tpu.memory_space<vmem>>, %arg10: memref<8x32xf32, #tpu.memory_space<vmem>>, %arg11: memref<8x128xf32, #tpu.memory_space<vmem>>, %arg12: memref<8x1xf32, #tpu.memory_space<vmem>>) attributes {dimension_semantics = [#tpu.dimension_semantics<parallel>, #tpu.dimension_semantics<arbitrary>], iteration_bounds = array<i64: 1, 1>, scalar_prefetch = 0 : i64, scratch_operands = 4 : i64, tpu.core_type = #tpu.core_type<tc>, window_params = [{transform_indices = @transform_0, window_bounds = array<i64: 8, 8, 128>}, {transform_indices = @transform_1, window_bounds = array<i64: 8, 8, 1>}, {pipeline_mode = #tpu.pipeline_mode<synchronous>, transform_indices = @transform_2, window_bounds = array<i64: 5, 128>}, {pipeline_mode = #tpu.pipeline_mode<synchronous>, transform_indices = @transform_3, window_bounds = array<i64: 32, 128>}, {pipeline_mode = #tpu.pipeline_mode<synchronous>, transform_indices = @transform_4, window_bounds = array<i64: 32, 5>}, {pipeline_mode = #tpu.pipeline_mode<synchronous>, transform_indices = @transform_5, window_bounds = array<i64: 1, 5>}, {transform_indices = @transform_6, window_bounds = array<i64: 8, 128>}]} {
    %c0_i32 = arith.constant 0 : i32
    %0 = arith.cmpi eq, %arg1, %c0_i32 : i32
    %1 = arith.extui %0 : i1 to i32
    %c0_i32_0 = arith.constant 0 : i32
    %2 = arith.cmpi ne, %1, %c0_i32_0 : i32
    scf.if %2 {
      %cst_266 = arith.constant 0.000000e+00 : f32
      %867 = vector.broadcast %cst_266 : f32 to vector<8x32xf32>
      %c0_267 = arith.constant 0 : index
      %c0_268 = arith.constant 0 : index
      %868 = vector.load %arg9[%c0_267, %c0_268] : memref<8x32xf32, #tpu.memory_space<vmem>>, vector<8x32xf32>
      tpu.vector_store %arg9[%c0_267, %c0_268], %867 {strides = array<i32>} : memref<8x32xf32, #tpu.memory_space<vmem>>, vector<8x32xf32>,
      %cst_269 = arith.constant 0.000000e+00 : f32
      %869 = vector.broadcast %cst_269 : f32 to vector<8x32xf32>
      %c0_270 = arith.constant 0 : index
      %c0_271 = arith.constant 0 : index
      %870 = vector.load %arg10[%c0_270, %c0_271] : memref<8x32xf32, #tpu.memory_space<vmem>>, vector<8x32xf32>
      tpu.vector_store %arg10[%c0_270, %c0_271], %869 {strides = array<i32>} : memref<8x32xf32, #tpu.memory_space<vmem>>, vector<8x32xf32>,
      %c0_272 = arith.constant 0 : index
      %c0_273 = arith.constant 0 : index
      %871 = vector.load %arg4[%c0_272, %c0_273] : memref<5x128xf32, #tpu.memory_space<vmem>>, vector<1x128xf32>
      %872 = vector.shape_cast %871 : vector<1x128xf32> to vector<1x128xf32>
      %873 = vector.broadcast %872 : vector<1x128xf32> to vector<8x128xf32>
      %c0_274 = arith.constant 0 : index
      %c0_275 = arith.constant 0 : index
      %874 = vector.load %arg11[%c0_274, %c0_275] : memref<8x128xf32, #tpu.memory_space<vmem>>, vector<8x128xf32>
      tpu.vector_store %arg11[%c0_274, %c0_275], %873 {strides = array<i32>} : memref<8x128xf32, #tpu.memory_space<vmem>>, vector<8x128xf32>,
      %cst_276 = arith.constant 0.000000e+00 : f32
      %875 = vector.broadcast %cst_276 : f32 to vector<8x1xf32>
      %c0_277 = arith.constant 0 : index
      %c0_278 = arith.constant 0 : index
      %876 = vector.load %arg12[%c0_277, %c0_278] : memref<8x1xf32, #tpu.memory_space<vmem>>, vector<8x1xf32>
      tpu.vector_store %arg12[%c0_277, %c0_278], %875 {strides = array<i32>} : memref<8x1xf32, #tpu.memory_space<vmem>>, vector<8x1xf32>,
    } else {
    }
    %c0 = arith.constant 0 : index
    %c0_1 = arith.constant 0 : index
    %3 = vector.load %arg4[%c0, %c0_1] : memref<5x128xf32, #tpu.memory_space<vmem>>, vector<5x128xf32>
    %c0_2 = arith.constant 0 : index
    %c0_3 = arith.constant 0 : index
    %4 = vector.load %arg5[%c0_2, %c0_3] : memref<32x128xf32, #tpu.memory_space<vmem>>, vector<32x128xf32>
    %c0_4 = arith.constant 0 : index
    %c0_5 = arith.constant 0 : index
    %5 = vector.load %arg6[%c0_4, %c0_5] : memref<32x5xf32, #tpu.memory_space<vmem>>, vector<32x5xf32>
    %c0_6 = arith.constant 0 : index
    %c0_7 = arith.constant 0 : index
    %6 = vector.load %arg7[%c0_6, %c0_7] : memref<1x5xf32, #tpu.memory_space<vmem>>, vector<1x5xf32>
    %7 = tpu.iota {dimensions = array<i32: 1>} : vector<8x5xi32>
    %c0_8 = arith.constant 0 : index
    %c0_9 = arith.constant 0 : index
    %8 = vector.load %arg9[%c0_8, %c0_9] : memref<8x32xf32, #tpu.memory_space<vmem>>, vector<8x32xf32>
    %c0_10 = arith.constant 0 : index
    %c0_11 = arith.constant 0 : index
    %9 = vector.load %arg10[%c0_10, %c0_11] : memref<8x32xf32, #tpu.memory_space<vmem>>, vector<8x32xf32>
    %c0_12 = arith.constant 0 : index
    %c0_13 = arith.constant 0 : index
    %10 = vector.load %arg11[%c0_12, %c0_13] : memref<8x128xf32, #tpu.memory_space<vmem>>, vector<8x128xf32>
    %c0_14 = arith.constant 0 : index
    %c0_15 = arith.constant 0 : index
    %11 = vector.load %arg12[%c0_14, %c0_15] : memref<8x1xf32, #tpu.memory_space<vmem>>, vector<8x1xf32>
    %c0_i32_16 = arith.constant 0 : i32
    %12 = arith.index_cast %c0_i32_16 : i32 to index
    %c0_17 = arith.constant 0 : index
    %c0_18 = arith.constant 0 : index
    %13 = vector.load %arg2[%12, %c0_17, %c0_18] : memref<8x8x128xf32, #tpu.memory_space<vmem>>, vector<1x8x128xf32>
    %14 = vector.shape_cast %13 : vector<1x8x128xf32> to vector<8x128xf32>
    %15 = arith.addf %14, %10 : vector<8x128xf32>
    %cst = arith.constant dense<0.000000e+00> : vector<8x128xf32>
    %16 = tpu.matmul %8, %4, %cst {dimension_numbers = #tpu.dot_dimension_numbers<[1], [0], [0], [1], [0, 0, 1, 1], [], []>} : vector<8x32xf32>, vector<32x128xf32>, vector<8x128xf32> -> vector<8x128xf32>
    %17 = arith.addf %15, %16 : vector<8x128xf32>
    %18 = arith.negf %17 : vector<8x128xf32>
    %19 = math.exp %18 : vector<8x128xf32>
    %cst_19 = arith.constant 1.000000e+00 : f32
    %20 = vector.broadcast %cst_19 : f32 to vector<8x128xf32>
    %21 = arith.addf %20, %19 : vector<8x128xf32>
    %22 = arith.divf %20, %21 : vector<8x128xf32>
    %23 = vector.extract_strided_slice %22 {offsets = [0, 0], sizes = [8, 32], strides = [1, 1]} : vector<8x128xf32> to vector<8x32xf32>
    %24 = vector.extract_strided_slice %22 {offsets = [0, 32], sizes = [8, 32], strides = [1, 1]} : vector<8x128xf32> to vector<8x32xf32>
    %25 = vector.extract_strided_slice %22 {offsets = [0, 96], sizes = [8, 32], strides = [1, 1]} : vector<8x128xf32> to vector<8x32xf32>
    %26 = vector.extract_strided_slice %17 {offsets = [0, 64], sizes = [8, 32], strides = [1, 1]} : vector<8x128xf32> to vector<8x32xf32>
    %27 = math.tanh %26 : vector<8x32xf32>
    %28 = arith.mulf %24, %9 : vector<8x32xf32>
    %29 = arith.mulf %23, %27 : vector<8x32xf32>
    %30 = arith.addf %28, %29 : vector<8x32xf32>
    %31 = math.tanh %30 : vector<8x32xf32>
    %32 = arith.mulf %25, %31 : vector<8x32xf32>
    %cst_20 = arith.constant dense<0.000000e+00> : vector<8x5xf32>
    %33 = tpu.matmul %32, %5, %cst_20 {dimension_numbers = #tpu.dot_dimension_numbers<[1], [0], [0], [1], [0, 0, 1, 1], [], []>} : vector<8x32xf32>, vector<32x5xf32>, vector<8x5xf32> -> vector<8x5xf32>
    %34 = vector.broadcast %6 : vector<1x5xf32> to vector<8x5xf32>
    %35 = arith.addf %33, %34 : vector<8x5xf32>
    %cst_21 = arith.constant dense<0xFF800000> : vector<8xf32>
    %36 = vector.multi_reduction <maximumf>, %35, %cst_21 [1] : vector<8x5xf32> to vector<8xf32>
    %37 = vector.shape_cast %36 : vector<8xf32> to vector<8x1xf32>
    %38 = vector.broadcast %37 : vector<8x1xf32> to vector<8x5xf32>
    %39 = arith.cmpf oeq, %35, %38 : vector<8x5xf32>
    %c5_i32 = arith.constant 5 : i32
    %40 = vector.broadcast %c5_i32 : i32 to vector<8x5xi32>
    %41 = arith.select %39, %7, %40 : vector<8x5xi1>, vector<8x5xi32>
    %cst_22 = arith.constant dense<2147483647> : vector<8xi32>
    %42 = vector.multi_reduction <minsi>, %41, %cst_22 [1] : vector<8x5xi32> to vector<8xi32>
    %43 = vector.shape_cast %42 : vector<8xi32> to vector<8x1xi32>
    %cst_23 = arith.constant 0.000000e+00 : f32
    %44 = vector.broadcast %cst_23 : f32 to vector<8x128xf32>
    %c0_i32_24 = arith.constant 0 : i32
    %45 = vector.broadcast %c0_i32_24 : i32 to vector<8x1xi32>
    %46 = arith.cmpi eq, %43, %45 : vector<8x1xi32>
    %cst_25 = arith.constant 1.000000e+00 : f32
    %cst_26 = arith.constant 0.000000e+00 : f32
    %47 = vector.broadcast %cst_25 : f32 to vector<8x1xf32>
    %48 = vector.broadcast %cst_26 : f32 to vector<8x1xf32>
    %49 = arith.select %46, %47, %48 : vector<8x1xi1>, vector<8x1xf32>
    %50 = vector.extract_strided_slice %3 {offsets = [0, 0], sizes = [1, 128], strides = [1, 1]} : vector<5x128xf32> to vector<1x128xf32>
    %51 = vector.broadcast %49 : vector<8x1xf32> to vector<8x128xf32>
    %52 = vector.broadcast %50 : vector<1x128xf32> to vector<8x128xf32>
    %53 = arith.mulf %51, %52 : vector<8x128xf32>
    %54 = arith.addf %44, %53 : vector<8x128xf32>
    %c1_i32 = arith.constant 1 : i32
    %55 = vector.broadcast %c1_i32 : i32 to vector<8x1xi32>
    %56 = arith.cmpi eq, %43, %55 : vector<8x1xi32>
    %cst_27 = arith.constant 1.000000e+00 : f32
    %cst_28 = arith.constant 0.000000e+00 : f32
    %57 = vector.broadcast %cst_27 : f32 to vector<8x1xf32>
    %58 = vector.broadcast %cst_28 : f32 to vector<8x1xf32>
    %59 = arith.select %56, %57, %58 : vector<8x1xi1>, vector<8x1xf32>
    %60 = vector.extract_strided_slice %3 {offsets = [1, 0], sizes = [1, 128], strides = [1, 1]} : vector<5x128xf32> to vector<1x128xf32>
    %61 = vector.broadcast %59 : vector<8x1xf32> to vector<8x128xf32>
    %62 = vector.broadcast %60 : vector<1x128xf32> to vector<8x128xf32>
    %63 = arith.mulf %61, %62 : vector<8x128xf32>
    %64 = arith.addf %54, %63 : vector<8x128xf32>
    %c2_i32 = arith.constant 2 : i32
    %65 = vector.broadcast %c2_i32 : i32 to vector<8x1xi32>
    %66 = arith.cmpi eq, %43, %65 : vector<8x1xi32>
    %cst_29 = arith.constant 1.000000e+00 : f32
    %cst_30 = arith.constant 0.000000e+00 : f32
    %67 = vector.broadcast %cst_29 : f32 to vector<8x1xf32>
    %68 = vector.broadcast %cst_30 : f32 to vector<8x1xf32>
    %69 = arith.select %66, %67, %68 : vector<8x1xi1>, vector<8x1xf32>
    %70 = vector.extract_strided_slice %3 {offsets = [2, 0], sizes = [1, 128], strides = [1, 1]} : vector<5x128xf32> to vector<1x128xf32>
    %71 = vector.broadcast %69 : vector<8x1xf32> to vector<8x128xf32>
    %72 = vector.broadcast %70 : vector<1x128xf32> to vector<8x128xf32>
    %73 = arith.mulf %71, %72 : vector<8x128xf32>
    %74 = arith.addf %64, %73 : vector<8x128xf32>
    %c3_i32 = arith.constant 3 : i32
    %75 = vector.broadcast %c3_i32 : i32 to vector<8x1xi32>
    %76 = arith.cmpi eq, %43, %75 : vector<8x1xi32>
    %cst_31 = arith.constant 1.000000e+00 : f32
    %cst_32 = arith.constant 0.000000e+00 : f32
    %77 = vector.broadcast %cst_31 : f32 to vector<8x1xf32>
    %78 = vector.broadcast %cst_32 : f32 to vector<8x1xf32>
    %79 = arith.select %76, %77, %78 : vector<8x1xi1>, vector<8x1xf32>
    %80 = vector.extract_strided_slice %3 {offsets = [3, 0], sizes = [1, 128], strides = [1, 1]} : vector<5x128xf32> to vector<1x128xf32>
    %81 = vector.broadcast %79 : vector<8x1xf32> to vector<8x128xf32>
    %82 = vector.broadcast %80 : vector<1x128xf32> to vector<8x128xf32>
    %83 = arith.mulf %81, %82 : vector<8x128xf32>
    %84 = arith.addf %74, %83 : vector<8x128xf32>
    %c4_i32 = arith.constant 4 : i32
    %85 = vector.broadcast %c4_i32 : i32 to vector<8x1xi32>
    %86 = arith.cmpi eq, %43, %85 : vector<8x1xi32>
    %cst_33 = arith.constant 1.000000e+00 : f32
    %cst_34 = arith.constant 0.000000e+00 : f32
    %87 = vector.broadcast %cst_33 : f32 to vector<8x1xf32>
    %88 = vector.broadcast %cst_34 : f32 to vector<8x1xf32>
    %89 = arith.select %86, %87, %88 : vector<8x1xi1>, vector<8x1xf32>
    %90 = vector.extract_strided_slice %3 {offsets = [4, 0], sizes = [1, 128], strides = [1, 1]} : vector<5x128xf32> to vector<1x128xf32>
    %91 = vector.broadcast %89 : vector<8x1xf32> to vector<8x128xf32>
    %92 = vector.broadcast %90 : vector<1x128xf32> to vector<8x128xf32>
    %93 = arith.mulf %91, %92 : vector<8x128xf32>
    %94 = arith.addf %84, %93 : vector<8x128xf32>
    %95 = arith.index_cast %c0_i32_16 : i32 to index
    %c0_35 = arith.constant 0 : index
    %c0_36 = arith.constant 0 : index
    %96 = vector.load %arg3[%95, %c0_35, %c0_36] : memref<8x8x1xi32, #tpu.memory_space<vmem>>, vector<1x8x1xi32>
    %97 = vector.shape_cast %96 : vector<1x8x1xi32> to vector<8x1xi32>
    %98 = vector.broadcast %37 : vector<8x1xf32> to vector<8x5xf32>
    %99 = arith.subf %35, %98 : vector<8x5xf32>
    %100 = math.exp %99 : vector<8x5xf32>
    %cst_37 = arith.constant dense<0.000000e+00> : vector<8xf32>
    %101 = vector.multi_reduction <add>, %100, %cst_37 [1] : vector<8x5xf32> to vector<8xf32>
    %102 = vector.shape_cast %101 : vector<8xf32> to vector<8x1xf32>
    %103 = math.log %102 : vector<8x1xf32>
    %104 = arith.addf %37, %103 : vector<8x1xf32>
    %105 = vector.broadcast %97 : vector<8x1xi32> to vector<8x5xi32>
    %106 = arith.cmpi eq, %7, %105 : vector<8x5xi32>
    %cst_38 = arith.constant 0.000000e+00 : f32
    %107 = vector.broadcast %cst_38 : f32 to vector<8x5xf32>
    %108 = arith.select %106, %35, %107 : vector<8x5xi1>, vector<8x5xf32>
    %cst_39 = arith.constant dense<0.000000e+00> : vector<8xf32>
    %109 = vector.multi_reduction <add>, %108, %cst_39 [1] : vector<8x5xf32> to vector<8xf32>
    %110 = vector.shape_cast %109 : vector<8xf32> to vector<8x1xf32>
    %111 = arith.subf %104, %110 : vector<8x1xf32>
    %c0_i32_40 = arith.constant 0 : i32
    %112 = vector.broadcast %c0_i32_40 : i32 to vector<8x1xi32>
    %113 = arith.cmpi ne, %97, %112 : vector<8x1xi32>
    %114 = arith.extui %113 : vector<8x1xi1> to vector<8x1xi32>
    %115 = arith.sitofp %114 : vector<8x1xi32> to vector<8x1xf32>
    %116 = arith.mulf %111, %115 : vector<8x1xf32>
    %117 = arith.addf %11, %116 : vector<8x1xf32>
    %c1_i32_41 = arith.constant 1 : i32
    %118 = arith.index_cast %c1_i32_41 : i32 to index
    %c0_42 = arith.constant 0 : index
    %c0_43 = arith.constant 0 : index
    %119 = vector.load %arg2[%118, %c0_42, %c0_43] : memref<8x8x128xf32, #tpu.memory_space<vmem>>, vector<1x8x128xf32>
    %120 = vector.shape_cast %119 : vector<1x8x128xf32> to vector<8x128xf32>
    %121 = arith.addf %120, %94 : vector<8x128xf32>
    %cst_44 = arith.constant dense<0.000000e+00> : vector<8x128xf32>
    %122 = tpu.matmul %32, %4, %cst_44 {dimension_numbers = #tpu.dot_dimension_numbers<[1], [0], [0], [1], [0, 0, 1, 1], [], []>} : vector<8x32xf32>, vector<32x128xf32>, vector<8x128xf32> -> vector<8x128xf32>
    %123 = arith.addf %121, %122 : vector<8x128xf32>
    %124 = arith.negf %123 : vector<8x128xf32>
    %125 = math.exp %124 : vector<8x128xf32>
    %cst_45 = arith.constant 1.000000e+00 : f32
    %126 = vector.broadcast %cst_45 : f32 to vector<8x128xf32>
    %127 = arith.addf %126, %125 : vector<8x128xf32>
    %128 = arith.divf %126, %127 : vector<8x128xf32>
    %129 = vector.extract_strided_slice %128 {offsets = [0, 0], sizes = [8, 32], strides = [1, 1]} : vector<8x128xf32> to vector<8x32xf32>
    %130 = vector.extract_strided_slice %128 {offsets = [0, 32], sizes = [8, 32], strides = [1, 1]} : vector<8x128xf32> to vector<8x32xf32>
    %131 = vector.extract_strided_slice %128 {offsets = [0, 96], sizes = [8, 32], strides = [1, 1]} : vector<8x128xf32> to vector<8x32xf32>
    %132 = vector.extract_strided_slice %123 {offsets = [0, 64], sizes = [8, 32], strides = [1, 1]} : vector<8x128xf32> to vector<8x32xf32>
    %133 = math.tanh %132 : vector<8x32xf32>
    %134 = arith.mulf %130, %30 : vector<8x32xf32>
    %135 = arith.mulf %129, %133 : vector<8x32xf32>
    %136 = arith.addf %134, %135 : vector<8x32xf32>
    %137 = math.tanh %136 : vector<8x32xf32>
    %138 = arith.mulf %131, %137 : vector<8x32xf32>
    %cst_46 = arith.constant dense<0.000000e+00> : vector<8x5xf32>
    %139 = tpu.matmul %138, %5, %cst_46 {dimension_numbers = #tpu.dot_dimension_numbers<[1], [0], [0], [1], [0, 0, 1, 1], [], []>} : vector<8x32xf32>, vector<32x5xf32>, vector<8x5xf32> -> vector<8x5xf32>
    %140 = vector.broadcast %6 : vector<1x5xf32> to vector<8x5xf32>
    %141 = arith.addf %139, %140 : vector<8x5xf32>
    %cst_47 = arith.constant dense<0xFF800000> : vector<8xf32>
    %142 = vector.multi_reduction <maximumf>, %141, %cst_47 [1] : vector<8x5xf32> to vector<8xf32>
    %143 = vector.shape_cast %142 : vector<8xf32> to vector<8x1xf32>
    %144 = vector.broadcast %143 : vector<8x1xf32> to vector<8x5xf32>
    %145 = arith.cmpf oeq, %141, %144 : vector<8x5xf32>
    %c5_i32_48 = arith.constant 5 : i32
    %146 = vector.broadcast %c5_i32_48 : i32 to vector<8x5xi32>
    %147 = arith.select %145, %7, %146 : vector<8x5xi1>, vector<8x5xi32>
    %cst_49 = arith.constant dense<2147483647> : vector<8xi32>
    %148 = vector.multi_reduction <minsi>, %147, %cst_49 [1] : vector<8x5xi32> to vector<8xi32>
    %149 = vector.shape_cast %148 : vector<8xi32> to vector<8x1xi32>
    %cst_50 = arith.constant 0.000000e+00 : f32
    %150 = vector.broadcast %cst_50 : f32 to vector<8x128xf32>
    %c0_i32_51 = arith.constant 0 : i32
    %151 = vector.broadcast %c0_i32_51 : i32 to vector<8x1xi32>
    %152 = arith.cmpi eq, %149, %151 : vector<8x1xi32>
    %cst_52 = arith.constant 1.000000e+00 : f32
    %cst_53 = arith.constant 0.000000e+00 : f32
    %153 = vector.broadcast %cst_52 : f32 to vector<8x1xf32>
    %154 = vector.broadcast %cst_53 : f32 to vector<8x1xf32>
    %155 = arith.select %152, %153, %154 : vector<8x1xi1>, vector<8x1xf32>
    %156 = vector.extract_strided_slice %3 {offsets = [0, 0], sizes = [1, 128], strides = [1, 1]} : vector<5x128xf32> to vector<1x128xf32>
    %157 = vector.broadcast %155 : vector<8x1xf32> to vector<8x128xf32>
    %158 = vector.broadcast %156 : vector<1x128xf32> to vector<8x128xf32>
    %159 = arith.mulf %157, %158 : vector<8x128xf32>
    %160 = arith.addf %150, %159 : vector<8x128xf32>
    %c1_i32_54 = arith.constant 1 : i32
    %161 = vector.broadcast %c1_i32_54 : i32 to vector<8x1xi32>
    %162 = arith.cmpi eq, %149, %161 : vector<8x1xi32>
    %cst_55 = arith.constant 1.000000e+00 : f32
    %cst_56 = arith.constant 0.000000e+00 : f32
    %163 = vector.broadcast %cst_55 : f32 to vector<8x1xf32>
    %164 = vector.broadcast %cst_56 : f32 to vector<8x1xf32>
    %165 = arith.select %162, %163, %164 : vector<8x1xi1>, vector<8x1xf32>
    %166 = vector.extract_strided_slice %3 {offsets = [1, 0], sizes = [1, 128], strides = [1, 1]} : vector<5x128xf32> to vector<1x128xf32>
    %167 = vector.broadcast %165 : vector<8x1xf32> to vector<8x128xf32>
    %168 = vector.broadcast %166 : vector<1x128xf32> to vector<8x128xf32>
    %169 = arith.mulf %167, %168 : vector<8x128xf32>
    %170 = arith.addf %160, %169 : vector<8x128xf32>
    %c2_i32_57 = arith.constant 2 : i32
    %171 = vector.broadcast %c2_i32_57 : i32 to vector<8x1xi32>
    %172 = arith.cmpi eq, %149, %171 : vector<8x1xi32>
    %cst_58 = arith.constant 1.000000e+00 : f32
    %cst_59 = arith.constant 0.000000e+00 : f32
    %173 = vector.broadcast %cst_58 : f32 to vector<8x1xf32>
    %174 = vector.broadcast %cst_59 : f32 to vector<8x1xf32>
    %175 = arith.select %172, %173, %174 : vector<8x1xi1>, vector<8x1xf32>
    %176 = vector.extract_strided_slice %3 {offsets = [2, 0], sizes = [1, 128], strides = [1, 1]} : vector<5x128xf32> to vector<1x128xf32>
    %177 = vector.broadcast %175 : vector<8x1xf32> to vector<8x128xf32>
    %178 = vector.broadcast %176 : vector<1x128xf32> to vector<8x128xf32>
    %179 = arith.mulf %177, %178 : vector<8x128xf32>
    %180 = arith.addf %170, %179 : vector<8x128xf32>
    %c3_i32_60 = arith.constant 3 : i32
    %181 = vector.broadcast %c3_i32_60 : i32 to vector<8x1xi32>
    %182 = arith.cmpi eq, %149, %181 : vector<8x1xi32>
    %cst_61 = arith.constant 1.000000e+00 : f32
    %cst_62 = arith.constant 0.000000e+00 : f32
    %183 = vector.broadcast %cst_61 : f32 to vector<8x1xf32>
    %184 = vector.broadcast %cst_62 : f32 to vector<8x1xf32>
    %185 = arith.select %182, %183, %184 : vector<8x1xi1>, vector<8x1xf32>
    %186 = vector.extract_strided_slice %3 {offsets = [3, 0], sizes = [1, 128], strides = [1, 1]} : vector<5x128xf32> to vector<1x128xf32>
    %187 = vector.broadcast %185 : vector<8x1xf32> to vector<8x128xf32>
    %188 = vector.broadcast %186 : vector<1x128xf32> to vector<8x128xf32>
    %189 = arith.mulf %187, %188 : vector<8x128xf32>
    %190 = arith.addf %180, %189 : vector<8x128xf32>
    %c4_i32_63 = arith.constant 4 : i32
    %191 = vector.broadcast %c4_i32_63 : i32 to vector<8x1xi32>
    %192 = arith.cmpi eq, %149, %191 : vector<8x1xi32>
    %cst_64 = arith.constant 1.000000e+00 : f32
    %cst_65 = arith.constant 0.000000e+00 : f32
    %193 = vector.broadcast %cst_64 : f32 to vector<8x1xf32>
    %194 = vector.broadcast %cst_65 : f32 to vector<8x1xf32>
    %195 = arith.select %192, %193, %194 : vector<8x1xi1>, vector<8x1xf32>
    %196 = vector.extract_strided_slice %3 {offsets = [4, 0], sizes = [1, 128], strides = [1, 1]} : vector<5x128xf32> to vector<1x128xf32>
    %197 = vector.broadcast %195 : vector<8x1xf32> to vector<8x128xf32>
    %198 = vector.broadcast %196 : vector<1x128xf32> to vector<8x128xf32>
    %199 = arith.mulf %197, %198 : vector<8x128xf32>
    %200 = arith.addf %190, %199 : vector<8x128xf32>
    %201 = arith.index_cast %c1_i32_41 : i32 to index
    %c0_66 = arith.constant 0 : index
    %c0_67 = arith.constant 0 : index
    %202 = vector.load %arg3[%201, %c0_66, %c0_67] : memref<8x8x1xi32, #tpu.memory_space<vmem>>, vector<1x8x1xi32>
    %203 = vector.shape_cast %202 : vector<1x8x1xi32> to vector<8x1xi32>
    %204 = vector.broadcast %143 : vector<8x1xf32> to vector<8x5xf32>
    %205 = arith.subf %141, %204 : vector<8x5xf32>
    %206 = math.exp %205 : vector<8x5xf32>
    %cst_68 = arith.constant dense<0.000000e+00> : vector<8xf32>
    %207 = vector.multi_reduction <add>, %206, %cst_68 [1] : vector<8x5xf32> to vector<8xf32>
    %208 = vector.shape_cast %207 : vector<8xf32> to vector<8x1xf32>
    %209 = math.log %208 : vector<8x1xf32>
    %210 = arith.addf %143, %209 : vector<8x1xf32>
    %211 = vector.broadcast %203 : vector<8x1xi32> to vector<8x5xi32>
    %212 = arith.cmpi eq, %7, %211 : vector<8x5xi32>
    %cst_69 = arith.constant 0.000000e+00 : f32
    %213 = vector.broadcast %cst_69 : f32 to vector<8x5xf32>
    %214 = arith.select %212, %141, %213 : vector<8x5xi1>, vector<8x5xf32>
    %cst_70 = arith.constant dense<0.000000e+00> : vector<8xf32>
    %215 = vector.multi_reduction <add>, %214, %cst_70 [1] : vector<8x5xf32> to vector<8xf32>
    %216 = vector.shape_cast %215 : vector<8xf32> to vector<8x1xf32>
    %217 = arith.subf %210, %216 : vector<8x1xf32>
    %c0_i32_71 = arith.constant 0 : i32
    %218 = vector.broadcast %c0_i32_71 : i32 to vector<8x1xi32>
    %219 = arith.cmpi ne, %203, %218 : vector<8x1xi32>
    %220 = arith.extui %219 : vector<8x1xi1> to vector<8x1xi32>
    %221 = arith.sitofp %220 : vector<8x1xi32> to vector<8x1xf32>
    %222 = arith.mulf %217, %221 : vector<8x1xf32>
    %223 = arith.addf %117, %222 : vector<8x1xf32>
    %c2_i32_72 = arith.constant 2 : i32
    %224 = arith.index_cast %c2_i32_72 : i32 to index
    %c0_73 = arith.constant 0 : index
    %c0_74 = arith.constant 0 : index
    %225 = vector.load %arg2[%224, %c0_73, %c0_74] : memref<8x8x128xf32, #tpu.memory_space<vmem>>, vector<1x8x128xf32>
    %226 = vector.shape_cast %225 : vector<1x8x128xf32> to vector<8x128xf32>
    %227 = arith.addf %226, %200 : vector<8x128xf32>
    %cst_75 = arith.constant dense<0.000000e+00> : vector<8x128xf32>
    %228 = tpu.matmul %138, %4, %cst_75 {dimension_numbers = #tpu.dot_dimension_numbers<[1], [0], [0], [1], [0, 0, 1, 1], [], []>} : vector<8x32xf32>, vector<32x128xf32>, vector<8x128xf32> -> vector<8x128xf32>
    %229 = arith.addf %227, %228 : vector<8x128xf32>
    %230 = arith.negf %229 : vector<8x128xf32>
    %231 = math.exp %230 : vector<8x128xf32>
    %cst_76 = arith.constant 1.000000e+00 : f32
    %232 = vector.broadcast %cst_76 : f32 to vector<8x128xf32>
    %233 = arith.addf %232, %231 : vector<8x128xf32>
    %234 = arith.divf %232, %233 : vector<8x128xf32>
    %235 = vector.extract_strided_slice %234 {offsets = [0, 0], sizes = [8, 32], strides = [1, 1]} : vector<8x128xf32> to vector<8x32xf32>
    %236 = vector.extract_strided_slice %234 {offsets = [0, 32], sizes = [8, 32], strides = [1, 1]} : vector<8x128xf32> to vector<8x32xf32>
    %237 = vector.extract_strided_slice %234 {offsets = [0, 96], sizes = [8, 32], strides = [1, 1]} : vector<8x128xf32> to vector<8x32xf32>
    %238 = vector.extract_strided_slice %229 {offsets = [0, 64], sizes = [8, 32], strides = [1, 1]} : vector<8x128xf32> to vector<8x32xf32>
    %239 = math.tanh %238 : vector<8x32xf32>
    %240 = arith.mulf %236, %136 : vector<8x32xf32>
    %241 = arith.mulf %235, %239 : vector<8x32xf32>
    %242 = arith.addf %240, %241 : vector<8x32xf32>
    %243 = math.tanh %242 : vector<8x32xf32>
    %244 = arith.mulf %237, %243 : vector<8x32xf32>
    %cst_77 = arith.constant dense<0.000000e+00> : vector<8x5xf32>
    %245 = tpu.matmul %244, %5, %cst_77 {dimension_numbers = #tpu.dot_dimension_numbers<[1], [0], [0], [1], [0, 0, 1, 1], [], []>} : vector<8x32xf32>, vector<32x5xf32>, vector<8x5xf32> -> vector<8x5xf32>
    %246 = vector.broadcast %6 : vector<1x5xf32> to vector<8x5xf32>
    %247 = arith.addf %245, %246 : vector<8x5xf32>
    %cst_78 = arith.constant dense<0xFF800000> : vector<8xf32>
    %248 = vector.multi_reduction <maximumf>, %247, %cst_78 [1] : vector<8x5xf32> to vector<8xf32>
    %249 = vector.shape_cast %248 : vector<8xf32> to vector<8x1xf32>
    %250 = vector.broadcast %249 : vector<8x1xf32> to vector<8x5xf32>
    %251 = arith.cmpf oeq, %247, %250 : vector<8x5xf32>
    %c5_i32_79 = arith.constant 5 : i32
    %252 = vector.broadcast %c5_i32_79 : i32 to vector<8x5xi32>
    %253 = arith.select %251, %7, %252 : vector<8x5xi1>, vector<8x5xi32>
    %cst_80 = arith.constant dense<2147483647> : vector<8xi32>
    %254 = vector.multi_reduction <minsi>, %253, %cst_80 [1] : vector<8x5xi32> to vector<8xi32>
    %255 = vector.shape_cast %254 : vector<8xi32> to vector<8x1xi32>
    %cst_81 = arith.constant 0.000000e+00 : f32
    %256 = vector.broadcast %cst_81 : f32 to vector<8x128xf32>
    %c0_i32_82 = arith.constant 0 : i32
    %257 = vector.broadcast %c0_i32_82 : i32 to vector<8x1xi32>
    %258 = arith.cmpi eq, %255, %257 : vector<8x1xi32>
    %cst_83 = arith.constant 1.000000e+00 : f32
    %cst_84 = arith.constant 0.000000e+00 : f32
    %259 = vector.broadcast %cst_83 : f32 to vector<8x1xf32>
    %260 = vector.broadcast %cst_84 : f32 to vector<8x1xf32>
    %261 = arith.select %258, %259, %260 : vector<8x1xi1>, vector<8x1xf32>
    %262 = vector.extract_strided_slice %3 {offsets = [0, 0], sizes = [1, 128], strides = [1, 1]} : vector<5x128xf32> to vector<1x128xf32>
    %263 = vector.broadcast %261 : vector<8x1xf32> to vector<8x128xf32>
    %264 = vector.broadcast %262 : vector<1x128xf32> to vector<8x128xf32>
    %265 = arith.mulf %263, %264 : vector<8x128xf32>
    %266 = arith.addf %256, %265 : vector<8x128xf32>
    %c1_i32_85 = arith.constant 1 : i32
    %267 = vector.broadcast %c1_i32_85 : i32 to vector<8x1xi32>
    %268 = arith.cmpi eq, %255, %267 : vector<8x1xi32>
    %cst_86 = arith.constant 1.000000e+00 : f32
    %cst_87 = arith.constant 0.000000e+00 : f32
    %269 = vector.broadcast %cst_86 : f32 to vector<8x1xf32>
    %270 = vector.broadcast %cst_87 : f32 to vector<8x1xf32>
    %271 = arith.select %268, %269, %270 : vector<8x1xi1>, vector<8x1xf32>
    %272 = vector.extract_strided_slice %3 {offsets = [1, 0], sizes = [1, 128], strides = [1, 1]} : vector<5x128xf32> to vector<1x128xf32>
    %273 = vector.broadcast %271 : vector<8x1xf32> to vector<8x128xf32>
    %274 = vector.broadcast %272 : vector<1x128xf32> to vector<8x128xf32>
    %275 = arith.mulf %273, %274 : vector<8x128xf32>
    %276 = arith.addf %266, %275 : vector<8x128xf32>
    %c2_i32_88 = arith.constant 2 : i32
    %277 = vector.broadcast %c2_i32_88 : i32 to vector<8x1xi32>
    %278 = arith.cmpi eq, %255, %277 : vector<8x1xi32>
    %cst_89 = arith.constant 1.000000e+00 : f32
    %cst_90 = arith.constant 0.000000e+00 : f32
    %279 = vector.broadcast %cst_89 : f32 to vector<8x1xf32>
    %280 = vector.broadcast %cst_90 : f32 to vector<8x1xf32>
    %281 = arith.select %278, %279, %280 : vector<8x1xi1>, vector<8x1xf32>
    %282 = vector.extract_strided_slice %3 {offsets = [2, 0], sizes = [1, 128], strides = [1, 1]} : vector<5x128xf32> to vector<1x128xf32>
    %283 = vector.broadcast %281 : vector<8x1xf32> to vector<8x128xf32>
    %284 = vector.broadcast %282 : vector<1x128xf32> to vector<8x128xf32>
    %285 = arith.mulf %283, %284 : vector<8x128xf32>
    %286 = arith.addf %276, %285 : vector<8x128xf32>
    %c3_i32_91 = arith.constant 3 : i32
    %287 = vector.broadcast %c3_i32_91 : i32 to vector<8x1xi32>
    %288 = arith.cmpi eq, %255, %287 : vector<8x1xi32>
    %cst_92 = arith.constant 1.000000e+00 : f32
    %cst_93 = arith.constant 0.000000e+00 : f32
    %289 = vector.broadcast %cst_92 : f32 to vector<8x1xf32>
    %290 = vector.broadcast %cst_93 : f32 to vector<8x1xf32>
    %291 = arith.select %288, %289, %290 : vector<8x1xi1>, vector<8x1xf32>
    %292 = vector.extract_strided_slice %3 {offsets = [3, 0], sizes = [1, 128], strides = [1, 1]} : vector<5x128xf32> to vector<1x128xf32>
    %293 = vector.broadcast %291 : vector<8x1xf32> to vector<8x128xf32>
    %294 = vector.broadcast %292 : vector<1x128xf32> to vector<8x128xf32>
    %295 = arith.mulf %293, %294 : vector<8x128xf32>
    %296 = arith.addf %286, %295 : vector<8x128xf32>
    %c4_i32_94 = arith.constant 4 : i32
    %297 = vector.broadcast %c4_i32_94 : i32 to vector<8x1xi32>
    %298 = arith.cmpi eq, %255, %297 : vector<8x1xi32>
    %cst_95 = arith.constant 1.000000e+00 : f32
    %cst_96 = arith.constant 0.000000e+00 : f32
    %299 = vector.broadcast %cst_95 : f32 to vector<8x1xf32>
    %300 = vector.broadcast %cst_96 : f32 to vector<8x1xf32>
    %301 = arith.select %298, %299, %300 : vector<8x1xi1>, vector<8x1xf32>
    %302 = vector.extract_strided_slice %3 {offsets = [4, 0], sizes = [1, 128], strides = [1, 1]} : vector<5x128xf32> to vector<1x128xf32>
    %303 = vector.broadcast %301 : vector<8x1xf32> to vector<8x128xf32>
    %304 = vector.broadcast %302 : vector<1x128xf32> to vector<8x128xf32>
    %305 = arith.mulf %303, %304 : vector<8x128xf32>
    %306 = arith.addf %296, %305 : vector<8x128xf32>
    %307 = arith.index_cast %c2_i32_72 : i32 to index
    %c0_97 = arith.constant 0 : index
    %c0_98 = arith.constant 0 : index
    %308 = vector.load %arg3[%307, %c0_97, %c0_98] : memref<8x8x1xi32, #tpu.memory_space<vmem>>, vector<1x8x1xi32>
    %309 = vector.shape_cast %308 : vector<1x8x1xi32> to vector<8x1xi32>
    %310 = vector.broadcast %249 : vector<8x1xf32> to vector<8x5xf32>
    %311 = arith.subf %247, %310 : vector<8x5xf32>
    %312 = math.exp %311 : vector<8x5xf32>
    %cst_99 = arith.constant dense<0.000000e+00> : vector<8xf32>
    %313 = vector.multi_reduction <add>, %312, %cst_99 [1] : vector<8x5xf32> to vector<8xf32>
    %314 = vector.shape_cast %313 : vector<8xf32> to vector<8x1xf32>
    %315 = math.log %314 : vector<8x1xf32>
    %316 = arith.addf %249, %315 : vector<8x1xf32>
    %317 = vector.broadcast %309 : vector<8x1xi32> to vector<8x5xi32>
    %318 = arith.cmpi eq, %7, %317 : vector<8x5xi32>
    %cst_100 = arith.constant 0.000000e+00 : f32
    %319 = vector.broadcast %cst_100 : f32 to vector<8x5xf32>
    %320 = arith.select %318, %247, %319 : vector<8x5xi1>, vector<8x5xf32>
    %cst_101 = arith.constant dense<0.000000e+00> : vector<8xf32>
    %321 = vector.multi_reduction <add>, %320, %cst_101 [1] : vector<8x5xf32> to vector<8xf32>
    %322 = vector.shape_cast %321 : vector<8xf32> to vector<8x1xf32>
    %323 = arith.subf %316, %322 : vector<8x1xf32>
    %c0_i32_102 = arith.constant 0 : i32
    %324 = vector.broadcast %c0_i32_102 : i32 to vector<8x1xi32>
    %325 = arith.cmpi ne, %309, %324 : vector<8x1xi32>
    %326 = arith.extui %325 : vector<8x1xi1> to vector<8x1xi32>
    %327 = arith.sitofp %326 : vector<8x1xi32> to vector<8x1xf32>
    %328 = arith.mulf %323, %327 : vector<8x1xf32>
    %329 = arith.addf %223, %328 : vector<8x1xf32>
    %c3_i32_103 = arith.constant 3 : i32
    %330 = arith.index_cast %c3_i32_103 : i32 to index
    %c0_104 = arith.constant 0 : index
    %c0_105 = arith.constant 0 : index
    %331 = vector.load %arg2[%330, %c0_104, %c0_105] : memref<8x8x128xf32, #tpu.memory_space<vmem>>, vector<1x8x128xf32>
    %332 = vector.shape_cast %331 : vector<1x8x128xf32> to vector<8x128xf32>
    %333 = arith.addf %332, %306 : vector<8x128xf32>
    %cst_106 = arith.constant dense<0.000000e+00> : vector<8x128xf32>
    %334 = tpu.matmul %244, %4, %cst_106 {dimension_numbers = #tpu.dot_dimension_numbers<[1], [0], [0], [1], [0, 0, 1, 1], [], []>} : vector<8x32xf32>, vector<32x128xf32>, vector<8x128xf32> -> vector<8x128xf32>
    %335 = arith.addf %333, %334 : vector<8x128xf32>
    %336 = arith.negf %335 : vector<8x128xf32>
    %337 = math.exp %336 : vector<8x128xf32>
    %cst_107 = arith.constant 1.000000e+00 : f32
    %338 = vector.broadcast %cst_107 : f32 to vector<8x128xf32>
    %339 = arith.addf %338, %337 : vector<8x128xf32>
    %340 = arith.divf %338, %339 : vector<8x128xf32>
    %341 = vector.extract_strided_slice %340 {offsets = [0, 0], sizes = [8, 32], strides = [1, 1]} : vector<8x128xf32> to vector<8x32xf32>
    %342 = vector.extract_strided_slice %340 {offsets = [0, 32], sizes = [8, 32], strides = [1, 1]} : vector<8x128xf32> to vector<8x32xf32>
    %343 = vector.extract_strided_slice %340 {offsets = [0, 96], sizes = [8, 32], strides = [1, 1]} : vector<8x128xf32> to vector<8x32xf32>
    %344 = vector.extract_strided_slice %335 {offsets = [0, 64], sizes = [8, 32], strides = [1, 1]} : vector<8x128xf32> to vector<8x32xf32>
    %345 = math.tanh %344 : vector<8x32xf32>
    %346 = arith.mulf %342, %242 : vector<8x32xf32>
    %347 = arith.mulf %341, %345 : vector<8x32xf32>
    %348 = arith.addf %346, %347 : vector<8x32xf32>
    %349 = math.tanh %348 : vector<8x32xf32>
    %350 = arith.mulf %343, %349 : vector<8x32xf32>
    %cst_108 = arith.constant dense<0.000000e+00> : vector<8x5xf32>
    %351 = tpu.matmul %350, %5, %cst_108 {dimension_numbers = #tpu.dot_dimension_numbers<[1], [0], [0], [1], [0, 0, 1, 1], [], []>} : vector<8x32xf32>, vector<32x5xf32>, vector<8x5xf32> -> vector<8x5xf32>
    %352 = vector.broadcast %6 : vector<1x5xf32> to vector<8x5xf32>
    %353 = arith.addf %351, %352 : vector<8x5xf32>
    %cst_109 = arith.constant dense<0xFF800000> : vector<8xf32>
    %354 = vector.multi_reduction <maximumf>, %353, %cst_109 [1] : vector<8x5xf32> to vector<8xf32>
    %355 = vector.shape_cast %354 : vector<8xf32> to vector<8x1xf32>
    %356 = vector.broadcast %355 : vector<8x1xf32> to vector<8x5xf32>
    %357 = arith.cmpf oeq, %353, %356 : vector<8x5xf32>
    %c5_i32_110 = arith.constant 5 : i32
    %358 = vector.broadcast %c5_i32_110 : i32 to vector<8x5xi32>
    %359 = arith.select %357, %7, %358 : vector<8x5xi1>, vector<8x5xi32>
    %cst_111 = arith.constant dense<2147483647> : vector<8xi32>
    %360 = vector.multi_reduction <minsi>, %359, %cst_111 [1] : vector<8x5xi32> to vector<8xi32>
    %361 = vector.shape_cast %360 : vector<8xi32> to vector<8x1xi32>
    %cst_112 = arith.constant 0.000000e+00 : f32
    %362 = vector.broadcast %cst_112 : f32 to vector<8x128xf32>
    %c0_i32_113 = arith.constant 0 : i32
    %363 = vector.broadcast %c0_i32_113 : i32 to vector<8x1xi32>
    %364 = arith.cmpi eq, %361, %363 : vector<8x1xi32>
    %cst_114 = arith.constant 1.000000e+00 : f32
    %cst_115 = arith.constant 0.000000e+00 : f32
    %365 = vector.broadcast %cst_114 : f32 to vector<8x1xf32>
    %366 = vector.broadcast %cst_115 : f32 to vector<8x1xf32>
    %367 = arith.select %364, %365, %366 : vector<8x1xi1>, vector<8x1xf32>
    %368 = vector.extract_strided_slice %3 {offsets = [0, 0], sizes = [1, 128], strides = [1, 1]} : vector<5x128xf32> to vector<1x128xf32>
    %369 = vector.broadcast %367 : vector<8x1xf32> to vector<8x128xf32>
    %370 = vector.broadcast %368 : vector<1x128xf32> to vector<8x128xf32>
    %371 = arith.mulf %369, %370 : vector<8x128xf32>
    %372 = arith.addf %362, %371 : vector<8x128xf32>
    %c1_i32_116 = arith.constant 1 : i32
    %373 = vector.broadcast %c1_i32_116 : i32 to vector<8x1xi32>
    %374 = arith.cmpi eq, %361, %373 : vector<8x1xi32>
    %cst_117 = arith.constant 1.000000e+00 : f32
    %cst_118 = arith.constant 0.000000e+00 : f32
    %375 = vector.broadcast %cst_117 : f32 to vector<8x1xf32>
    %376 = vector.broadcast %cst_118 : f32 to vector<8x1xf32>
    %377 = arith.select %374, %375, %376 : vector<8x1xi1>, vector<8x1xf32>
    %378 = vector.extract_strided_slice %3 {offsets = [1, 0], sizes = [1, 128], strides = [1, 1]} : vector<5x128xf32> to vector<1x128xf32>
    %379 = vector.broadcast %377 : vector<8x1xf32> to vector<8x128xf32>
    %380 = vector.broadcast %378 : vector<1x128xf32> to vector<8x128xf32>
    %381 = arith.mulf %379, %380 : vector<8x128xf32>
    %382 = arith.addf %372, %381 : vector<8x128xf32>
    %c2_i32_119 = arith.constant 2 : i32
    %383 = vector.broadcast %c2_i32_119 : i32 to vector<8x1xi32>
    %384 = arith.cmpi eq, %361, %383 : vector<8x1xi32>
    %cst_120 = arith.constant 1.000000e+00 : f32
    %cst_121 = arith.constant 0.000000e+00 : f32
    %385 = vector.broadcast %cst_120 : f32 to vector<8x1xf32>
    %386 = vector.broadcast %cst_121 : f32 to vector<8x1xf32>
    %387 = arith.select %384, %385, %386 : vector<8x1xi1>, vector<8x1xf32>
    %388 = vector.extract_strided_slice %3 {offsets = [2, 0], sizes = [1, 128], strides = [1, 1]} : vector<5x128xf32> to vector<1x128xf32>
    %389 = vector.broadcast %387 : vector<8x1xf32> to vector<8x128xf32>
    %390 = vector.broadcast %388 : vector<1x128xf32> to vector<8x128xf32>
    %391 = arith.mulf %389, %390 : vector<8x128xf32>
    %392 = arith.addf %382, %391 : vector<8x128xf32>
    %c3_i32_122 = arith.constant 3 : i32
    %393 = vector.broadcast %c3_i32_122 : i32 to vector<8x1xi32>
    %394 = arith.cmpi eq, %361, %393 : vector<8x1xi32>
    %cst_123 = arith.constant 1.000000e+00 : f32
    %cst_124 = arith.constant 0.000000e+00 : f32
    %395 = vector.broadcast %cst_123 : f32 to vector<8x1xf32>
    %396 = vector.broadcast %cst_124 : f32 to vector<8x1xf32>
    %397 = arith.select %394, %395, %396 : vector<8x1xi1>, vector<8x1xf32>
    %398 = vector.extract_strided_slice %3 {offsets = [3, 0], sizes = [1, 128], strides = [1, 1]} : vector<5x128xf32> to vector<1x128xf32>
    %399 = vector.broadcast %397 : vector<8x1xf32> to vector<8x128xf32>
    %400 = vector.broadcast %398 : vector<1x128xf32> to vector<8x128xf32>
    %401 = arith.mulf %399, %400 : vector<8x128xf32>
    %402 = arith.addf %392, %401 : vector<8x128xf32>
    %c4_i32_125 = arith.constant 4 : i32
    %403 = vector.broadcast %c4_i32_125 : i32 to vector<8x1xi32>
    %404 = arith.cmpi eq, %361, %403 : vector<8x1xi32>
    %cst_126 = arith.constant 1.000000e+00 : f32
    %cst_127 = arith.constant 0.000000e+00 : f32
    %405 = vector.broadcast %cst_126 : f32 to vector<8x1xf32>
    %406 = vector.broadcast %cst_127 : f32 to vector<8x1xf32>
    %407 = arith.select %404, %405, %406 : vector<8x1xi1>, vector<8x1xf32>
    %408 = vector.extract_strided_slice %3 {offsets = [4, 0], sizes = [1, 128], strides = [1, 1]} : vector<5x128xf32> to vector<1x128xf32>
    %409 = vector.broadcast %407 : vector<8x1xf32> to vector<8x128xf32>
    %410 = vector.broadcast %408 : vector<1x128xf32> to vector<8x128xf32>
    %411 = arith.mulf %409, %410 : vector<8x128xf32>
    %412 = arith.addf %402, %411 : vector<8x128xf32>
    %413 = arith.index_cast %c3_i32_103 : i32 to index
    %c0_128 = arith.constant 0 : index
    %c0_129 = arith.constant 0 : index
    %414 = vector.load %arg3[%413, %c0_128, %c0_129] : memref<8x8x1xi32, #tpu.memory_space<vmem>>, vector<1x8x1xi32>
    %415 = vector.shape_cast %414 : vector<1x8x1xi32> to vector<8x1xi32>
    %416 = vector.broadcast %355 : vector<8x1xf32> to vector<8x5xf32>
    %417 = arith.subf %353, %416 : vector<8x5xf32>
    %418 = math.exp %417 : vector<8x5xf32>
    %cst_130 = arith.constant dense<0.000000e+00> : vector<8xf32>
    %419 = vector.multi_reduction <add>, %418, %cst_130 [1] : vector<8x5xf32> to vector<8xf32>
    %420 = vector.shape_cast %419 : vector<8xf32> to vector<8x1xf32>
    %421 = math.log %420 : vector<8x1xf32>
    %422 = arith.addf %355, %421 : vector<8x1xf32>
    %423 = vector.broadcast %415 : vector<8x1xi32> to vector<8x5xi32>
    %424 = arith.cmpi eq, %7, %423 : vector<8x5xi32>
    %cst_131 = arith.constant 0.000000e+00 : f32
    %425 = vector.broadcast %cst_131 : f32 to vector<8x5xf32>
    %426 = arith.select %424, %353, %425 : vector<8x5xi1>, vector<8x5xf32>
    %cst_132 = arith.constant dense<0.000000e+00> : vector<8xf32>
    %427 = vector.multi_reduction <add>, %426, %cst_132 [1] : vector<8x5xf32> to vector<8xf32>
    %428 = vector.shape_cast %427 : vector<8xf32> to vector<8x1xf32>
    %429 = arith.subf %422, %428 : vector<8x1xf32>
    %c0_i32_133 = arith.constant 0 : i32
    %430 = vector.broadcast %c0_i32_133 : i32 to vector<8x1xi32>
    %431 = arith.cmpi ne, %415, %430 : vector<8x1xi32>
    %432 = arith.extui %431 : vector<8x1xi1> to vector<8x1xi32>
    %433 = arith.sitofp %432 : vector<8x1xi32> to vector<8x1xf32>
    %434 = arith.mulf %429, %433 : vector<8x1xf32>
    %435 = arith.addf %329, %434 : vector<8x1xf32>
    %c4_i32_134 = arith.constant 4 : i32
    %436 = arith.index_cast %c4_i32_134 : i32 to index
    %c0_135 = arith.constant 0 : index
    %c0_136 = arith.constant 0 : index
    %437 = vector.load %arg2[%436, %c0_135, %c0_136] : memref<8x8x128xf32, #tpu.memory_space<vmem>>, vector<1x8x128xf32>
    %438 = vector.shape_cast %437 : vector<1x8x128xf32> to vector<8x128xf32>
    %439 = arith.addf %438, %412 : vector<8x128xf32>
    %cst_137 = arith.constant dense<0.000000e+00> : vector<8x128xf32>
    %440 = tpu.matmul %350, %4, %cst_137 {dimension_numbers = #tpu.dot_dimension_numbers<[1], [0], [0], [1], [0, 0, 1, 1], [], []>} : vector<8x32xf32>, vector<32x128xf32>, vector<8x128xf32> -> vector<8x128xf32>
    %441 = arith.addf %439, %440 : vector<8x128xf32>
    %442 = arith.negf %441 : vector<8x128xf32>
    %443 = math.exp %442 : vector<8x128xf32>
    %cst_138 = arith.constant 1.000000e+00 : f32
    %444 = vector.broadcast %cst_138 : f32 to vector<8x128xf32>
    %445 = arith.addf %444, %443 : vector<8x128xf32>
    %446 = arith.divf %444, %445 : vector<8x128xf32>
    %447 = vector.extract_strided_slice %446 {offsets = [0, 0], sizes = [8, 32], strides = [1, 1]} : vector<8x128xf32> to vector<8x32xf32>
    %448 = vector.extract_strided_slice %446 {offsets = [0, 32], sizes = [8, 32], strides = [1, 1]} : vector<8x128xf32> to vector<8x32xf32>
    %449 = vector.extract_strided_slice %446 {offsets = [0, 96], sizes = [8, 32], strides = [1, 1]} : vector<8x128xf32> to vector<8x32xf32>
    %450 = vector.extract_strided_slice %441 {offsets = [0, 64], sizes = [8, 32], strides = [1, 1]} : vector<8x128xf32> to vector<8x32xf32>
    %451 = math.tanh %450 : vector<8x32xf32>
    %452 = arith.mulf %448, %348 : vector<8x32xf32>
    %453 = arith.mulf %447, %451 : vector<8x32xf32>
    %454 = arith.addf %452, %453 : vector<8x32xf32>
    %455 = math.tanh %454 : vector<8x32xf32>
    %456 = arith.mulf %449, %455 : vector<8x32xf32>
    %cst_139 = arith.constant dense<0.000000e+00> : vector<8x5xf32>
    %457 = tpu.matmul %456, %5, %cst_139 {dimension_numbers = #tpu.dot_dimension_numbers<[1], [0], [0], [1], [0, 0, 1, 1], [], []>} : vector<8x32xf32>, vector<32x5xf32>, vector<8x5xf32> -> vector<8x5xf32>
    %458 = vector.broadcast %6 : vector<1x5xf32> to vector<8x5xf32>
    %459 = arith.addf %457, %458 : vector<8x5xf32>
    %cst_140 = arith.constant dense<0xFF800000> : vector<8xf32>
    %460 = vector.multi_reduction <maximumf>, %459, %cst_140 [1] : vector<8x5xf32> to vector<8xf32>
    %461 = vector.shape_cast %460 : vector<8xf32> to vector<8x1xf32>
    %462 = vector.broadcast %461 : vector<8x1xf32> to vector<8x5xf32>
    %463 = arith.cmpf oeq, %459, %462 : vector<8x5xf32>
    %c5_i32_141 = arith.constant 5 : i32
    %464 = vector.broadcast %c5_i32_141 : i32 to vector<8x5xi32>
    %465 = arith.select %463, %7, %464 : vector<8x5xi1>, vector<8x5xi32>
    %cst_142 = arith.constant dense<2147483647> : vector<8xi32>
    %466 = vector.multi_reduction <minsi>, %465, %cst_142 [1] : vector<8x5xi32> to vector<8xi32>
    %467 = vector.shape_cast %466 : vector<8xi32> to vector<8x1xi32>
    %cst_143 = arith.constant 0.000000e+00 : f32
    %468 = vector.broadcast %cst_143 : f32 to vector<8x128xf32>
    %c0_i32_144 = arith.constant 0 : i32
    %469 = vector.broadcast %c0_i32_144 : i32 to vector<8x1xi32>
    %470 = arith.cmpi eq, %467, %469 : vector<8x1xi32>
    %cst_145 = arith.constant 1.000000e+00 : f32
    %cst_146 = arith.constant 0.000000e+00 : f32
    %471 = vector.broadcast %cst_145 : f32 to vector<8x1xf32>
    %472 = vector.broadcast %cst_146 : f32 to vector<8x1xf32>
    %473 = arith.select %470, %471, %472 : vector<8x1xi1>, vector<8x1xf32>
    %474 = vector.extract_strided_slice %3 {offsets = [0, 0], sizes = [1, 128], strides = [1, 1]} : vector<5x128xf32> to vector<1x128xf32>
    %475 = vector.broadcast %473 : vector<8x1xf32> to vector<8x128xf32>
    %476 = vector.broadcast %474 : vector<1x128xf32> to vector<8x128xf32>
    %477 = arith.mulf %475, %476 : vector<8x128xf32>
    %478 = arith.addf %468, %477 : vector<8x128xf32>
    %c1_i32_147 = arith.constant 1 : i32
    %479 = vector.broadcast %c1_i32_147 : i32 to vector<8x1xi32>
    %480 = arith.cmpi eq, %467, %479 : vector<8x1xi32>
    %cst_148 = arith.constant 1.000000e+00 : f32
    %cst_149 = arith.constant 0.000000e+00 : f32
    %481 = vector.broadcast %cst_148 : f32 to vector<8x1xf32>
    %482 = vector.broadcast %cst_149 : f32 to vector<8x1xf32>
    %483 = arith.select %480, %481, %482 : vector<8x1xi1>, vector<8x1xf32>
    %484 = vector.extract_strided_slice %3 {offsets = [1, 0], sizes = [1, 128], strides = [1, 1]} : vector<5x128xf32> to vector<1x128xf32>
    %485 = vector.broadcast %483 : vector<8x1xf32> to vector<8x128xf32>
    %486 = vector.broadcast %484 : vector<1x128xf32> to vector<8x128xf32>
    %487 = arith.mulf %485, %486 : vector<8x128xf32>
    %488 = arith.addf %478, %487 : vector<8x128xf32>
    %c2_i32_150 = arith.constant 2 : i32
    %489 = vector.broadcast %c2_i32_150 : i32 to vector<8x1xi32>
    %490 = arith.cmpi eq, %467, %489 : vector<8x1xi32>
    %cst_151 = arith.constant 1.000000e+00 : f32
    %cst_152 = arith.constant 0.000000e+00 : f32
    %491 = vector.broadcast %cst_151 : f32 to vector<8x1xf32>
    %492 = vector.broadcast %cst_152 : f32 to vector<8x1xf32>
    %493 = arith.select %490, %491, %492 : vector<8x1xi1>, vector<8x1xf32>
    %494 = vector.extract_strided_slice %3 {offsets = [2, 0], sizes = [1, 128], strides = [1, 1]} : vector<5x128xf32> to vector<1x128xf32>
    %495 = vector.broadcast %493 : vector<8x1xf32> to vector<8x128xf32>
    %496 = vector.broadcast %494 : vector<1x128xf32> to vector<8x128xf32>
    %497 = arith.mulf %495, %496 : vector<8x128xf32>
    %498 = arith.addf %488, %497 : vector<8x128xf32>
    %c3_i32_153 = arith.constant 3 : i32
    %499 = vector.broadcast %c3_i32_153 : i32 to vector<8x1xi32>
    %500 = arith.cmpi eq, %467, %499 : vector<8x1xi32>
    %cst_154 = arith.constant 1.000000e+00 : f32
    %cst_155 = arith.constant 0.000000e+00 : f32
    %501 = vector.broadcast %cst_154 : f32 to vector<8x1xf32>
    %502 = vector.broadcast %cst_155 : f32 to vector<8x1xf32>
    %503 = arith.select %500, %501, %502 : vector<8x1xi1>, vector<8x1xf32>
    %504 = vector.extract_strided_slice %3 {offsets = [3, 0], sizes = [1, 128], strides = [1, 1]} : vector<5x128xf32> to vector<1x128xf32>
    %505 = vector.broadcast %503 : vector<8x1xf32> to vector<8x128xf32>
    %506 = vector.broadcast %504 : vector<1x128xf32> to vector<8x128xf32>
    %507 = arith.mulf %505, %506 : vector<8x128xf32>
    %508 = arith.addf %498, %507 : vector<8x128xf32>
    %c4_i32_156 = arith.constant 4 : i32
    %509 = vector.broadcast %c4_i32_156 : i32 to vector<8x1xi32>
    %510 = arith.cmpi eq, %467, %509 : vector<8x1xi32>
    %cst_157 = arith.constant 1.000000e+00 : f32
    %cst_158 = arith.constant 0.000000e+00 : f32
    %511 = vector.broadcast %cst_157 : f32 to vector<8x1xf32>
    %512 = vector.broadcast %cst_158 : f32 to vector<8x1xf32>
    %513 = arith.select %510, %511, %512 : vector<8x1xi1>, vector<8x1xf32>
    %514 = vector.extract_strided_slice %3 {offsets = [4, 0], sizes = [1, 128], strides = [1, 1]} : vector<5x128xf32> to vector<1x128xf32>
    %515 = vector.broadcast %513 : vector<8x1xf32> to vector<8x128xf32>
    %516 = vector.broadcast %514 : vector<1x128xf32> to vector<8x128xf32>
    %517 = arith.mulf %515, %516 : vector<8x128xf32>
    %518 = arith.addf %508, %517 : vector<8x128xf32>
    %519 = arith.index_cast %c4_i32_134 : i32 to index
    %c0_159 = arith.constant 0 : index
    %c0_160 = arith.constant 0 : index
    %520 = vector.load %arg3[%519, %c0_159, %c0_160] : memref<8x8x1xi32, #tpu.memory_space<vmem>>, vector<1x8x1xi32>
    %521 = vector.shape_cast %520 : vector<1x8x1xi32> to vector<8x1xi32>
    %522 = vector.broadcast %461 : vector<8x1xf32> to vector<8x5xf32>
    %523 = arith.subf %459, %522 : vector<8x5xf32>
    %524 = math.exp %523 : vector<8x5xf32>
    %cst_161 = arith.constant dense<0.000000e+00> : vector<8xf32>
    %525 = vector.multi_reduction <add>, %524, %cst_161 [1] : vector<8x5xf32> to vector<8xf32>
    %526 = vector.shape_cast %525 : vector<8xf32> to vector<8x1xf32>
    %527 = math.log %526 : vector<8x1xf32>
    %528 = arith.addf %461, %527 : vector<8x1xf32>
    %529 = vector.broadcast %521 : vector<8x1xi32> to vector<8x5xi32>
    %530 = arith.cmpi eq, %7, %529 : vector<8x5xi32>
    %cst_162 = arith.constant 0.000000e+00 : f32
    %531 = vector.broadcast %cst_162 : f32 to vector<8x5xf32>
    %532 = arith.select %530, %459, %531 : vector<8x5xi1>, vector<8x5xf32>
    %cst_163 = arith.constant dense<0.000000e+00> : vector<8xf32>
    %533 = vector.multi_reduction <add>, %532, %cst_163 [1] : vector<8x5xf32> to vector<8xf32>
    %534 = vector.shape_cast %533 : vector<8xf32> to vector<8x1xf32>
    %535 = arith.subf %528, %534 : vector<8x1xf32>
    %c0_i32_164 = arith.constant 0 : i32
    %536 = vector.broadcast %c0_i32_164 : i32 to vector<8x1xi32>
    %537 = arith.cmpi ne, %521, %536 : vector<8x1xi32>
    %538 = arith.extui %537 : vector<8x1xi1> to vector<8x1xi32>
    %539 = arith.sitofp %538 : vector<8x1xi32> to vector<8x1xf32>
    %540 = arith.mulf %535, %539 : vector<8x1xf32>
    %541 = arith.addf %435, %540 : vector<8x1xf32>
    %c5_i32_165 = arith.constant 5 : i32
    %542 = arith.index_cast %c5_i32_165 : i32 to index
    %c0_166 = arith.constant 0 : index
    %c0_167 = arith.constant 0 : index
    %543 = vector.load %arg2[%542, %c0_166, %c0_167] : memref<8x8x128xf32, #tpu.memory_space<vmem>>, vector<1x8x128xf32>
    %544 = vector.shape_cast %543 : vector<1x8x128xf32> to vector<8x128xf32>
    %545 = arith.addf %544, %518 : vector<8x128xf32>
    %cst_168 = arith.constant dense<0.000000e+00> : vector<8x128xf32>
    %546 = tpu.matmul %456, %4, %cst_168 {dimension_numbers = #tpu.dot_dimension_numbers<[1], [0], [0], [1], [0, 0, 1, 1], [], []>} : vector<8x32xf32>, vector<32x128xf32>, vector<8x128xf32> -> vector<8x128xf32>
    %547 = arith.addf %545, %546 : vector<8x128xf32>
    %548 = arith.negf %547 : vector<8x128xf32>
    %549 = math.exp %548 : vector<8x128xf32>
    %cst_169 = arith.constant 1.000000e+00 : f32
    %550 = vector.broadcast %cst_169 : f32 to vector<8x128xf32>
    %551 = arith.addf %550, %549 : vector<8x128xf32>
    %552 = arith.divf %550, %551 : vector<8x128xf32>
    %553 = vector.extract_strided_slice %552 {offsets = [0, 0], sizes = [8, 32], strides = [1, 1]} : vector<8x128xf32> to vector<8x32xf32>
    %554 = vector.extract_strided_slice %552 {offsets = [0, 32], sizes = [8, 32], strides = [1, 1]} : vector<8x128xf32> to vector<8x32xf32>
    %555 = vector.extract_strided_slice %552 {offsets = [0, 96], sizes = [8, 32], strides = [1, 1]} : vector<8x128xf32> to vector<8x32xf32>
    %556 = vector.extract_strided_slice %547 {offsets = [0, 64], sizes = [8, 32], strides = [1, 1]} : vector<8x128xf32> to vector<8x32xf32>
    %557 = math.tanh %556 : vector<8x32xf32>
    %558 = arith.mulf %554, %454 : vector<8x32xf32>
    %559 = arith.mulf %553, %557 : vector<8x32xf32>
    %560 = arith.addf %558, %559 : vector<8x32xf32>
    %561 = math.tanh %560 : vector<8x32xf32>
    %562 = arith.mulf %555, %561 : vector<8x32xf32>
    %cst_170 = arith.constant dense<0.000000e+00> : vector<8x5xf32>
    %563 = tpu.matmul %562, %5, %cst_170 {dimension_numbers = #tpu.dot_dimension_numbers<[1], [0], [0], [1], [0, 0, 1, 1], [], []>} : vector<8x32xf32>, vector<32x5xf32>, vector<8x5xf32> -> vector<8x5xf32>
    %564 = vector.broadcast %6 : vector<1x5xf32> to vector<8x5xf32>
    %565 = arith.addf %563, %564 : vector<8x5xf32>
    %cst_171 = arith.constant dense<0xFF800000> : vector<8xf32>
    %566 = vector.multi_reduction <maximumf>, %565, %cst_171 [1] : vector<8x5xf32> to vector<8xf32>
    %567 = vector.shape_cast %566 : vector<8xf32> to vector<8x1xf32>
    %568 = vector.broadcast %567 : vector<8x1xf32> to vector<8x5xf32>
    %569 = arith.cmpf oeq, %565, %568 : vector<8x5xf32>
    %c5_i32_172 = arith.constant 5 : i32
    %570 = vector.broadcast %c5_i32_172 : i32 to vector<8x5xi32>
    %571 = arith.select %569, %7, %570 : vector<8x5xi1>, vector<8x5xi32>
    %cst_173 = arith.constant dense<2147483647> : vector<8xi32>
    %572 = vector.multi_reduction <minsi>, %571, %cst_173 [1] : vector<8x5xi32> to vector<8xi32>
    %573 = vector.shape_cast %572 : vector<8xi32> to vector<8x1xi32>
    %cst_174 = arith.constant 0.000000e+00 : f32
    %574 = vector.broadcast %cst_174 : f32 to vector<8x128xf32>
    %c0_i32_175 = arith.constant 0 : i32
    %575 = vector.broadcast %c0_i32_175 : i32 to vector<8x1xi32>
    %576 = arith.cmpi eq, %573, %575 : vector<8x1xi32>
    %cst_176 = arith.constant 1.000000e+00 : f32
    %cst_177 = arith.constant 0.000000e+00 : f32
    %577 = vector.broadcast %cst_176 : f32 to vector<8x1xf32>
    %578 = vector.broadcast %cst_177 : f32 to vector<8x1xf32>
    %579 = arith.select %576, %577, %578 : vector<8x1xi1>, vector<8x1xf32>
    %580 = vector.extract_strided_slice %3 {offsets = [0, 0], sizes = [1, 128], strides = [1, 1]} : vector<5x128xf32> to vector<1x128xf32>
    %581 = vector.broadcast %579 : vector<8x1xf32> to vector<8x128xf32>
    %582 = vector.broadcast %580 : vector<1x128xf32> to vector<8x128xf32>
    %583 = arith.mulf %581, %582 : vector<8x128xf32>
    %584 = arith.addf %574, %583 : vector<8x128xf32>
    %c1_i32_178 = arith.constant 1 : i32
    %585 = vector.broadcast %c1_i32_178 : i32 to vector<8x1xi32>
    %586 = arith.cmpi eq, %573, %585 : vector<8x1xi32>
    %cst_179 = arith.constant 1.000000e+00 : f32
    %cst_180 = arith.constant 0.000000e+00 : f32
    %587 = vector.broadcast %cst_179 : f32 to vector<8x1xf32>
    %588 = vector.broadcast %cst_180 : f32 to vector<8x1xf32>
    %589 = arith.select %586, %587, %588 : vector<8x1xi1>, vector<8x1xf32>
    %590 = vector.extract_strided_slice %3 {offsets = [1, 0], sizes = [1, 128], strides = [1, 1]} : vector<5x128xf32> to vector<1x128xf32>
    %591 = vector.broadcast %589 : vector<8x1xf32> to vector<8x128xf32>
    %592 = vector.broadcast %590 : vector<1x128xf32> to vector<8x128xf32>
    %593 = arith.mulf %591, %592 : vector<8x128xf32>
    %594 = arith.addf %584, %593 : vector<8x128xf32>
    %c2_i32_181 = arith.constant 2 : i32
    %595 = vector.broadcast %c2_i32_181 : i32 to vector<8x1xi32>
    %596 = arith.cmpi eq, %573, %595 : vector<8x1xi32>
    %cst_182 = arith.constant 1.000000e+00 : f32
    %cst_183 = arith.constant 0.000000e+00 : f32
    %597 = vector.broadcast %cst_182 : f32 to vector<8x1xf32>
    %598 = vector.broadcast %cst_183 : f32 to vector<8x1xf32>
    %599 = arith.select %596, %597, %598 : vector<8x1xi1>, vector<8x1xf32>
    %600 = vector.extract_strided_slice %3 {offsets = [2, 0], sizes = [1, 128], strides = [1, 1]} : vector<5x128xf32> to vector<1x128xf32>
    %601 = vector.broadcast %599 : vector<8x1xf32> to vector<8x128xf32>
    %602 = vector.broadcast %600 : vector<1x128xf32> to vector<8x128xf32>
    %603 = arith.mulf %601, %602 : vector<8x128xf32>
    %604 = arith.addf %594, %603 : vector<8x128xf32>
    %c3_i32_184 = arith.constant 3 : i32
    %605 = vector.broadcast %c3_i32_184 : i32 to vector<8x1xi32>
    %606 = arith.cmpi eq, %573, %605 : vector<8x1xi32>
    %cst_185 = arith.constant 1.000000e+00 : f32
    %cst_186 = arith.constant 0.000000e+00 : f32
    %607 = vector.broadcast %cst_185 : f32 to vector<8x1xf32>
    %608 = vector.broadcast %cst_186 : f32 to vector<8x1xf32>
    %609 = arith.select %606, %607, %608 : vector<8x1xi1>, vector<8x1xf32>
    %610 = vector.extract_strided_slice %3 {offsets = [3, 0], sizes = [1, 128], strides = [1, 1]} : vector<5x128xf32> to vector<1x128xf32>
    %611 = vector.broadcast %609 : vector<8x1xf32> to vector<8x128xf32>
    %612 = vector.broadcast %610 : vector<1x128xf32> to vector<8x128xf32>
    %613 = arith.mulf %611, %612 : vector<8x128xf32>
    %614 = arith.addf %604, %613 : vector<8x128xf32>
    %c4_i32_187 = arith.constant 4 : i32
    %615 = vector.broadcast %c4_i32_187 : i32 to vector<8x1xi32>
    %616 = arith.cmpi eq, %573, %615 : vector<8x1xi32>
    %cst_188 = arith.constant 1.000000e+00 : f32
    %cst_189 = arith.constant 0.000000e+00 : f32
    %617 = vector.broadcast %cst_188 : f32 to vector<8x1xf32>
    %618 = vector.broadcast %cst_189 : f32 to vector<8x1xf32>
    %619 = arith.select %616, %617, %618 : vector<8x1xi1>, vector<8x1xf32>
    %620 = vector.extract_strided_slice %3 {offsets = [4, 0], sizes = [1, 128], strides = [1, 1]} : vector<5x128xf32> to vector<1x128xf32>
    %621 = vector.broadcast %619 : vector<8x1xf32> to vector<8x128xf32>
    %622 = vector.broadcast %620 : vector<1x128xf32> to vector<8x128xf32>
    %623 = arith.mulf %621, %622 : vector<8x128xf32>
    %624 = arith.addf %614, %623 : vector<8x128xf32>
    %625 = arith.index_cast %c5_i32_165 : i32 to index
    %c0_190 = arith.constant 0 : index
    %c0_191 = arith.constant 0 : index
    %626 = vector.load %arg3[%625, %c0_190, %c0_191] : memref<8x8x1xi32, #tpu.memory_space<vmem>>, vector<1x8x1xi32>
    %627 = vector.shape_cast %626 : vector<1x8x1xi32> to vector<8x1xi32>
    %628 = vector.broadcast %567 : vector<8x1xf32> to vector<8x5xf32>
    %629 = arith.subf %565, %628 : vector<8x5xf32>
    %630 = math.exp %629 : vector<8x5xf32>
    %cst_192 = arith.constant dense<0.000000e+00> : vector<8xf32>
    %631 = vector.multi_reduction <add>, %630, %cst_192 [1] : vector<8x5xf32> to vector<8xf32>
    %632 = vector.shape_cast %631 : vector<8xf32> to vector<8x1xf32>
    %633 = math.log %632 : vector<8x1xf32>
    %634 = arith.addf %567, %633 : vector<8x1xf32>
    %635 = vector.broadcast %627 : vector<8x1xi32> to vector<8x5xi32>
    %636 = arith.cmpi eq, %7, %635 : vector<8x5xi32>
    %cst_193 = arith.constant 0.000000e+00 : f32
    %637 = vector.broadcast %cst_193 : f32 to vector<8x5xf32>
    %638 = arith.select %636, %565, %637 : vector<8x5xi1>, vector<8x5xf32>
    %cst_194 = arith.constant dense<0.000000e+00> : vector<8xf32>
    %639 = vector.multi_reduction <add>, %638, %cst_194 [1] : vector<8x5xf32> to vector<8xf32>
    %640 = vector.shape_cast %639 : vector<8xf32> to vector<8x1xf32>
    %641 = arith.subf %634, %640 : vector<8x1xf32>
    %c0_i32_195 = arith.constant 0 : i32
    %642 = vector.broadcast %c0_i32_195 : i32 to vector<8x1xi32>
    %643 = arith.cmpi ne, %627, %642 : vector<8x1xi32>
    %644 = arith.extui %643 : vector<8x1xi1> to vector<8x1xi32>
    %645 = arith.sitofp %644 : vector<8x1xi32> to vector<8x1xf32>
    %646 = arith.mulf %641, %645 : vector<8x1xf32>
    %647 = arith.addf %541, %646 : vector<8x1xf32>
    %c6_i32 = arith.constant 6 : i32
    %648 = arith.index_cast %c6_i32 : i32 to index
    %c0_196 = arith.constant 0 : index
    %c0_197 = arith.constant 0 : index
    %649 = vector.load %arg2[%648, %c0_196, %c0_197] : memref<8x8x128xf32, #tpu.memory_space<vmem>>, vector<1x8x128xf32>
    %650 = vector.shape_cast %649 : vector<1x8x128xf32> to vector<8x128xf32>
    %651 = arith.addf %650, %624 : vector<8x128xf32>
    %cst_198 = arith.constant dense<0.000000e+00> : vector<8x128xf32>
    %652 = tpu.matmul %562, %4, %cst_198 {dimension_numbers = #tpu.dot_dimension_numbers<[1], [0], [0], [1], [0, 0, 1, 1], [], []>} : vector<8x32xf32>, vector<32x128xf32>, vector<8x128xf32> -> vector<8x128xf32>
    %653 = arith.addf %651, %652 : vector<8x128xf32>
    %654 = arith.negf %653 : vector<8x128xf32>
    %655 = math.exp %654 : vector<8x128xf32>
    %cst_199 = arith.constant 1.000000e+00 : f32
    %656 = vector.broadcast %cst_199 : f32 to vector<8x128xf32>
    %657 = arith.addf %656, %655 : vector<8x128xf32>
    %658 = arith.divf %656, %657 : vector<8x128xf32>
    %659 = vector.extract_strided_slice %658 {offsets = [0, 0], sizes = [8, 32], strides = [1, 1]} : vector<8x128xf32> to vector<8x32xf32>
    %660 = vector.extract_strided_slice %658 {offsets = [0, 32], sizes = [8, 32], strides = [1, 1]} : vector<8x128xf32> to vector<8x32xf32>
    %661 = vector.extract_strided_slice %658 {offsets = [0, 96], sizes = [8, 32], strides = [1, 1]} : vector<8x128xf32> to vector<8x32xf32>
    %662 = vector.extract_strided_slice %653 {offsets = [0, 64], sizes = [8, 32], strides = [1, 1]} : vector<8x128xf32> to vector<8x32xf32>
    %663 = math.tanh %662 : vector<8x32xf32>
    %664 = arith.mulf %660, %560 : vector<8x32xf32>
    %665 = arith.mulf %659, %663 : vector<8x32xf32>
    %666 = arith.addf %664, %665 : vector<8x32xf32>
    %667 = math.tanh %666 : vector<8x32xf32>
    %668 = arith.mulf %661, %667 : vector<8x32xf32>
    %cst_200 = arith.constant dense<0.000000e+00> : vector<8x5xf32>
    %669 = tpu.matmul %668, %5, %cst_200 {dimension_numbers = #tpu.dot_dimension_numbers<[1], [0], [0], [1], [0, 0, 1, 1], [], []>} : vector<8x32xf32>, vector<32x5xf32>, vector<8x5xf32> -> vector<8x5xf32>
    %670 = vector.broadcast %6 : vector<1x5xf32> to vector<8x5xf32>
    %671 = arith.addf %669, %670 : vector<8x5xf32>
    %cst_201 = arith.constant dense<0xFF800000> : vector<8xf32>
    %672 = vector.multi_reduction <maximumf>, %671, %cst_201 [1] : vector<8x5xf32> to vector<8xf32>
    %673 = vector.shape_cast %672 : vector<8xf32> to vector<8x1xf32>
    %674 = vector.broadcast %673 : vector<8x1xf32> to vector<8x5xf32>
    %675 = arith.cmpf oeq, %671, %674 : vector<8x5xf32>
    %c5_i32_202 = arith.constant 5 : i32
    %676 = vector.broadcast %c5_i32_202 : i32 to vector<8x5xi32>
    %677 = arith.select %675, %7, %676 : vector<8x5xi1>, vector<8x5xi32>
    %cst_203 = arith.constant dense<2147483647> : vector<8xi32>
    %678 = vector.multi_reduction <minsi>, %677, %cst_203 [1] : vector<8x5xi32> to vector<8xi32>
    %679 = vector.shape_cast %678 : vector<8xi32> to vector<8x1xi32>
    %cst_204 = arith.constant 0.000000e+00 : f32
    %680 = vector.broadcast %cst_204 : f32 to vector<8x128xf32>
    %c0_i32_205 = arith.constant 0 : i32
    %681 = vector.broadcast %c0_i32_205 : i32 to vector<8x1xi32>
    %682 = arith.cmpi eq, %679, %681 : vector<8x1xi32>
    %cst_206 = arith.constant 1.000000e+00 : f32
    %cst_207 = arith.constant 0.000000e+00 : f32
    %683 = vector.broadcast %cst_206 : f32 to vector<8x1xf32>
    %684 = vector.broadcast %cst_207 : f32 to vector<8x1xf32>
    %685 = arith.select %682, %683, %684 : vector<8x1xi1>, vector<8x1xf32>
    %686 = vector.extract_strided_slice %3 {offsets = [0, 0], sizes = [1, 128], strides = [1, 1]} : vector<5x128xf32> to vector<1x128xf32>
    %687 = vector.broadcast %685 : vector<8x1xf32> to vector<8x128xf32>
    %688 = vector.broadcast %686 : vector<1x128xf32> to vector<8x128xf32>
    %689 = arith.mulf %687, %688 : vector<8x128xf32>
    %690 = arith.addf %680, %689 : vector<8x128xf32>
    %c1_i32_208 = arith.constant 1 : i32
    %691 = vector.broadcast %c1_i32_208 : i32 to vector<8x1xi32>
    %692 = arith.cmpi eq, %679, %691 : vector<8x1xi32>
    %cst_209 = arith.constant 1.000000e+00 : f32
    %cst_210 = arith.constant 0.000000e+00 : f32
    %693 = vector.broadcast %cst_209 : f32 to vector<8x1xf32>
    %694 = vector.broadcast %cst_210 : f32 to vector<8x1xf32>
    %695 = arith.select %692, %693, %694 : vector<8x1xi1>, vector<8x1xf32>
    %696 = vector.extract_strided_slice %3 {offsets = [1, 0], sizes = [1, 128], strides = [1, 1]} : vector<5x128xf32> to vector<1x128xf32>
    %697 = vector.broadcast %695 : vector<8x1xf32> to vector<8x128xf32>
    %698 = vector.broadcast %696 : vector<1x128xf32> to vector<8x128xf32>
    %699 = arith.mulf %697, %698 : vector<8x128xf32>
    %700 = arith.addf %690, %699 : vector<8x128xf32>
    %c2_i32_211 = arith.constant 2 : i32
    %701 = vector.broadcast %c2_i32_211 : i32 to vector<8x1xi32>
    %702 = arith.cmpi eq, %679, %701 : vector<8x1xi32>
    %cst_212 = arith.constant 1.000000e+00 : f32
    %cst_213 = arith.constant 0.000000e+00 : f32
    %703 = vector.broadcast %cst_212 : f32 to vector<8x1xf32>
    %704 = vector.broadcast %cst_213 : f32 to vector<8x1xf32>
    %705 = arith.select %702, %703, %704 : vector<8x1xi1>, vector<8x1xf32>
    %706 = vector.extract_strided_slice %3 {offsets = [2, 0], sizes = [1, 128], strides = [1, 1]} : vector<5x128xf32> to vector<1x128xf32>
    %707 = vector.broadcast %705 : vector<8x1xf32> to vector<8x128xf32>
    %708 = vector.broadcast %706 : vector<1x128xf32> to vector<8x128xf32>
    %709 = arith.mulf %707, %708 : vector<8x128xf32>
    %710 = arith.addf %700, %709 : vector<8x128xf32>
    %c3_i32_214 = arith.constant 3 : i32
    %711 = vector.broadcast %c3_i32_214 : i32 to vector<8x1xi32>
    %712 = arith.cmpi eq, %679, %711 : vector<8x1xi32>
    %cst_215 = arith.constant 1.000000e+00 : f32
    %cst_216 = arith.constant 0.000000e+00 : f32
    %713 = vector.broadcast %cst_215 : f32 to vector<8x1xf32>
    %714 = vector.broadcast %cst_216 : f32 to vector<8x1xf32>
    %715 = arith.select %712, %713, %714 : vector<8x1xi1>, vector<8x1xf32>
    %716 = vector.extract_strided_slice %3 {offsets = [3, 0], sizes = [1, 128], strides = [1, 1]} : vector<5x128xf32> to vector<1x128xf32>
    %717 = vector.broadcast %715 : vector<8x1xf32> to vector<8x128xf32>
    %718 = vector.broadcast %716 : vector<1x128xf32> to vector<8x128xf32>
    %719 = arith.mulf %717, %718 : vector<8x128xf32>
    %720 = arith.addf %710, %719 : vector<8x128xf32>
    %c4_i32_217 = arith.constant 4 : i32
    %721 = vector.broadcast %c4_i32_217 : i32 to vector<8x1xi32>
    %722 = arith.cmpi eq, %679, %721 : vector<8x1xi32>
    %cst_218 = arith.constant 1.000000e+00 : f32
    %cst_219 = arith.constant 0.000000e+00 : f32
    %723 = vector.broadcast %cst_218 : f32 to vector<8x1xf32>
    %724 = vector.broadcast %cst_219 : f32 to vector<8x1xf32>
    %725 = arith.select %722, %723, %724 : vector<8x1xi1>, vector<8x1xf32>
    %726 = vector.extract_strided_slice %3 {offsets = [4, 0], sizes = [1, 128], strides = [1, 1]} : vector<5x128xf32> to vector<1x128xf32>
    %727 = vector.broadcast %725 : vector<8x1xf32> to vector<8x128xf32>
    %728 = vector.broadcast %726 : vector<1x128xf32> to vector<8x128xf32>
    %729 = arith.mulf %727, %728 : vector<8x128xf32>
    %730 = arith.addf %720, %729 : vector<8x128xf32>
    %731 = arith.index_cast %c6_i32 : i32 to index
    %c0_220 = arith.constant 0 : index
    %c0_221 = arith.constant 0 : index
    %732 = vector.load %arg3[%731, %c0_220, %c0_221] : memref<8x8x1xi32, #tpu.memory_space<vmem>>, vector<1x8x1xi32>
    %733 = vector.shape_cast %732 : vector<1x8x1xi32> to vector<8x1xi32>
    %734 = vector.broadcast %673 : vector<8x1xf32> to vector<8x5xf32>
    %735 = arith.subf %671, %734 : vector<8x5xf32>
    %736 = math.exp %735 : vector<8x5xf32>
    %cst_222 = arith.constant dense<0.000000e+00> : vector<8xf32>
    %737 = vector.multi_reduction <add>, %736, %cst_222 [1] : vector<8x5xf32> to vector<8xf32>
    %738 = vector.shape_cast %737 : vector<8xf32> to vector<8x1xf32>
    %739 = math.log %738 : vector<8x1xf32>
    %740 = arith.addf %673, %739 : vector<8x1xf32>
    %741 = vector.broadcast %733 : vector<8x1xi32> to vector<8x5xi32>
    %742 = arith.cmpi eq, %7, %741 : vector<8x5xi32>
    %cst_223 = arith.constant 0.000000e+00 : f32
    %743 = vector.broadcast %cst_223 : f32 to vector<8x5xf32>
    %744 = arith.select %742, %671, %743 : vector<8x5xi1>, vector<8x5xf32>
    %cst_224 = arith.constant dense<0.000000e+00> : vector<8xf32>
    %745 = vector.multi_reduction <add>, %744, %cst_224 [1] : vector<8x5xf32> to vector<8xf32>
    %746 = vector.shape_cast %745 : vector<8xf32> to vector<8x1xf32>
    %747 = arith.subf %740, %746 : vector<8x1xf32>
    %c0_i32_225 = arith.constant 0 : i32
    %748 = vector.broadcast %c0_i32_225 : i32 to vector<8x1xi32>
    %749 = arith.cmpi ne, %733, %748 : vector<8x1xi32>
    %750 = arith.extui %749 : vector<8x1xi1> to vector<8x1xi32>
    %751 = arith.sitofp %750 : vector<8x1xi32> to vector<8x1xf32>
    %752 = arith.mulf %747, %751 : vector<8x1xf32>
    %753 = arith.addf %647, %752 : vector<8x1xf32>
    %c7_i32 = arith.constant 7 : i32
    %754 = arith.index_cast %c7_i32 : i32 to index
    %c0_226 = arith.constant 0 : index
    %c0_227 = arith.constant 0 : index
    %755 = vector.load %arg2[%754, %c0_226, %c0_227] : memref<8x8x128xf32, #tpu.memory_space<vmem>>, vector<1x8x128xf32>
    %756 = vector.shape_cast %755 : vector<1x8x128xf32> to vector<8x128xf32>
    %757 = arith.addf %756, %730 : vector<8x128xf32>
    %cst_228 = arith.constant dense<0.000000e+00> : vector<8x128xf32>
    %758 = tpu.matmul %668, %4, %cst_228 {dimension_numbers = #tpu.dot_dimension_numbers<[1], [0], [0], [1], [0, 0, 1, 1], [], []>} : vector<8x32xf32>, vector<32x128xf32>, vector<8x128xf32> -> vector<8x128xf32>
    %759 = arith.addf %757, %758 : vector<8x128xf32>
    %760 = arith.negf %759 : vector<8x128xf32>
    %761 = math.exp %760 : vector<8x128xf32>
    %cst_229 = arith.constant 1.000000e+00 : f32
    %762 = vector.broadcast %cst_229 : f32 to vector<8x128xf32>
    %763 = arith.addf %762, %761 : vector<8x128xf32>
    %764 = arith.divf %762, %763 : vector<8x128xf32>
    %765 = vector.extract_strided_slice %764 {offsets = [0, 0], sizes = [8, 32], strides = [1, 1]} : vector<8x128xf32> to vector<8x32xf32>
    %766 = vector.extract_strided_slice %764 {offsets = [0, 32], sizes = [8, 32], strides = [1, 1]} : vector<8x128xf32> to vector<8x32xf32>
    %767 = vector.extract_strided_slice %764 {offsets = [0, 96], sizes = [8, 32], strides = [1, 1]} : vector<8x128xf32> to vector<8x32xf32>
    %768 = vector.extract_strided_slice %759 {offsets = [0, 64], sizes = [8, 32], strides = [1, 1]} : vector<8x128xf32> to vector<8x32xf32>
    %769 = math.tanh %768 : vector<8x32xf32>
    %770 = arith.mulf %766, %666 : vector<8x32xf32>
    %771 = arith.mulf %765, %769 : vector<8x32xf32>
    %772 = arith.addf %770, %771 : vector<8x32xf32>
    %773 = math.tanh %772 : vector<8x32xf32>
    %774 = arith.mulf %767, %773 : vector<8x32xf32>
    %cst_230 = arith.constant dense<0.000000e+00> : vector<8x5xf32>
    %775 = tpu.matmul %774, %5, %cst_230 {dimension_numbers = #tpu.dot_dimension_numbers<[1], [0], [0], [1], [0, 0, 1, 1], [], []>} : vector<8x32xf32>, vector<32x5xf32>, vector<8x5xf32> -> vector<8x5xf32>
    %776 = vector.broadcast %6 : vector<1x5xf32> to vector<8x5xf32>
    %777 = arith.addf %775, %776 : vector<8x5xf32>
    %cst_231 = arith.constant dense<0xFF800000> : vector<8xf32>
    %778 = vector.multi_reduction <maximumf>, %777, %cst_231 [1] : vector<8x5xf32> to vector<8xf32>
    %779 = vector.shape_cast %778 : vector<8xf32> to vector<8x1xf32>
    %780 = vector.broadcast %779 : vector<8x1xf32> to vector<8x5xf32>
    %781 = arith.cmpf oeq, %777, %780 : vector<8x5xf32>
    %c5_i32_232 = arith.constant 5 : i32
    %782 = vector.broadcast %c5_i32_232 : i32 to vector<8x5xi32>
    %783 = arith.select %781, %7, %782 : vector<8x5xi1>, vector<8x5xi32>
    %cst_233 = arith.constant dense<2147483647> : vector<8xi32>
    %784 = vector.multi_reduction <minsi>, %783, %cst_233 [1] : vector<8x5xi32> to vector<8xi32>
    %785 = vector.shape_cast %784 : vector<8xi32> to vector<8x1xi32>
    %cst_234 = arith.constant 0.000000e+00 : f32
    %786 = vector.broadcast %cst_234 : f32 to vector<8x128xf32>
    %c0_i32_235 = arith.constant 0 : i32
    %787 = vector.broadcast %c0_i32_235 : i32 to vector<8x1xi32>
    %788 = arith.cmpi eq, %785, %787 : vector<8x1xi32>
    %cst_236 = arith.constant 1.000000e+00 : f32
    %cst_237 = arith.constant 0.000000e+00 : f32
    %789 = vector.broadcast %cst_236 : f32 to vector<8x1xf32>
    %790 = vector.broadcast %cst_237 : f32 to vector<8x1xf32>
    %791 = arith.select %788, %789, %790 : vector<8x1xi1>, vector<8x1xf32>
    %792 = vector.extract_strided_slice %3 {offsets = [0, 0], sizes = [1, 128], strides = [1, 1]} : vector<5x128xf32> to vector<1x128xf32>
    %793 = vector.broadcast %791 : vector<8x1xf32> to vector<8x128xf32>
    %794 = vector.broadcast %792 : vector<1x128xf32> to vector<8x128xf32>
    %795 = arith.mulf %793, %794 : vector<8x128xf32>
    %796 = arith.addf %786, %795 : vector<8x128xf32>
    %c1_i32_238 = arith.constant 1 : i32
    %797 = vector.broadcast %c1_i32_238 : i32 to vector<8x1xi32>
    %798 = arith.cmpi eq, %785, %797 : vector<8x1xi32>
    %cst_239 = arith.constant 1.000000e+00 : f32
    %cst_240 = arith.constant 0.000000e+00 : f32
    %799 = vector.broadcast %cst_239 : f32 to vector<8x1xf32>
    %800 = vector.broadcast %cst_240 : f32 to vector<8x1xf32>
    %801 = arith.select %798, %799, %800 : vector<8x1xi1>, vector<8x1xf32>
    %802 = vector.extract_strided_slice %3 {offsets = [1, 0], sizes = [1, 128], strides = [1, 1]} : vector<5x128xf32> to vector<1x128xf32>
    %803 = vector.broadcast %801 : vector<8x1xf32> to vector<8x128xf32>
    %804 = vector.broadcast %802 : vector<1x128xf32> to vector<8x128xf32>
    %805 = arith.mulf %803, %804 : vector<8x128xf32>
    %806 = arith.addf %796, %805 : vector<8x128xf32>
    %c2_i32_241 = arith.constant 2 : i32
    %807 = vector.broadcast %c2_i32_241 : i32 to vector<8x1xi32>
    %808 = arith.cmpi eq, %785, %807 : vector<8x1xi32>
    %cst_242 = arith.constant 1.000000e+00 : f32
    %cst_243 = arith.constant 0.000000e+00 : f32
    %809 = vector.broadcast %cst_242 : f32 to vector<8x1xf32>
    %810 = vector.broadcast %cst_243 : f32 to vector<8x1xf32>
    %811 = arith.select %808, %809, %810 : vector<8x1xi1>, vector<8x1xf32>
    %812 = vector.extract_strided_slice %3 {offsets = [2, 0], sizes = [1, 128], strides = [1, 1]} : vector<5x128xf32> to vector<1x128xf32>
    %813 = vector.broadcast %811 : vector<8x1xf32> to vector<8x128xf32>
    %814 = vector.broadcast %812 : vector<1x128xf32> to vector<8x128xf32>
    %815 = arith.mulf %813, %814 : vector<8x128xf32>
    %816 = arith.addf %806, %815 : vector<8x128xf32>
    %c3_i32_244 = arith.constant 3 : i32
    %817 = vector.broadcast %c3_i32_244 : i32 to vector<8x1xi32>
    %818 = arith.cmpi eq, %785, %817 : vector<8x1xi32>
    %cst_245 = arith.constant 1.000000e+00 : f32
    %cst_246 = arith.constant 0.000000e+00 : f32
    %819 = vector.broadcast %cst_245 : f32 to vector<8x1xf32>
    %820 = vector.broadcast %cst_246 : f32 to vector<8x1xf32>
    %821 = arith.select %818, %819, %820 : vector<8x1xi1>, vector<8x1xf32>
    %822 = vector.extract_strided_slice %3 {offsets = [3, 0], sizes = [1, 128], strides = [1, 1]} : vector<5x128xf32> to vector<1x128xf32>
    %823 = vector.broadcast %821 : vector<8x1xf32> to vector<8x128xf32>
    %824 = vector.broadcast %822 : vector<1x128xf32> to vector<8x128xf32>
    %825 = arith.mulf %823, %824 : vector<8x128xf32>
    %826 = arith.addf %816, %825 : vector<8x128xf32>
    %c4_i32_247 = arith.constant 4 : i32
    %827 = vector.broadcast %c4_i32_247 : i32 to vector<8x1xi32>
    %828 = arith.cmpi eq, %785, %827 : vector<8x1xi32>
    %cst_248 = arith.constant 1.000000e+00 : f32
    %cst_249 = arith.constant 0.000000e+00 : f32
    %829 = vector.broadcast %cst_248 : f32 to vector<8x1xf32>
    %830 = vector.broadcast %cst_249 : f32 to vector<8x1xf32>
    %831 = arith.select %828, %829, %830 : vector<8x1xi1>, vector<8x1xf32>
    %832 = vector.extract_strided_slice %3 {offsets = [4, 0], sizes = [1, 128], strides = [1, 1]} : vector<5x128xf32> to vector<1x128xf32>
    %833 = vector.broadcast %831 : vector<8x1xf32> to vector<8x128xf32>
    %834 = vector.broadcast %832 : vector<1x128xf32> to vector<8x128xf32>
    %835 = arith.mulf %833, %834 : vector<8x128xf32>
    %836 = arith.addf %826, %835 : vector<8x128xf32>
    %837 = arith.index_cast %c7_i32 : i32 to index
    %c0_250 = arith.constant 0 : index
    %c0_251 = arith.constant 0 : index
    %838 = vector.load %arg3[%837, %c0_250, %c0_251] : memref<8x8x1xi32, #tpu.memory_space<vmem>>, vector<1x8x1xi32>
    %839 = vector.shape_cast %838 : vector<1x8x1xi32> to vector<8x1xi32>
    %840 = vector.broadcast %779 : vector<8x1xf32> to vector<8x5xf32>
    %841 = arith.subf %777, %840 : vector<8x5xf32>
    %842 = math.exp %841 : vector<8x5xf32>
    %cst_252 = arith.constant dense<0.000000e+00> : vector<8xf32>
    %843 = vector.multi_reduction <add>, %842, %cst_252 [1] : vector<8x5xf32> to vector<8xf32>
    %844 = vector.shape_cast %843 : vector<8xf32> to vector<8x1xf32>
    %845 = math.log %844 : vector<8x1xf32>
    %846 = arith.addf %779, %845 : vector<8x1xf32>
    %847 = vector.broadcast %839 : vector<8x1xi32> to vector<8x5xi32>
    %848 = arith.cmpi eq, %7, %847 : vector<8x5xi32>
    %cst_253 = arith.constant 0.000000e+00 : f32
    %849 = vector.broadcast %cst_253 : f32 to vector<8x5xf32>
    %850 = arith.select %848, %777, %849 : vector<8x5xi1>, vector<8x5xf32>
    %cst_254 = arith.constant dense<0.000000e+00> : vector<8xf32>
    %851 = vector.multi_reduction <add>, %850, %cst_254 [1] : vector<8x5xf32> to vector<8xf32>
    %852 = vector.shape_cast %851 : vector<8xf32> to vector<8x1xf32>
    %853 = arith.subf %846, %852 : vector<8x1xf32>
    %c0_i32_255 = arith.constant 0 : i32
    %854 = vector.broadcast %c0_i32_255 : i32 to vector<8x1xi32>
    %855 = arith.cmpi ne, %839, %854 : vector<8x1xi32>
    %856 = arith.extui %855 : vector<8x1xi1> to vector<8x1xi32>
    %857 = arith.sitofp %856 : vector<8x1xi32> to vector<8x1xf32>
    %858 = arith.mulf %853, %857 : vector<8x1xf32>
    %859 = arith.addf %753, %858 : vector<8x1xf32>
    %c8_i32 = arith.constant 8 : i32
    %c0_256 = arith.constant 0 : index
    %c0_257 = arith.constant 0 : index
    %860 = vector.load %arg9[%c0_256, %c0_257] : memref<8x32xf32, #tpu.memory_space<vmem>>, vector<8x32xf32>
    tpu.vector_store %arg9[%c0_256, %c0_257], %774 {strides = array<i32>} : memref<8x32xf32, #tpu.memory_space<vmem>>, vector<8x32xf32>,
    %c0_258 = arith.constant 0 : index
    %c0_259 = arith.constant 0 : index
    %861 = vector.load %arg10[%c0_258, %c0_259] : memref<8x32xf32, #tpu.memory_space<vmem>>, vector<8x32xf32>
    tpu.vector_store %arg10[%c0_258, %c0_259], %772 {strides = array<i32>} : memref<8x32xf32, #tpu.memory_space<vmem>>, vector<8x32xf32>,
    %c0_260 = arith.constant 0 : index
    %c0_261 = arith.constant 0 : index
    %862 = vector.load %arg11[%c0_260, %c0_261] : memref<8x128xf32, #tpu.memory_space<vmem>>, vector<8x128xf32>
    tpu.vector_store %arg11[%c0_260, %c0_261], %836 {strides = array<i32>} : memref<8x128xf32, #tpu.memory_space<vmem>>, vector<8x128xf32>,
    %c0_262 = arith.constant 0 : index
    %c0_263 = arith.constant 0 : index
    %863 = vector.load %arg12[%c0_262, %c0_263] : memref<8x1xf32, #tpu.memory_space<vmem>>, vector<8x1xf32>
    tpu.vector_store %arg12[%c0_262, %c0_263], %859 {strides = array<i32>} : memref<8x1xf32, #tpu.memory_space<vmem>>, vector<8x1xf32>,
    %c0_i32_264 = arith.constant 0 : i32
    %864 = arith.cmpi eq, %arg1, %c0_i32_264 : i32
    %865 = arith.extui %864 : i1 to i32
    %c0_i32_265 = arith.constant 0 : i32
    %866 = arith.cmpi ne, %865, %c0_i32_265 : i32
    scf.if %866 {
      %867 = vector.shape_cast %859 : vector<8x1xf32> to vector<8x1xf32>
      %868 = vector.broadcast %867 : vector<8x1xf32> to vector<8x128xf32>
      %c0_266 = arith.constant 0 : index
      %c0_267 = arith.constant 0 : index
      %869 = vector.load %arg8[%c0_266, %c0_267] : memref<8x128xf32, #tpu.memory_space<vmem>>, vector<8x128xf32>
      tpu.vector_store %arg8[%c0_266, %c0_267], %868 {strides = array<i32>} : memref<8x128xf32, #tpu.memory_space<vmem>>, vector<8x128xf32>,
    } else {
    }
    return
  }
  func.func @transform_0(%arg0: i32, %arg1: i32) -> (i32, i32, i32) {
    %c0_i32 = arith.constant 0 : i32
    %c0_i32_0 = arith.constant 0 : i32
    return %arg1, %arg0, %c0_i32 : i32, i32, i32
  }
  func.func @transform_1(%arg0: i32, %arg1: i32) -> (i32, i32, i32) {
    %c0_i32 = arith.constant 0 : i32
    %c0_i32_0 = arith.constant 0 : i32
    return %arg1, %arg0, %c0_i32 : i32, i32, i32
  }
  func.func @transform_2(%arg0: i32, %arg1: i32) -> (i32, i32) {
    %c0_i32 = arith.constant 0 : i32
    %c0_i32_0 = arith.constant 0 : i32
    %c0_i32_1 = arith.constant 0 : i32
    return %c0_i32, %c0_i32_0 : i32, i32
  }
  func.func @transform_3(%arg0: i32, %arg1: i32) -> (i32, i32) {
    %c0_i32 = arith.constant 0 : i32
    %c0_i32_0 = arith.constant 0 : i32
    %c0_i32_1 = arith.constant 0 : i32
    return %c0_i32, %c0_i32_0 : i32, i32
  }
  func.func @transform_4(%arg0: i32, %arg1: i32) -> (i32, i32) {
    %c0_i32 = arith.constant 0 : i32
    %c0_i32_0 = arith.constant 0 : i32
    %c0_i32_1 = arith.constant 0 : i32
    return %c0_i32, %c0_i32_0 : i32, i32
  }
  func.func @transform_5(%arg0: i32, %arg1: i32) -> (i32, i32) {
    %c0_i32 = arith.constant 0 : i32
    %c0_i32_0 = arith.constant 0 : i32
    %c0_i32_1 = arith.constant 0 : i32
    return %c0_i32, %c0_i32_0 : i32, i32
  }
  func.func @transform_6(%arg0: i32, %arg1: i32) -> (i32, i32) {
    %c0_i32 = arith.constant 0 : i32
    %c0_i32_0 = arith.constant 0 : i32
    return %arg0, %c0_i32 : i32, i32
  }
}

</mosaic_0001>

<bundles_post_ra>
// kernel: cnn_cnn_lstm_forward.3
= control target key start
LH: loop header
LB: loop body
LE: loop exit
PB: predicated region body
PF: predicated region fallthrough
CT: control target
= control target key end

     0   :  { %vm48_vm0 = vcmask 130048   ;;  %s876_s1 = inlined_call_operand.vmem [shape: f32[16,384], index: 1, kind: input, shape index: {}]   ;;  %s877_s0 = inlined_call_operand.vmem [shape: f32[14,16,16], index: 0, kind: input, shape index: {}]   ;;  %s878_s2 = inlined_call_operand.vmem [shape: f32[1,128], index: 2, kind: input, shape index: {}]   ;;  %s879_s3 = inlined_call_operand.vmem [shape: f32[16,128], index: 3, kind: output, shape index: {}]  }
   0x1   :  { %v45_v0 = vld [vmem:[%s876_s1 + $0x18] sm:$0xff]  ;;  %v46_v1 = vld [vmem:[%s876_s1 + $0x20] sm:$0xff]  ;;  %v47_v2 = vld [vmem:[%s876_s1 + $0x28] sm:$0xff] }
   0x2   :  { %147 = vmatpush.msra.mxu0 %v45_v0  ;;  %592 = vmatpush.msra.mxu3 %v45_v0  ;;  %v42_v3 = vld [vmem:[%s876_s1] sm:$0xff]  ;;  %v43_v4 = vld [vmem:[%s876_s1 + $0x8] sm:$0xff]  ;;  %v44_v5 = vld [vmem:[%s876_s1 + $0x10] sm:$0xff] }
   0x3   :  { %244 = vmatpush.msra.mxu1 %v46_v1  ;;  %341 = vmatpush.msra.mxu2 %v47_v2  ;;  %v14_v6 = vld [vmem:[%s877_s0] sm:$0xff]  ;;  %v643_v7 = vld [vmem:[%s877_s0 + $0xa8] sm:$0xff]  ;;  %v656_v9 = vld [vmem:[%s877_s0 + $0xb0] sm:$0xff] }
   0x4   :  { %148 = vmatpush.msra.mxu0 %v42_v3  ;;  %593 = vmatpush.msra.mxu3 %v42_v3  ;;  %v15_v8 = vld [vmem:[%s877_s0 + $0x8] sm:$0xff]  ;;  %v16_v10 = vld [vmem:[%s877_s0 + $0x10] sm:$0xff]  ;;  %v669_v11 = vld [vmem:[%s877_s0 + $0xb8] sm:$0xff] }
   0x5   :  { %245 = vmatpush.msra.mxu1 %v43_v4  ;;  %342 = vmatpush.msra.mxu2 %v44_v5  ;;  %v17_v12 = vld [vmem:[%s877_s0 + $0x18] sm:$0xff]  ;;  %v682_v13 = vld [vmem:[%s877_s0 + $0xc0] sm:$0xff]  ;;  %v695_v15 = vld [vmem:[%s877_s0 + $0xc8] sm:$0xff] }
   0x6   :  { %508 = vmatmul.msk.f32.vlgmr.msra.gmra.mxu0 %vm48_vm0, %v14_v6  ;;  %529 = vmatmul.msk.f32.vlgmr.msra.gmra.mxu3 %vm48_vm0, %v643_v7  ;;  %v18_v14 = vld [vmem:[%s877_s0 + $0x20] sm:$0xff]  ;;  %v19_v16 = vld [vmem:[%s877_s0 + $0x28] sm:$0xff]  ;;  %v708_v17 = vld [vmem:[%s877_s0 + $0xd0] sm:$0xff] }
   0x7   :  { %536 = vmatmul.msk.f32.vlgmr.msra.gmra.mxu1 %vm48_vm0, %v14_v6  ;;  %564 = vmatmul.msk.f32.vlgmr.msra.gmra.mxu2 %vm48_vm0, %v14_v6  ;;  %v20_v18 = vld [vmem:[%s877_s0 + $0x30] sm:$0xff]  ;;  %v721_v19 = vld [vmem:[%s877_s0 + $0xd8] sm:$0xff]  ;;  %v22_v21 = vld [vmem:[%s877_s0 + $0x40] sm:$0xff] }
   0x8   :  { %594 = vmatpush.msrb.mxu3 %v46_v1  ;;  %v21_v20 = vld [vmem:[%s877_s0 + $0x38] sm:$0xff]  ;;  %v23_v22 = vld [vmem:[%s877_s0 + $0x48] sm:$0xff]  ;;  %v24_v23 = vld [vmem:[%s877_s0 + $0x50] sm:$0xff] }
   0x9   :  { %v25_v24 = vld [vmem:[%s877_s0 + $0x58] sm:$0xff]  ;;  %v26_v25 = vld [vmem:[%s877_s0 + $0x60] sm:$0xff]  ;;  %v27_v26 = vld [vmem:[%s877_s0 + $0x68] sm:$0xff] }
   0xa   :  { %595 = vmatpush.msrb.mxu3 %v43_v4  ;;  %v28_v27 = vld [vmem:[%s877_s0 + $0x70] sm:$0xff]  ;;  %v29_v28 = vld [vmem:[%s877_s0 + $0x78] sm:$0xff]  ;;  %v30_v30 = vld [vmem:[%s877_s0 + $0x80] sm:$0xff] }
   0xb   :  { %v31_v35 = vld [vmem:[%s877_s0 + $0x88] sm:$0xff]  ;;  %v32_v40 = vld [vmem:[%s877_s0 + $0x90] sm:$0xff]  ;;  %v33_v46 = vld [vmem:[%s877_s0 + $0x98] sm:$0xff] }
   0xc   :  { %596 = vmatpush.msra.mxu3 %v47_v2  ;;  %v34_v52 = vld [vmem:[%s877_s0 + $0xa0] sm:$0xff] }
   0xe   :  { %597 = vmatpush.msra.mxu3 %v44_v5  ;;  %509 = vmatmul.msk.f32.gmra.mxu0 %vm48_vm0, %v15_v8 }
   0xf   :  { %530 = vmatmul.msk.f32.gmra.mxu3 %vm48_vm0, %v656_v9  ;;  %537 = vmatmul.msk.f32.gmra.mxu1 %vm48_vm0, %v15_v8 }
  0x10   :  { %565 = vmatmul.msk.f32.gmra.mxu2 %vm48_vm0, %v15_v8 }
  0x16   :  { %510 = vmatmul.msk.f32.gmra.mxu0 %vm48_vm0, %v16_v10 }
  0x17   :  { %531 = vmatmul.msk.f32.gmra.mxu3 %vm48_vm0, %v669_v11  ;;  %538 = vmatmul.msk.f32.gmra.mxu1 %vm48_vm0, %v16_v10 }
  0x18   :  { %566 = vmatmul.msk.f32.gmra.mxu2 %vm48_vm0, %v16_v10 }
  0x1e   :  { %511 = vmatmul.msk.f32.gmra.mxu0 %vm48_vm0, %v17_v12 }
  0x1f   :  { %532 = vmatmul.msk.f32.gmra.mxu3 %vm48_vm0, %v682_v13  ;;  %539 = vmatmul.msk.f32.gmra.mxu1 %vm48_vm0, %v17_v12 }
  0x20   :  { %567 = vmatmul.msk.f32.gmra.mxu2 %vm48_vm0, %v17_v12 }
  0x26   :  { %512 = vmatmul.msk.f32.gmra.mxu0 %vm48_vm0, %v18_v14 }
  0x27   :  { %533 = vmatmul.msk.f32.gmra.mxu3 %vm48_vm0, %v695_v15  ;;  %540 = vmatmul.msk.f32.gmra.mxu1 %vm48_vm0, %v18_v14 }
  0x28   :  { %568 = vmatmul.msk.f32.gmra.mxu2 %vm48_vm0, %v18_v14 }
  0x2e   :  { %513 = vmatmul.msk.f32.gmra.mxu0 %vm48_vm0, %v19_v16 }
  0x2f   :  { %534 = vmatmul.msk.f32.gmra.mxu3 %vm48_vm0, %v708_v17  ;;  %541 = vmatmul.msk.f32.gmra.mxu1 %vm48_vm0, %v19_v16 }
  0x30   :  { %569 = vmatmul.msk.f32.gmra.mxu2 %vm48_vm0, %v19_v16 }
  0x36   :  { %514 = vmatmul.msk.f32.gmra.mxu0 %vm48_vm0, %v20_v18 }
  0x37   :  { %535 = vmatmul.msk.f32.gmra.mxu3 %vm48_vm0, %v721_v19  ;;  %542 = vmatmul.msk.f32.gmra.mxu1 %vm48_vm0, %v20_v18 }
  0x38   :  { %570 = vmatmul.msk.f32.gmra.mxu2 %vm48_vm0, %v20_v18 }
  0x3e   :  { %515 = vmatmul.msk.f32.gmra.mxu0 %vm48_vm0, %v21_v20 }
  0x3f   :  { %557 = vmatmul.msk.f32.vlgmr.msrb.gmra.mxu3 %vm48_vm0, %v643_v7  ;;  %543 = vmatmul.msk.f32.gmra.mxu1 %vm48_vm0, %v21_v20 }
  0x40   :  { %571 = vmatmul.msk.f32.gmra.mxu2 %vm48_vm0, %v21_v20 }
  0x46   :  { %516 = vmatmul.msk.f32.gmra.mxu0 %vm48_vm0, %v22_v21 }
  0x47   :  { %558 = vmatmul.msk.f32.gmra.mxu3 %vm48_vm0, %v656_v9  ;;  %544 = vmatmul.msk.f32.gmra.mxu1 %vm48_vm0, %v22_v21 }
  0x48   :  { %572 = vmatmul.msk.f32.gmra.mxu2 %vm48_vm0, %v22_v21 }
  0x4e   :  { %517 = vmatmul.msk.f32.gmra.mxu0 %vm48_vm0, %v23_v22 }
  0x4f   :  { %559 = vmatmul.msk.f32.gmra.mxu3 %vm48_vm0, %v669_v11  ;;  %545 = vmatmul.msk.f32.gmra.mxu1 %vm48_vm0, %v23_v22 }
  0x50   :  { %573 = vmatmul.msk.f32.gmra.mxu2 %vm48_vm0, %v23_v22 }
  0x56   :  { %518 = vmatmul.msk.f32.gmra.mxu0 %vm48_vm0, %v24_v23 }
  0x57   :  { %560 = vmatmul.msk.f32.gmra.mxu3 %vm48_vm0, %v682_v13  ;;  %546 = vmatmul.msk.f32.gmra.mxu1 %vm48_vm0, %v24_v23 }
  0x58   :  { %574 = vmatmul.msk.f32.gmra.mxu2 %vm48_vm0, %v24_v23 }
  0x5e   :  { %519 = vmatmul.msk.f32.gmra.mxu0 %vm48_vm0, %v25_v24 }
  0x5f   :  { %561 = vmatmul.msk.f32.gmra.mxu3 %vm48_vm0, %v695_v15  ;;  %547 = vmatmul.msk.f32.gmra.mxu1 %vm48_vm0, %v25_v24 }
  0x60   :  { %575 = vmatmul.msk.f32.gmra.mxu2 %vm48_vm0, %v25_v24 }
  0x66   :  { %520 = vmatmul.msk.f32.gmra.mxu0 %vm48_vm0, %v26_v25 }
  0x67   :  { %562 = vmatmul.msk.f32.gmra.mxu3 %vm48_vm0, %v708_v17  ;;  %548 = vmatmul.msk.f32.gmra.mxu1 %vm48_vm0, %v26_v25 }
  0x68   :  { %576 = vmatmul.msk.f32.gmra.mxu2 %vm48_vm0, %v26_v25 }
  0x6e   :  { %521 = vmatmul.msk.f32.gmra.mxu0 %vm48_vm0, %v27_v26 }
  0x6f   :  { %563 = vmatmul.msk.f32.gmra.mxu3 %vm48_vm0, %v721_v19  ;;  %549 = vmatmul.msk.f32.gmra.mxu1 %vm48_vm0, %v27_v26 }
  0x70   :  { %577 = vmatmul.msk.f32.gmra.mxu2 %vm48_vm0, %v27_v26 }
  0x76   :  { %522 = vmatmul.msk.f32.gmra.mxu0 %vm48_vm0, %v28_v27 }
  0x77   :  { %585 = vmatmul.msk.f32.vlgmr.msra.gmra.mxu3 %vm48_vm0, %v643_v7  ;;  %550 = vmatmul.msk.f32.gmra.mxu1 %vm48_vm0, %v28_v27 }
  0x78   :  { %578 = vmatmul.msk.f32.gmra.mxu2 %vm48_vm0, %v28_v27 }
  0x7e   :  { %523 = vmatmul.msk.f32.gmra.mxu0 %vm48_vm0, %v29_v28 }
  0x7f   :  { %586 = vmatmul.msk.f32.gmra.mxu3 %vm48_vm0, %v656_v9  ;;  %551 = vmatmul.msk.f32.gmra.mxu1 %vm48_vm0, %v29_v28 }
  0x80   :  { %579 = vmatmul.msk.f32.gmra.mxu2 %vm48_vm0, %v29_v28 }
  0x83   :  { %v150_v29 = vpop.f32.mrf.mxu0 }
  0x84   :  { %v247_v31 = vpop.f32.mrf.mxu1 }
  0x86   :  { %524 = vmatmul.msk.f32.gmra.mxu0 %vm48_vm0, %v30_v30 }
  0x87   :  { %587 = vmatmul.msk.f32.gmra.mxu3 %vm48_vm0, %v669_v11  ;;  %552 = vmatmul.msk.f32.gmra.mxu1 %vm48_vm0, %v30_v30 }
  0x88   :  { %580 = vmatmul.msk.f32.gmra.mxu2 %vm48_vm0, %v30_v30 }
  0x89   :  { %v808_v32 = vpop.f32.mrf.mxu3 }
  0x8a   :  { %v344_v33 = vpop.f32.mrf.mxu2 }
  0x8b   :  { %v153_v34 = vpop.f32.mrf.mxu0 }
  0x8c   :  { %v249_v36 = vpop.f32.mrf.mxu1 }
  0x8e   :  { %525 = vmatmul.msk.f32.gmra.mxu0 %vm48_vm0, %v31_v35 }
  0x8f   :  { %588 = vmatmul.msk.f32.gmra.mxu3 %vm48_vm0, %v682_v13  ;;  %553 = vmatmul.msk.f32.gmra.mxu1 %vm48_vm0, %v31_v35 }
  0x90   :  { %581 = vmatmul.msk.f32.gmra.mxu2 %vm48_vm0, %v31_v35 }
  0x92   :  { %v818_v37 = vpop.f32.mrf.mxu3 }
  0x93   :  { %v346_v38 = vpop.f32.mrf.mxu2  ;;  %v156_v39 = vpop.f32.mrf.mxu0 }
  0x94   :  { %v251_v41 = vpop.f32.mrf.mxu1 }
  0x95   :  { %v424_v42 = vadd.f32 %v251_v41, %v150_v29 }
  0x96   :  { %526 = vmatmul.msk.f32.gmra.mxu0 %vm48_vm0, %v32_v40 }
  0x97   :  { %589 = vmatmul.msk.f32.gmra.mxu3 %vm48_vm0, %v695_v15  ;;  %554 = vmatmul.msk.f32.gmra.mxu1 %vm48_vm0, %v32_v40 }
  0x98   :  { %582 = vmatmul.msk.f32.gmra.mxu2 %vm48_vm0, %v32_v40 }
  0x9a   :  { %v828_v43 = vpop.f32.mrf.mxu3 }
  0x9b   :  { %v348_v44 = vpop.f32.mrf.mxu2  ;;  %v159_v45 = vpop.f32.mrf.mxu0 }
  0x9c   :  { %v254_v47 = vpop.f32.mrf.mxu1 }
  0x9d   :  { %v425_v48 = vadd.f32 %v254_v47, %v153_v34 }
  0x9e   :  { %527 = vmatmul.msk.f32.gmra.mxu0 %vm48_vm0, %v33_v46 }
  0x9f   :  { %590 = vmatmul.msk.f32.gmra.mxu3 %vm48_vm0, %v708_v17  ;;  %555 = vmatmul.msk.f32.gmra.mxu1 %vm48_vm0, %v33_v46 }
  0xa0   :  { %583 = vmatmul.msk.f32.gmra.mxu2 %vm48_vm0, %v33_v46 }
  0xa2   :  { %v222_v49 = vpop.f32.mrf.mxu3 }
  0xa3   :  { %v350_v50 = vpop.f32.mrf.mxu2  ;;  %v162_v51 = vpop.f32.mrf.mxu0 }
  0xa4   :  { %v257_v53 = vpop.f32.mrf.mxu1 }
  0xa5   :  { %v426_v54 = vadd.f32 %v257_v53, %v156_v39 }
  0xa6   :  { %528 = vmatmul.msk.f32.gmra.mxu0 %vm48_vm0, %v34_v52 }
  0xa7   :  { %591 = vmatmul.msk.f32.gmra.mxu3 %vm48_vm0, %v721_v19  ;;  %556 = vmatmul.msk.f32.gmra.mxu1 %vm48_vm0, %v34_v52 }
  0xa8   :  { %584 = vmatmul.msk.f32.gmra.mxu2 %vm48_vm0, %v34_v52 }
  0xaa   :  { %v224_v55 = vpop.f32.mrf.mxu3 }
  0xab   :  { %v352_v56 = vpop.f32.mrf.mxu2  ;;  %v165_v58 = vpop.f32.mrf.mxu0 }
  0xac   :  { %v448_v57 = vadd.f32 %v424_v42, %v352_v56  ;;  %v260_v59 = vpop.f32.mrf.mxu1 }
  0xad   :  { %v427_v60 = vadd.f32 %v260_v59, %v159_v45 }
  0xb2   :  { %v226_v61 = vpop.f32.mrf.mxu3 }
  0xb3   :  { %v355_v62 = vpop.f32.mrf.mxu2  ;;  %v168_v0 = vpop.f32.mrf.mxu0 }
  0xb4   :  { %v449_v63 = vadd.f32 %v425_v48, %v355_v62  ;;  %v263_v1 = vpop.f32.mrf.mxu1 }
  0xb5   :  { %v428_v2 = vadd.f32 %v263_v1, %v162_v51 }
  0xba   :  { %v228_v3 = vpop.f32.mrf.mxu3 }
  0xbb   :  { %v358_v4 = vpop.f32.mrf.mxu2  ;;  %v171_v6 = vpop.f32.mrf.mxu0 }
  0xbc   :  { %v450_v5 = vadd.f32 %v426_v54, %v358_v4  ;;  %v266_v7 = vpop.f32.mrf.mxu1 }
  0xbd   :  { %v429_v8 = vadd.f32 %v266_v7, %v165_v58 }
  0xc2   :  { %v846_v9 = vpop.f32.mrf.mxu3 }
  0xc3   :  { %v361_v10 = vpop.f32.mrf.mxu2  ;;  %v174_v12 = vpop.f32.mrf.mxu0 }
  0xc4   :  { %v848_v11 = vadd.f32 %v427_v60, %v361_v10  ;;  %v269_v13 = vpop.f32.mrf.mxu1 }
  0xc5   :  { %v430_v14 = vadd.f32 %v269_v13, %v168_v0 }
  0xca   :  { %v850_v15 = vpop.f32.mrf.mxu3 }
  0xcb   :  { %v364_v16 = vpop.f32.mrf.mxu2  ;;  %v177_v18 = vpop.f32.mrf.mxu0 }
  0xcc   :  { %v452_v17 = vadd.f32 %v428_v2, %v364_v16  ;;  %v272_v19 = vpop.f32.mrf.mxu1 }
  0xcd   :  { %v431_v21 = vadd.f32 %v272_v19, %v171_v6 }
  0xce   :  { %v472_v20 = vmax.f32 %v448_v57, %v452_v17 }
  0xd2   :  { %v314_v22 = vpop.f32.mrf.mxu3 }
  0xd3   :  { %v367_v23 = vpop.f32.mrf.mxu2  ;;  %v180_v25 = vpop.f32.mrf.mxu0 }
  0xd4   :  { %v453_v24 = vadd.f32 %v429_v8, %v367_v23  ;;  %v275_v26 = vpop.f32.mrf.mxu1  ;;  %v445_v23 = vadd.f32 %v314_v22, %v808_v32 }
  0xd5   :  { %v432_v28 = vadd.f32 %v275_v26, %v174_v12 }
  0xd6   :  { %v483_v27 = vmax.f32 %v449_v63, %v453_v24 }
  0xda   :  { %v852_v29 = vpop.f32.mrf.mxu3 }
  0xdb   :  { %v370_v30 = vpop.f32.mrf.mxu2  ;;  %v183_v33 = vpop.f32.mrf.mxu0  ;;  %v446_v22 = vadd.f32 %v852_v29, %v818_v37  ;;  %v598_v29 = vld [vmem:[%s878_s2] ss:$0 sm:$0xff] }
  0xdc   :  { %v454_v31 = vadd.f32 %v430_v14, %v370_v30  ;;  %v278_v34 = vpop.f32.mrf.mxu1 }
  0xdd   :  { %v433_v36 = vadd.f32 %v278_v34, %v177_v18 }
  0xde   :  { %v473_v35 = vmax.f32 %v450_v5, %v454_v31 }
  0xe2   :  { %v854_v38 = vpop.f32.mrf.mxu3 }
  0xe3   :  { %v373_v39 = vpop.f32.mrf.mxu2  ;;  %v186_v41 = vpop.f32.mrf.mxu0 }
  0xe4   :  { %v455_v40 = vadd.f32 %v431_v21, %v373_v39  ;;  %v281_v42 = vpop.f32.mrf.mxu1 }
  0xe5   :  { %v434_v57 = vadd.f32 %v281_v42, %v180_v25 }
  0xe6   :  { %v484_v44 = vmax.f32 %v848_v11, %v455_v40 }
  0xea   :  { %v323_v45 = vpop.f32.mrf.mxu3 }
  0xeb   :  { %v376_v46 = vpop.f32.mrf.mxu2  ;;  %v189_v48 = vpop.f32.mrf.mxu0 }
  0xec   :  { %v456_v47 = vadd.f32 %v432_v28, %v376_v46  ;;  %v284_v49 = vpop.f32.mrf.mxu1 }
  0xed   :  { %v435_v21 = vadd.f32 %v284_v49, %v183_v33 }
  0xee   :  { %v857_v50 = vmax.f32 %v472_v20, %v456_v47 }
  0xf2   :  { %v325_v51 = vpop.f32.mrf.mxu3 }
  0xf3   :  { %v379_v52 = vpop.f32.mrf.mxu2  ;;  %v192_v54 = vpop.f32.mrf.mxu0 }
  0xf4   :  { %v457_v53 = vadd.f32 %v433_v36, %v379_v52  ;;  %v287_v55 = vpop.f32.mrf.mxu1 }
  0xf5   :  { %v436_v47 = vadd.f32 %v287_v55, %v186_v41 }
  0xf6   :  { %v485_v56 = vmax.f32 %v483_v27, %v457_v53  ;;  %v447_v53 = vadd.f32 %v854_v38, %v828_v43 }
  0xfa   :  { %v403_v58 = vpop.f32.mrf.mxu3 }
  0xfb   :  { %v382_v59 = vpop.f32.mrf.mxu2  ;;  %v195_v61 = vpop.f32.mrf.mxu0 }
  0xfc   :  { %v458_v60 = vadd.f32 %v434_v57, %v382_v59  ;;  %v290_v62 = vpop.f32.mrf.mxu1 }
  0xfd   :  { %v437_v13 = vadd.f32 %v290_v62, %v189_v48 }
  0xfe   :  { %v475_v63 = vmax.f32 %v473_v35, %v458_v60 }
 0x102   :  { %v406_v0 = vpop.f32.mrf.mxu3 }
 0x103   :  { %v385_v1 = vpop.f32.mrf.mxu2  ;;  %v198_v2 = vpop.f32.mrf.mxu0 }
 0x104   :  { %v293_v3 = vpop.f32.mrf.mxu1  ;;  %v459_v26 = vadd.f32 %v435_v21, %v385_v1 }
 0x105   :  { %v438_v27 = vadd.f32 %v293_v3, %v192_v54 }
 0x106   :  { %v486_v42 = vmax.f32 %v484_v44, %v459_v26 }
 0x10a   :  { %v409_v4 = vpop.f32.mrf.mxu3 }
 0x10b   :  { %v388_v5 = vpop.f32.mrf.mxu2  ;;  %v201_v6 = vpop.f32.mrf.mxu0 }
 0x10c   :  { %v296_v7 = vpop.f32.mrf.mxu1  ;;  %v460_v49 = vadd.f32 %v436_v47, %v388_v5 }
 0x10d   :  { %v439_v28 = vadd.f32 %v296_v7, %v195_v61 }
 0x10e   :  { %v476_v60 = vmax.f32 %v857_v50, %v460_v49 }
 0x112   :  { %v412_v8 = vpop.f32.mrf.mxu3 }
 0x113   :  { %v391_v10 = vpop.f32.mrf.mxu2  ;;  %v204_v11 = vpop.f32.mrf.mxu0 }
 0x114   :  { %v299_v12 = vpop.f32.mrf.mxu1  ;;  %v461_v17 = vadd.f32 %v437_v13, %v391_v10 }
 0x116   :  { %v487_v24 = vmax.f32 %v485_v56, %v461_v17  ;;  %v440_v56 = vadd.f32 %v299_v12, %v198_v2 }
 0x11a   :  { %v415_v14 = vpop.f32.mrf.mxu3 }
 0x11b   :  { %v394_v16 = vpop.f32.mrf.mxu2  ;;  %v207_v18 = vpop.f32.mrf.mxu0  ;;  %v469_v30 = vadd.f32 %v445_v23, %v415_v14 }
 0x11c   :  { %v302_v19 = vpop.f32.mrf.mxu1  ;;  %v462_v36 = vadd.f32 %v438_v27, %v394_v16  ;;  %v443_v45 = vadd.f32 %v846_v9, %v207_v18 }
 0x11d   :  { %v441_v20 = vadd.f32 %v302_v19, %v201_v6 }
 0x11e   :  { %v477_v51 = vmax.f32 %v475_v63, %v462_v36  ;;  %v467_v54 = vadd.f32 %v443_v45, %v409_v4 }
 0x11f   :  { %v465_v25 = vadd.f32 %v441_v20, %v403_v58 }
 0x121   :  { %v489_v31 = vmax.f32 %v487_v24, %v465_v25 }
 0x122   :  { %v418_v34 = vpop.f32.mrf.mxu3 }
 0x123   :  { %v397_v35 = vpop.f32.mrf.mxu2  ;;  %v491_v40 = vmax.f32 %v489_v31, %v469_v30  ;;  %v210_v32 = vpop.f32.mrf.mxu0  ;;  %v470_v57 = vadd.f32 %v446_v22, %v418_v34 }
 0x124   :  { %v463_v39 = vadd.f32 %v439_v28, %v397_v35  ;;  %v305_v46 = vpop.f32.mrf.mxu1  ;;  %v444_v44 = vadd.f32 %v850_v15, %v210_v32 }
 0x125   :  { %v442_v33 = vadd.f32 %v305_v46, %v204_v11 }
 0x126   :  { %v488_v48 = vmax.f32 %v486_v42, %v463_v39  ;;  %v468_v43 = vadd.f32 %v444_v44, %v412_v8 }
 0x127   :  { %v466_v52 = vadd.f32 %v442_v33, %v406_v0 }
 0x128   :  { %v490_v59 = vmax.f32 %v488_v48, %v467_v54 }
 0x129   :  { %v479_v9 = vmax.f32 %v477_v51, %v466_v52 }
 0x12a   :  { %v421_v58 = vpop.f32.mrf.mxu3 }
 0x12b   :  { %v400_v41 = vpop.f32.mrf.mxu2  ;;  %v471_v55 = vadd.f32 %v447_v53, %v421_v58  ;;  %v481_v61 = vmax.f32 %v479_v9, %v470_v57 }
 0x12c   :  { %v464_v37 = vadd.f32 %v440_v56, %v400_v41 }
 0x12d   :  { %v492_v62 = vmax.f32 %v490_v59, %v471_v55 }
 0x12e   :  { %v478_v38 = vmax.f32 %v476_v60, %v464_v37 }
 0x12f   :  { %v493_v63 = vmax.f32 %v491_v40, %v492_v62 }
 0x130   :  { %v480_v0 = vmax.f32 %v478_v38, %v468_v43 }
 0x131   :  { %v499_v1 = vadd.f32 %v598_v29, %v493_v63 }
 0x132   :  { %v482_v15 = vmax.f32 %v480_v0, %v481_v61 }
 0x133   :  { %v501_v2 = vmax.f32 %v499_v1, 0.0 }
 0x134   :  { %v498_v3 = vadd.f32 %v598_v29, %v482_v15 }
 0x135   :  { %503 = vst [vmem:[%s879_s3 + $0x8] sm:$0xff] %v501_v2 }
 0x136   :  { %v500_v50 = vmax.f32 %v498_v3, 0.0 }
 0x138   :  { %502 = vst [vmem:[%s879_s3] sm:$0xff] %v500_v50 }

// kernel: cnn_cnn_lstm_forward.4
= control target key start
LH: loop header
LB: loop body
LE: loop exit
PB: predicated region body
PF: predicated region fallthrough
CT: control target
= control target key end

     0   :  { %vm70_vm0 = vcmask 916480   ;;  %vm131_vm1 = vcmask 1041408   ;;  %vm156_vm2 = vcmask 261120   ;;  %vm144_vm3 = vcmask 1046528   ;;  %s745_s2 = inlined_call_operand.vmem [shape: f32[240,32], index: 2, kind: input, shape index: {}]   ;;  %s746_s3 = inlined_call_operand.vmem [shape: f32[1,32], index: 3, kind: input, shape index: {}]   ;;  %s747_s1 = inlined_call_operand.vmem [shape: f32[2,8,240], index: 1, kind: input, shape index: {}]   ;;  %s748_s4 = inlined_call_operand.vmem [shape: f32[5,32,32], index: 4, kind: input, shape index: {}]   ;;  %s749_s5 = inlined_call_operand.vmem [shape: f32[1,32], index: 5, kind: input, shape index: {}]   ;;  %s750_s7 = inlined_call_operand.vmem [shape: f32[48,128], index: 7, kind: input, shape index: {}]   ;;  %s751_s6 = inlined_call_operand.vmem [shape: f32[32,128], index: 6, kind: input, shape index: {}]   ;;  %s752_s0 = inlined_call_operand.vmem [shape: f32[2,8,48], index: 0, kind: input, shape index: {}]   ;;  %s753_s8 = inlined_call_operand.vmem [shape: f32[1,128], index: 8, kind: input, shape index: {}]   ;;  %s754_s9 = inlined_call_operand.vmem [shape: f32[2,8,128], index: 9, kind: output, shape index: {}]  }
   0x1   :  { %v51_v0 = vld [vmem:[%s745_s2 + $0x78] sm:$0xff]  ;;  %v50_v1 = vld [vmem:[%s745_s2 + $0x70] sm:$0xff]  ;;  %v65_v2 = vld [vmem:[%s745_s2 + $0xe8] sm:$0xff]  ;;  %vm252_vm4 = vcmask 1044480   ;;  %vm211_vm5 = vcmask 1045504   ;;  %vm293_vm6 = vcmask 1043456  }
   0x2   :  { %77 = vmatpush.msra.mxu0 %v51_v0  ;;  %v49_v3 = vld [vmem:[%s745_s2 + $0x68] sm:$0xff]  ;;  %102 = vmatpush.msra.mxu1 %v65_v2  ;;  %v64_v4 = vld [vmem:[%s745_s2 + $0xe0] sm:$0xff]  ;;  %v63_v5 = vld [vmem:[%s745_s2 + $0xd8] sm:$0xff]  ;;  %vm354_vm7 = vcmask 392192  }
   0x3   :  { %v48_v6 = vld [vmem:[%s745_s2 + $0x60] sm:$0xff]  ;;  %v62_v7 = vld [vmem:[%s745_s2 + $0xd0] sm:$0xff]  ;;  %v47_v8 = vld [vmem:[%s745_s2 + $0x58] sm:$0xff] }
   0x4   :  { %78 = vmatpush.msra.mxu0 %v50_v1  ;;  %103 = vmatpush.msra.mxu1 %v64_v4  ;;  %v61_v9 = vld [vmem:[%s745_s2 + $0xc8] sm:$0xff]  ;;  %v46_v10 = vld [vmem:[%s745_s2 + $0x50] sm:$0xff]  ;;  %v60_v11 = vld [vmem:[%s745_s2 + $0xc0] sm:$0xff] }
   0x5   :  { %v45_v12 = vld [vmem:[%s745_s2 + $0x48] sm:$0xff]  ;;  %v59_v13 = vld [vmem:[%s745_s2 + $0xb8] sm:$0xff]  ;;  %v44_v14 = vld [vmem:[%s745_s2 + $0x40] sm:$0xff] }
   0x6   :  { %79 = vmatpush.msra.mxu0 %v49_v3  ;;  %104 = vmatpush.msra.mxu1 %v63_v5  ;;  %v58_v15 = vld [vmem:[%s745_s2 + $0xb0] sm:$0xff]  ;;  %v43_v16 = vld [vmem:[%s745_s2 + $0x38] sm:$0xff]  ;;  %v57_v17 = vld [vmem:[%s745_s2 + $0xa8] sm:$0xff] }
   0x7   :  { %v42_v18 = vld [vmem:[%s745_s2 + $0x30] sm:$0xff]  ;;  %v56_v19 = vld [vmem:[%s745_s2 + $0xa0] sm:$0xff]  ;;  %v41_v20 = vld [vmem:[%s745_s2 + $0x28] sm:$0xff] }
   0x8   :  { %80 = vmatpush.msra.mxu0 %v48_v6  ;;  %105 = vmatpush.msra.mxu1 %v62_v7  ;;  %v55_v21 = vld [vmem:[%s745_s2 + $0x98] sm:$0xff]  ;;  %v40_v22 = vld [vmem:[%s745_s2 + $0x20] sm:$0xff]  ;;  %v54_v23 = vld [vmem:[%s745_s2 + $0x90] sm:$0xff] }
   0x9   :  { %v39_v24 = vld [vmem:[%s745_s2 + $0x18] sm:$0xff]  ;;  %v53_v25 = vld [vmem:[%s745_s2 + $0x88] sm:$0xff]  ;;  %v38_v26 = vld [vmem:[%s745_s2 + $0x10] sm:$0xff] }
   0xa   :  { %81 = vmatpush.msra.mxu0 %v47_v8  ;;  %106 = vmatpush.msra.mxu1 %v61_v9  ;;  %v52_v27 = vld [vmem:[%s745_s2 + $0x80] sm:$0xff]  ;;  %v37_v28 = vld [vmem:[%s745_s2 + $0x8] sm:$0xff]  ;;  %v35_v32 = vld [vmem:[%s747_s1 + $0x18] sm:$0xff] }
   0xb   :  { %v33_v29 = vld [vmem:[%s747_s1 + $0x8] sm:$0xff]  ;;  %v36_v30 = vld [vmem:[%s745_s2] sm:$0xff]  ;;  %v34_v33 = vld [vmem:[%s747_s1 + $0x10] sm:$0xff] }
   0xc   :  { %82 = vmatpush.msra.mxu0 %v46_v10  ;;  %107 = vmatpush.msra.mxu1 %v60_v11  ;;  %v32_v31 = vld [vmem:[%s747_s1] sm:$0xff]  ;;  %v139_v34 = vld [vmem:[%s748_s4 + $0x18] sm:$0xff]  ;;  %v138_v35 = vld [vmem:[%s748_s4 + $0x10] sm:$0xff] }
   0xd   :  { %200 = vmatpush.msra.mxu3 %v139_v34  ;;  %v430_v36 = vld [vmem:[%s748_s4 + $0x38] sm:$0xff]  ;;  %v137_v37 = vld [vmem:[%s748_s4 + $0x8] sm:$0xff]  ;;  %v429_v38 = vld [vmem:[%s748_s4 + $0x30] sm:$0xff] }
   0xe   :  { %83 = vmatpush.msra.mxu0 %v45_v12  ;;  %108 = vmatpush.msra.mxu1 %v59_v13  ;;  %v136_v39 = vld [vmem:[%s748_s4] sm:$0xff]  ;;  %v428_v40 = vld [vmem:[%s748_s4 + $0x28] sm:$0xff]  ;;  %v438_v42 = vld [vmem:[%s748_s4 + $0x58] sm:$0xff] }
   0xf   :  { %201 = vmatpush.msra.mxu3 %v138_v35  ;;  %173 = vmatpush.msra.mxu2 %v430_v36  ;;  %v427_v41 = vld [vmem:[%s748_s4 + $0x20] sm:$0xff]  ;;  %v437_v43 = vld [vmem:[%s748_s4 + $0x50] sm:$0xff]  ;;  %v444_v44 = vld [vmem:[%s748_s4 + $0x78] sm:$0xff] }
  0x10   :  { %84 = vmatpush.msra.mxu0 %v44_v14  ;;  %109 = vmatpush.msra.mxu1 %v58_v15  ;;  %v443_v45 = vld [vmem:[%s748_s4 + $0x70] sm:$0xff]  ;;  %v436_v46 = vld [vmem:[%s748_s4 + $0x48] sm:$0xff]  ;;  %v435_v48 = vld [vmem:[%s748_s4 + $0x40] sm:$0xff] }
  0x11   :  { %202 = vmatpush.msra.mxu3 %v137_v37  ;;  %174 = vmatpush.msra.mxu2 %v429_v38  ;;  %v442_v47 = vld [vmem:[%s748_s4 + $0x68] sm:$0xff]  ;;  %v441_v49 = vld [vmem:[%s748_s4 + $0x60] sm:$0xff]  ;;  %v450_v1 = vld [vmem:[%s748_s4 + $0x98] sm:$0xff] }
  0x12   :  { %85 = vmatpush.msra.mxu0 %v43_v16  ;;  %110 = vmatpush.msra.mxu1 %v57_v17  ;;  %v461_v50 = vld [vmem:[%s746_s3] ss:$0 sm:$0xff]  ;;  %v449_v4 = vld [vmem:[%s748_s4 + $0x90] sm:$0xff]  ;;  %v448_v6 = vld [vmem:[%s748_s4 + $0x88] sm:$0xff] }
  0x13   :  { %203 = vmatpush.msra.mxu3 %v136_v39  ;;  %175 = vmatpush.msra.mxu2 %v428_v40  ;;  %v447_v11 = vld [vmem:[%s748_s4 + $0x80] sm:$0xff]  ;;  %v350_v34 = vld [vmem:[%s750_s7 + $0x10] sm:$0xff]  ;;  %v349_v35 = vld [vmem:[%s750_s7 + $0x8] sm:$0xff] }
  0x14   :  { %86 = vmatpush.msra.mxu0 %v42_v18  ;;  %111 = vmatpush.msra.mxu1 %v56_v19  ;;  %v345_v36 = vld [vmem:[%s751_s6 + $0x18] sm:$0xff]  ;;  %v348_v37 = vld [vmem:[%s750_s7] sm:$0xff]  ;;  %v344_v40 = vld [vmem:[%s751_s6 + $0x10] sm:$0xff] }
  0x15   :  { %176 = vmatpush.msra.mxu2 %v427_v41  ;;  %280 = vmatpush.msrb.mxu3 %v444_v44  ;;  %v346_v39 = vld [vmem:[%s752_s0] sm:$0xff]  ;;  %v343_v41 = vld [vmem:[%s751_s6 + $0x8] sm:$0xff] }
  0x16   :  { %87 = vmatpush.msra.mxu0 %v41_v20  ;;  %112 = vmatpush.msra.mxu1 %v55_v21 }
  0x17   :  { %239 = vmatpush.msrb.mxu2 %v438_v42  ;;  %281 = vmatpush.msrb.mxu3 %v443_v45  ;;  %v342_v42 = vld [vmem:[%s751_s6] sm:$0xff]  ;;  %v347_v45 = vld [vmem:[%s752_s0 + $0x8] sm:$0xff] }
  0x18   :  { %88 = vmatpush.msra.mxu0 %v40_v22  ;;  %113 = vmatpush.msra.mxu1 %v54_v23 }
  0x19   :  { %240 = vmatpush.msrb.mxu2 %v437_v43  ;;  %282 = vmatpush.msrb.mxu3 %v442_v47 }
  0x1a   :  { %89 = vmatpush.msra.mxu0 %v39_v24  ;;  %114 = vmatpush.msra.mxu1 %v53_v25 }
  0x1b   :  { %241 = vmatpush.msrb.mxu2 %v436_v46  ;;  %283 = vmatpush.msrb.mxu3 %v441_v49 }
  0x1c   :  { %90 = vmatpush.msra.mxu0 %v38_v26  ;;  %115 = vmatpush.msra.mxu1 %v52_v27 }
  0x1d   :  { %425 = vmatmul.msk.f32.vlgmr.msra.gmra.mxu1 %vm70_vm0, %v33_v29  ;;  %242 = vmatpush.msrb.mxu2 %v435_v48 }
  0x1e   :  { %91 = vmatpush.msra.mxu0 %v37_v28  ;;  %457 = vmatpush.msrb.mxu1 %v345_v36 }
  0x20   :  { %92 = vmatpush.msra.mxu0 %v36_v30  ;;  %458 = vmatpush.msrb.mxu1 %v344_v40 }
  0x21   :  { %93 = vmatmul.f32.vlgmr.msra.gmra.mxu0 %v32_v31  ;;  %v353_v31 = vld [vmem:[%s750_s7 + $0x28] sm:$0xff] }
  0x22   :  { %402 = vmatpush.msrb.mxu0 %v345_v36  ;;  %459 = vmatpush.msrb.mxu1 %v343_v41 }
  0x24   :  { %403 = vmatpush.msrb.mxu0 %v344_v40  ;;  %460 = vmatpush.msrb.mxu1 %v342_v42 }
  0x25   :  { %426 = vmatmul.msk.f32.gmra.mxu1 %vm70_vm0, %v35_v32  ;;  %v352_v32 = vld [vmem:[%s750_s7 + $0x20] sm:$0xff] }
  0x26   :  { %404 = vmatpush.msrb.mxu0 %v343_v41 }
  0x28   :  { %405 = vmatpush.msrb.mxu0 %v342_v42 }
  0x29   :  { %96 = vmatmul.f32.gmra.mxu0 %v34_v33  ;;  %v351_v33 = vld [vmem:[%s750_s7 + $0x18] sm:$0xff] }
  0x9a   :  { %v117_v51 = vpop.f32.mrf.mxu1 }
  0x9e   :  { %v94_v52 = vpop.f32.mrf.mxu0 }
  0x9f   :  { %v95_v53 = vadd.f32 %v461_v50, %v94_v52 }
  0xa1   :  { %v118_v54 = vadd.f32 %v117_v51, %v95_v53  ;;  %v462_v53 = vld [vmem:[%s749_s5] ss:$0 sm:$0xff] }
  0xa2   :  { %v120_v58 = vpop.f32.mrf.mxu1 }
  0xa3   :  { %v123_v55 = vmax.f32 %v118_v54, 0.0 }
  0xa5   :  { %v127_v56 = vrot.slane %v123_v55, 6 }
  0xa6   :  { %v97_v57 = vpop.f32.mrf.mxu0 }
  0xa7   :  { %v132_v59 = vsel %vm131_vm1, 0.0, %v127_v56  ;;  %v134_v60 = vsel %vm131_vm1, %v127_v56, 0.0  ;;  %v98_v61 = vadd.f32 %v461_v50, %v97_v57 }
  0xa8   :  { %433 = vmatmul.msk.f32.vlgmr.msra.gmra.mxu3 %vm156_vm2, %v132_v59  ;;  %v145_v63 = vrot.slane %v132_v59, 1  ;;  %v146_v0 = vrot.slane %v134_v60, 1  ;;  %v254_v13 = vrot.slane %v134_v60, 3  ;;  %v253_v14 = vrot.slane %v132_v59, 3 }
  0xa9   :  { %v121_v62 = vadd.f32 %v120_v58, %v98_v61  ;;  %v213_v15 = vrot.slane %v134_v60, 2  ;;  %v212_v17 = vrot.slane %v132_v59, 2  ;;  %v294_v25 = vrot.slane %v132_v59, 4  ;;  %371 = vmatpush.msra.mxu3 %v353_v31 }
  0xaa   :  { %v147_v3 = vsel %vm144_vm3, %v145_v63, %v146_v0  ;;  %v255_v16 = vsel %vm252_vm4, %v253_v14, %v254_v13  ;;  %v295_v26 = vrot.slane %v134_v60, 4 }
  0xab   :  { %v124_v2 = vmax.f32 %v121_v62, 0.0  ;;  %431 = vmatmul.msk.f32.vlgmr.msra.gmra.mxu2 %vm156_vm2, %v147_v3  ;;  %v214_v18 = vsel %vm211_vm5, %v212_v17, %v213_v15  ;;  %372 = vmatpush.msra.mxu3 %v352_v32  ;;  %v463_v3 = vld [vmem:[%s753_s8] ss:$0 sm:$0xff] }
  0xac   :  { %321 = vmatpush.msra.mxu2 %v450_v1  ;;  %v296_v27 = vsel %vm293_vm6, %v294_v25, %v295_v26 }
  0xad   :  { %v128_v5 = vrot.slane %v124_v2, 6  ;;  %373 = vmatpush.msra.mxu3 %v351_v33 }
  0xae   :  { %322 = vmatpush.msra.mxu2 %v449_v4 }
  0xaf   :  { %v133_v7 = vsel %vm131_vm1, 0.0, %v128_v5  ;;  %v135_v8 = vsel %vm131_vm1, %v128_v5, 0.0  ;;  %374 = vmatpush.msra.mxu3 %v350_v34 }
  0xb0   :  { %434 = vmatmul.msk.f32.gmra.mxu3 %vm156_vm2, %v133_v7  ;;  %v148_v9 = vrot.slane %v133_v7, 1  ;;  %v149_v10 = vrot.slane %v135_v8, 1  ;;  %323 = vmatpush.msra.mxu2 %v448_v6  ;;  %v256_v19 = vrot.slane %v133_v7, 3  ;;  %v257_v20 = vrot.slane %v135_v8, 3 }
  0xb1   :  { %v215_v22 = vrot.slane %v133_v7, 2  ;;  %v216_v23 = vrot.slane %v135_v8, 2  ;;  %v297_v28 = vrot.slane %v133_v7, 4  ;;  %v298_v29 = vrot.slane %v135_v8, 4  ;;  %375 = vmatpush.msra.mxu3 %v349_v35 }
  0xb2   :  { %v150_v12 = vsel %vm144_vm3, %v148_v9, %v149_v10  ;;  %324 = vmatpush.msra.mxu2 %v447_v11  ;;  %v258_v21 = vsel %vm252_vm4, %v256_v19, %v257_v20 }
  0xb3   :  { %432 = vmatmul.msk.f32.gmra.mxu2 %vm156_vm2, %v150_v12  ;;  %v217_v24 = vsel %vm211_vm5, %v215_v22, %v216_v23  ;;  %v299_v30 = vsel %vm293_vm6, %v297_v28, %v298_v29  ;;  %376 = vmatpush.msra.mxu3 %v348_v37 }
  0xb8   :  { %445 = vmatmul.msk.f32.vlgmr.msrb.gmra.mxu3 %vm156_vm2, %v255_v16 }
  0xbb   :  { %439 = vmatmul.msk.f32.vlgmr.msrb.gmra.mxu2 %vm156_vm2, %v214_v18 }
  0xc0   :  { %446 = vmatmul.msk.f32.gmra.mxu3 %vm156_vm2, %v258_v21 }
  0xc3   :  { %440 = vmatmul.msk.f32.gmra.mxu2 %vm156_vm2, %v217_v24 }
  0xc8   :  { %453 = vmatmul.msk.f32.vlgmr.msra.gmra.mxu3 %vm354_vm7, %v346_v39 }
  0xcb   :  { %451 = vmatmul.msk.f32.vlgmr.msra.gmra.mxu2 %vm156_vm2, %v296_v27 }
  0xd0   :  { %454 = vmatmul.msk.f32.gmra.mxu3 %vm354_vm7, %v347_v45 }
  0xd3   :  { %452 = vmatmul.msk.f32.gmra.mxu2 %vm156_vm2, %v299_v30 }
 0x12b   :  { %v205_v43 = vpop.f32.mrf.mxu3 }
 0x12e   :  { %v178_v38 = vpop.f32.mrf.mxu2 }
 0x12f   :  { %v206_v49 = vadd.f32 %v205_v43, %v178_v38 }
 0x133   :  { %v208_v47 = vpop.f32.mrf.mxu3 }
 0x136   :  { %v181_v44 = vpop.f32.mrf.mxu2 }
 0x137   :  { %v209_v55 = vadd.f32 %v208_v47, %v181_v44 }
 0x13b   :  { %v285_v51 = vpop.f32.mrf.mxu3 }
 0x13e   :  { %v244_v46 = vpop.f32.mrf.mxu2 }
 0x13f   :  { %v250_v50 = vadd.f32 %v244_v46, %v206_v49 }
 0x141   :  { %v291_v52 = vadd.f32 %v285_v51, %v250_v50 }
 0x143   :  { %v288_v60 = vpop.f32.mrf.mxu3 }
 0x146   :  { %v247_v48 = vpop.f32.mrf.mxu2 }
 0x147   :  { %v251_v57 = vadd.f32 %v247_v48, %v209_v55 }
 0x149   :  { %v292_v61 = vadd.f32 %v288_v60, %v251_v57 }
 0x14b   :  { %v378_v2 = vpop.f32.mrf.mxu3 }
 0x14e   :  { %v326_v54 = vpop.f32.mrf.mxu2 }
 0x14f   :  { %v332_v56 = vadd.f32 %v326_v54, %v291_v52 }
 0x151   :  { %v338_v58 = vadd.f32 %v462_v53, %v332_v56 }
 0x153   :  { %v340_v59 = vmax.f32 %v338_v58, 0.0  ;;  %v381_v7 = vpop.f32.mrf.mxu3 }
 0x155   :  { %455 = vmatmul.msk.f32.vlgmr.msrb.gmra.mxu0 %vm156_vm2, %v340_v59 }
 0x156   :  { %v329_v62 = vpop.f32.mrf.mxu2 }
 0x157   :  { %v333_v63 = vadd.f32 %v329_v62, %v292_v61 }
 0x159   :  { %v339_v0 = vadd.f32 %v462_v53, %v333_v63 }
 0x15b   :  { %v341_v1 = vmax.f32 %v339_v0, 0.0 }
 0x15d   :  { %456 = vmatmul.msk.f32.vlgmr.msrb.gmra.mxu1 %vm156_vm2, %v341_v1 }
 0x1d2   :  { %v407_v4 = vpop.f32.mrf.mxu0 }
 0x1d3   :  { %v408_v5 = vadd.f32 %v407_v4, %v378_v2 }
 0x1d5   :  { %v417_v6 = vadd.f32 %v463_v3, %v408_v5 }
 0x1d7   :  { %419 = vst [vmem:[%s754_s9] sm:$0xff] %v417_v6 }
 0x1da   :  { %v410_v8 = vpop.f32.mrf.mxu1 }
 0x1db   :  { %v411_v9 = vadd.f32 %v410_v8, %v381_v7 }
 0x1dd   :  { %v418_v10 = vadd.f32 %v463_v3, %v411_v9 }
 0x1df   :  { %420 = vst [vmem:[%s754_s9 + $0x8] sm:$0xff] %v418_v10 }

// kernel: cnn_cnn_lstm_forward.5
= control target key start
LH: loop header
LB: loop body
LE: loop exit
PB: predicated region body
PF: predicated region fallthrough
CT: control target
= control target key end

     0   :  { %vm27_vm0 = vcmask 261120   ;;  %v1450_v2 = vmov 0.0   ;;  %s1451_s8 = smov 64   ;;  %s1452_s9 = smov 32   ;;  %vm147_vm5 = vcmask 39936   ;;  %v45_v44 = vlaneseq  ;;  %s1997_s3 = inlined_call_operand.vmem [shape: f32[32,128], index: 3, kind: input, shape index: {}]   ;;  %s1998_s2 = inlined_call_operand.vmem [shape: f32[5,128], index: 2, kind: input, shape index: {}]   ;;  %s1999_s0 = inlined_call_operand.vmem [shape: f32[8,8,128], index: 0, kind: input, shape index: {}]   ;;  %s2000_s5 = inlined_call_operand.vmem [shape: f32[1,5], index: 5, kind: input, shape index: {}]   ;;  %s2001_s4 = inlined_call_operand.vmem [shape: f32[32,5], index: 4, kind: input, shape index: {}]   ;;  %s2002_s1 = inlined_call_operand.vmem [shape: s32[8,8,1], index: 1, kind: input, shape index: {}]   ;;  %s2003_s6 = inlined_call_operand.vmem [shape: f32[8,128], index: 6, kind: output, shape index: {}]  }
   0x1   :  { %v1493_v0 = vld [vmem:[%s1997_s3 + $0x18] sm:$0xff]  ;;  %v1498_v1 = vld [vmem:[%s1997_s3 + $0x10] sm:$0xff]  ;;  %28 = vst.msk [vmem:[#allocation2] sm:$0xff] %vm27_vm0, %v1450_v2  ;;  %v1509_v3 = vld [vmem:[%s1997_s3 + $0x8] sm:$0xff] }
   0x2   :  { %69 = vmatpush.msra.mxu0 %v1493_v0  ;;  %29 = vst.msk [vmem:[#allocation3] sm:$0xff] %vm27_vm0, %v1450_v2  ;;  %232 = vmatpush.msra.mxu2 %v1493_v0  ;;  %v1516_v4 = vld [vmem:[%s1997_s3] sm:$0xff]  ;;  %v1551_v33 = vld [vmem:[%s2001_s4 + $0x18] sm:$0xff]  ;;  %v1556_v34 = vld [vmem:[%s2001_s4 + $0x10] sm:$0xff]  ;;  %v1605_v45 = vand.u32 127, %v45_v44 }
   0x3   :  { %v1351_v6 = vld [vmem:[%s1998_s2] ss:$0 sm:$0xff]  ;;  %139 = vmatpush.msra.mxu1 %v1551_v33  ;;  %295 = vmatpush.msra.mxu3 %v1551_v33  ;;  %v1563_v35 = vld [vmem:[%s2001_s4 + $0x8] sm:$0xff] }
   0x4   :  { %70 = vmatpush.msra.mxu0 %v1498_v1  ;;  %233 = vmatpush.msra.mxu2 %v1498_v1  ;;  %v51_v7 = vld [vmem:[%s1999_s0] sm:$0xff] }
   0x5   :  { %v52_v8 = vadd.f32 %v1351_v6, %v51_v7  ;;  %140 = vmatpush.msra.mxu1 %v1556_v34  ;;  %296 = vmatpush.msra.mxu3 %v1556_v34  ;;  %v1570_v36 = vld [vmem:[%s2001_s4] sm:$0xff] }
   0x6   :  { %71 = vmatpush.msra.mxu0 %v1509_v3  ;;  %234 = vmatpush.msra.mxu2 %v1509_v3  ;;  %v1598_v40 = vld [vmem:[%s2000_s5] ss:$0 sm:$0xff] }
   0x7   :  { %141 = vmatpush.msra.mxu1 %v1563_v35  ;;  %297 = vmatpush.msra.mxu3 %v1563_v35  ;;  %v35_v56 = vld [vmem:[%s1998_s2] sm:$0x1f] }
   0x8   :  { %72 = vmatpush.msra.mxu0 %v1516_v4  ;;  %v47_v5 = vld [vmem:[#allocation2] sm:$0xff]  ;;  %235 = vmatpush.msra.mxu2 %v1516_v4  ;;  %v1616_v60 = vperm.slane %v35_v56, 0  ;;  %v1618_v61 = vperm.slane %v35_v56, 1  ;;  %v1620_v63 = vperm.slane %v35_v56, 2 }
   0x9   :  { %1297 = vmatmul.msk.f32.vlgmr.msra.gmra.mxu0 %vm27_vm0, %v47_v5  ;;  %v48_v12 = vld [vmem:[#allocation3] sm:$0xff]  ;;  %142 = vmatpush.msra.mxu1 %v1570_v36 }
   0xa   :  { %534 = vmatpush.msrb.mxu2 %v1493_v0  ;;  %383 = vmatpush.msrb.mxu0 %v1493_v0 }
   0xb   :  { %298 = vmatpush.msra.mxu3 %v1570_v36  ;;  %446 = vmatpush.msrb.mxu1 %v1551_v33 }
   0xc   :  { %535 = vmatpush.msrb.mxu2 %v1498_v1  ;;  %384 = vmatpush.msrb.mxu0 %v1498_v1 }
   0xd   :  { %597 = vmatpush.msrb.mxu3 %v1551_v33  ;;  %447 = vmatpush.msrb.mxu1 %v1556_v34 }
   0xe   :  { %536 = vmatpush.msrb.mxu2 %v1509_v3  ;;  %385 = vmatpush.msrb.mxu0 %v1509_v3 }
   0xf   :  { %598 = vmatpush.msrb.mxu3 %v1556_v34  ;;  %448 = vmatpush.msrb.mxu1 %v1563_v35 }
  0x10   :  { %537 = vmatpush.msrb.mxu2 %v1516_v4  ;;  %386 = vmatpush.msrb.mxu0 %v1516_v4 }
  0x11   :  { %599 = vmatpush.msrb.mxu3 %v1563_v35  ;;  %449 = vmatpush.msrb.mxu1 %v1570_v36 }
  0x12   :  { %685 = vmatpush.msra.mxu0 %v1493_v0 }
  0x13   :  { %600 = vmatpush.msrb.mxu3 %v1570_v36 }
  0x14   :  { %686 = vmatpush.msra.mxu0 %v1498_v1 }
  0x16   :  { %687 = vmatpush.msra.mxu0 %v1509_v3 }
  0x18   :  { %688 = vmatpush.msra.mxu0 %v1516_v4 }
  0x86   :  { %v74_v9 = vpop.f32.mrf.mxu0 }
  0x87   :  { %v77_v10 = vadd.f32 %v74_v9, %v52_v8  ;;  %v1625_v8 = vperm.slane %v35_v56, 3 }
  0x89   :  { %1353 = vtanh.f32 %v77_v10  ;;  %v1298_v13 = vmul.f32 -1.442695, %v77_v10 }
  0x8b   :  { %1355 = vpow2.f32 %v1298_v13 }
  0x8f   :  { %v1354_v11 = vpop.eup %1353 }
  0x90   :  { %104 = vrot.lane.b32.xlu0 %v1354_v11, %s1451_s8 }
  0x91   :  { %v1356_v14 = vpop.eup %1355 }
  0x92   :  { %v81_v15 = vadd.f32 1.0, %v1356_v14 }
  0x94   :  { %1357 = vrcp.f32 %v81_v15  ;;  %v93_v21 = vand.u32 2147483648, %v81_v15  ;;  %vm87_vm2 = vweird.f32 %v81_v15  ;;  %v91_v22 = vand.u32 2147483647, %v81_v15 }
  0x96   :  { %v94_v24 = vor.u32 1.1754944e-38, %v93_v21  ;;  %vm92_vm4 = vcmp.eq.f32.partialorder %v91_v22, 8.507059e+37 }
  0x98   :  { %99 = vrot.lane.b32.xlu0 %v48_v12, %s1452_s9  ;;  %v1630_v12 = vperm.slane %v35_v56, 4 }
  0x9a   :  { %v1358_v16 = vpop.eup %1357 }
  0x9b   :  { %v83_v17 = vmul.f32 %v1358_v16, %v81_v15  ;;  %vm88_vm1 = vweird.f32 %v1358_v16 }
  0x9c   :  { %vm89_vm3 = vmor %vm87_vm2, %vm88_vm1 }
  0x9d   :  { %v84_v18 = vsub.f32 1.0, %v83_v17 }
  0x9f   :  { %v85_v19 = vmul.f32 %v1358_v16, %v84_v18 }
  0xa1   :  { %v86_v20 = vadd.f32 %v1358_v16, %v85_v19 }
  0xa3   :  { %v90_v23 = vsel %vm89_vm3, %v1358_v16, %v86_v20  ;;  %v1301_v20 = vld [vmem:[%s1999_s0 + $0x8] sm:$0xff] }
  0xa4   :  { %v95_v26 = vsel %vm92_vm4, %v94_v24, %v90_v23 }
 0x102   :  { %v105_v25 = vpop.permute.xlu0 %104 }
 0x103   :  { %v107_v27 = vmul.f32 %v105_v25, %v95_v26 }
 0x105   :  { %109 = vrot.lane.b32.xlu1 %v107_v27, %s1452_s9 }
 0x10a   :  { %v100_v28 = vpop.permute.xlu0 %99 }
 0x10b   :  { %v102_v29 = vmul.f32 %v100_v28, %v95_v26 }
 0x177   :  { %v110_v30 = vpop.permute.xlu1 %109 }
 0x178   :  { %v1544_v31 = vadd.f32 %v110_v30, %v102_v29 }
 0x17a   :  { %1359 = vtanh.f32 %v1544_v31 }
 0x180   :  { %v1360_v32 = vpop.eup %1359 }
 0x181   :  { %115 = vrot.lane.b32.xlu1 %v1360_v32, %s1451_s8 }
 0x1f3   :  { %v116_v37 = vpop.permute.xlu1 %115 }
 0x1f4   :  { %v118_v38 = vmul.f32 %v116_v37, %v95_v26 }
 0x1f6   :  { %123 = vrot.lane.b32.xlu2 %v118_v38, %s1452_s9 }
 0x250   :  { %v124_v39 = vpop.permute.xlu2 %123 }
 0x251   :  { %1299 = vmatmul.msk.f32.vlgmr.msra.gmra.mxu1 %vm27_vm0, %v124_v39  ;;  %1302 = vmatmul.msk.f32.vlgmr.msra.gmra.mxu2 %vm27_vm0, %v124_v39 }
 0x252   :  { %748 = vmatpush.msra.mxu1 %v1551_v33  ;;  %836 = vmatpush.msra.mxu2 %v1493_v0 }
 0x254   :  { %749 = vmatpush.msra.mxu1 %v1556_v34  ;;  %837 = vmatpush.msra.mxu2 %v1498_v1 }
 0x256   :  { %750 = vmatpush.msra.mxu1 %v1563_v35  ;;  %838 = vmatpush.msra.mxu2 %v1509_v3 }
 0x258   :  { %751 = vmatpush.msra.mxu1 %v1570_v36  ;;  %839 = vmatpush.msra.mxu2 %v1516_v4 }
 0x2ce   :  { %v144_v41 = vpop.f32.mrf.mxu1 }
 0x2cf   :  { %v1601_v42 = vadd.f32 %v1598_v40, %v144_v41 }
 0x2d1   :  { %v148_v43 = vsel %vm147_vm5, %v1601_v42, -inf }
 0x2d2   :  { %149 = vmax.xlane.f32.xlu2 %v148_v43 }
 0x2d4   :  { %v237_v23 = vpop.f32.mrf.mxu2 }
 0x345   :  { %v1607_v46 = vpop.xlane.xlu2 %149 }
 0x346   :  { %vm151_vm6 = vcmp.eq.f32.partialorder %v1601_v42, %v1607_v46 }
 0x347   :  { %v152_v47 = vsel %vm151_vm6, %v1605_v45, 5 }
 0x348   :  { %v153_v48 = vsel %vm147_vm5, %v152_v47, 2147483647 }
 0x349   :  { %v155_v49 = vshra.s32 %v153_v48, 16  ;;  %v154_v51 = vand.u32 65535, %v153_v48 }
 0x34b   :  { %v157_v50 = vcvt.s32.f32 %v155_v49  ;;  %v156_v53 = vcvt.s32.f32 %v154_v51 }
 0x34d   :  { %158 = vmin.xlane.f32.xlu0 %v157_v50 }
 0x3c0   :  { %v159_v52 = vpop.xlane.xlu0 %158 }
 0x3c1   :  { %vm160_vm7 = vcmp.eq.f32.partialorder %v157_v50, %v159_v52  ;;  %v165_v55 = vcvt.f32.s32 %v159_v52 }
 0x3c2   :  { %v161_v54 = vsel %vm160_vm7, %v156_v53, inf }
 0x3c3   :  { %162 = vmin.xlane.f32.xlu1 %v161_v54  ;;  %v166_v58 = vshll.u32 %v165_v55, 16 }
 0x436   :  { %v163_v57 = vpop.xlane.xlu1 %162 }
 0x437   :  { %v164_v59 = vcvt.f32.s32 %v163_v57 }
 0x439   :  { %v167_v62 = vadd.s32 %v166_v58, %v164_v59 }
 0x43b   :  { %vm168_vm8 = vcmp.eq.s32.totalorder %v167_v62, 0  ;;  %vm173_vm9 = vcmp.eq.s32.totalorder %v167_v62, 1  ;;  %vm178_vm10 = vcmp.eq.s32.totalorder %v167_v62, 2  ;;  %vm183_vm11 = vcmp.eq.s32.totalorder %v167_v62, 3 }
 0x43c   :  { %v169_v5 = vsel %vm168_vm8, 1.0, %v1450_v2  ;;  %v174_v6 = vsel %vm173_vm9, 1.0, %v1450_v2  ;;  %v179_v7 = vsel %vm178_vm10, 1.0, %v1450_v2  ;;  %v184_v11 = vsel %vm183_vm11, 1.0, %v1450_v2 }
 0x43d   :  { %v171_v9 = vmul.f32 %v1616_v60, %v169_v5  ;;  %v176_v10 = vmul.f32 %v1618_v61, %v174_v6  ;;  %vm188_vm12 = vcmp.eq.s32.totalorder %v167_v62, 4  ;;  %v181_v14 = vmul.f32 %v1620_v63, %v179_v7 }
 0x43e   :  { %v189_v15 = vsel %vm188_vm12, 1.0, %v1450_v2  ;;  %v186_v17 = vmul.f32 %v1625_v8, %v184_v11 }
 0x43f   :  { %v177_v13 = vadd.f32 %v176_v10, %v171_v9  ;;  %v191_v19 = vmul.f32 %v1630_v12, %v189_v15 }
 0x441   :  { %v182_v16 = vadd.f32 %v181_v14, %v177_v13 }
 0x443   :  { %v187_v18 = vadd.f32 %v186_v17, %v182_v16 }
 0x445   :  { %v192_v21 = vadd.f32 %v191_v19, %v187_v18 }
 0x447   :  { %v219_v22 = vadd.f32 %v1301_v20, %v192_v21 }
 0x449   :  { %v240_v24 = vadd.f32 %v237_v23, %v219_v22 }
 0x44b   :  { %1361 = vtanh.f32 %v240_v24  ;;  %v1303_v26 = vmul.f32 -1.442695, %v240_v24 }
 0x44d   :  { %1363 = vpow2.f32 %v1303_v26 }
 0x451   :  { %v1362_v25 = vpop.eup %1361 }
 0x452   :  { %263 = vrot.lane.b32.xlu2 %v1362_v25, %s1451_s8 }
 0x453   :  { %v1364_v27 = vpop.eup %1363 }
 0x454   :  { %v244_v28 = vadd.f32 1.0, %v1364_v27 }
 0x456   :  { %1365 = vrcp.f32 %v244_v28  ;;  %v256_v39 = vand.u32 2147483648, %v244_v28  ;;  %vm250_vm14 = vweird.f32 %v244_v28  ;;  %v254_v41 = vand.u32 2147483647, %v244_v28 }
 0x458   :  { %v257_v44 = vor.u32 1.1754944e-38, %v256_v39  ;;  %vm255_vm1 = vcmp.eq.f32.partialorder %v254_v41, 8.507059e+37 }
 0x45c   :  { %v1366_v29 = vpop.eup %1365 }
 0x45d   :  { %v246_v30 = vmul.f32 %v1366_v29, %v244_v28  ;;  %vm251_vm13 = vweird.f32 %v1366_v29 }
 0x45e   :  { %vm252_vm15 = vmor %vm250_vm14, %vm251_vm13 }
 0x45f   :  { %v247_v32 = vsub.f32 1.0, %v246_v30 }
 0x461   :  { %v248_v37 = vmul.f32 %v1366_v29, %v247_v32 }
 0x463   :  { %v249_v38 = vadd.f32 %v1366_v29, %v248_v37  ;;  %v1307_v37 = vld [vmem:[%s1999_s0 + $0x10] sm:$0xff] }
 0x465   :  { %v253_v43 = vsel %vm252_vm15, %v1366_v29, %v249_v38 }
 0x466   :  { %v258_v48 = vsel %vm255_vm1, %v257_v44, %v253_v43 }
 0x467   :  { %v261_v50 = vmul.f32 %v258_v48, %v1544_v31 }
 0x4ac   :  { %v264_v47 = vpop.permute.xlu2 %263 }
 0x4ad   :  { %v266_v49 = vmul.f32 %v264_v47, %v258_v48 }
 0x4af   :  { %268 = vrot.lane.b32.xlu0 %v266_v49, %s1452_s9 }
 0x521   :  { %v269_v51 = vpop.permute.xlu0 %268 }
 0x522   :  { %v1642_v52 = vadd.f32 %v269_v51, %v261_v50 }
 0x524   :  { %1367 = vtanh.f32 %v1642_v52 }
 0x52a   :  { %v1368_v53 = vpop.eup %1367 }
 0x52b   :  { %274 = vrot.lane.b32.xlu1 %v1368_v53, %s1451_s8 }
 0x59d   :  { %v275_v54 = vpop.permute.xlu1 %274 }
 0x59e   :  { %v277_v55 = vmul.f32 %v275_v54, %v258_v48 }
 0x5a0   :  { %279 = vrot.lane.b32.xlu2 %v277_v55, %s1452_s9 }
 0x5fa   :  { %v280_v56 = vpop.permute.xlu2 %279 }
 0x5fb   :  { %1304 = vmatmul.msk.f32.vlgmr.msra.gmra.mxu3 %vm27_vm0, %v280_v56  ;;  %1308 = vmatmul.msk.f32.vlgmr.msrb.gmra.mxu0 %vm27_vm0, %v280_v56 }
 0x5fc   :  { %899 = vmatpush.msra.mxu3 %v1551_v33  ;;  %987 = vmatpush.msrb.mxu0 %v1493_v0 }
 0x5fe   :  { %900 = vmatpush.msra.mxu3 %v1556_v34  ;;  %988 = vmatpush.msrb.mxu0 %v1498_v1 }
 0x600   :  { %901 = vmatpush.msra.mxu3 %v1563_v35  ;;  %989 = vmatpush.msrb.mxu0 %v1509_v3 }
 0x602   :  { %902 = vmatpush.msra.mxu3 %v1570_v36  ;;  %990 = vmatpush.msrb.mxu0 %v1516_v4 }
 0x678   :  { %v388_v41 = vpop.f32.mrf.mxu0 }
 0x67e   :  { %v300_v31 = vpop.f32.mrf.mxu3 }
 0x67f   :  { %v1658_v57 = vadd.f32 %v1598_v40, %v300_v31 }
 0x681   :  { %v303_v58 = vsel %vm147_vm5, %v1658_v57, -inf }
 0x682   :  { %304 = vmax.xlane.f32.xlu0 %v303_v58 }
 0x6f5   :  { %v1662_v59 = vpop.xlane.xlu0 %304 }
 0x6f6   :  { %vm306_vm2 = vcmp.eq.f32.partialorder %v1658_v57, %v1662_v59 }
 0x6f7   :  { %v307_v62 = vsel %vm306_vm2, %v1605_v45, 5 }
 0x6f8   :  { %v308_v5 = vsel %vm147_vm5, %v307_v62, 2147483647 }
 0x6f9   :  { %v310_v6 = vshra.s32 %v308_v5, 16  ;;  %v309_v9 = vand.u32 65535, %v308_v5 }
 0x6fb   :  { %v312_v7 = vcvt.s32.f32 %v310_v6  ;;  %v311_v11 = vcvt.s32.f32 %v309_v9 }
 0x6fd   :  { %313 = vmin.xlane.f32.xlu2 %v312_v7 }
 0x770   :  { %v314_v10 = vpop.xlane.xlu2 %313 }
 0x771   :  { %vm315_vm3 = vcmp.eq.f32.partialorder %v312_v7, %v314_v10  ;;  %v320_v14 = vcvt.f32.s32 %v314_v10 }
 0x772   :  { %v316_v13 = vsel %vm315_vm3, %v311_v11, inf }
 0x773   :  { %317 = vmin.xlane.f32.xlu1 %v316_v13  ;;  %v321_v16 = vshll.u32 %v320_v14, 16 }
 0x7e6   :  { %v318_v15 = vpop.xlane.xlu1 %317 }
 0x7e7   :  { %v319_v17 = vcvt.f32.s32 %v318_v15 }
 0x7e9   :  { %v322_v18 = vadd.s32 %v321_v16, %v319_v17 }
 0x7eb   :  { %vm323_vm4 = vcmp.eq.s32.totalorder %v322_v18, 0  ;;  %vm327_vm6 = vcmp.eq.s32.totalorder %v322_v18, 1  ;;  %vm331_vm7 = vcmp.eq.s32.totalorder %v322_v18, 2  ;;  %vm335_vm8 = vcmp.eq.s32.totalorder %v322_v18, 3 }
 0x7ec   :  { %v324_v19 = vsel %vm323_vm4, 1.0, %v1450_v2  ;;  %v328_v20 = vsel %vm327_vm6, 1.0, %v1450_v2  ;;  %v332_v21 = vsel %vm331_vm7, 1.0, %v1450_v2  ;;  %v336_v24 = vsel %vm335_vm8, 1.0, %v1450_v2 }
 0x7ed   :  { %v325_v22 = vmul.f32 %v324_v19, %v1616_v60  ;;  %v329_v23 = vmul.f32 %v328_v20, %v1618_v61  ;;  %vm339_vm9 = vcmp.eq.s32.totalorder %v322_v18, 4  ;;  %v333_v26 = vmul.f32 %v332_v21, %v1620_v63 }
 0x7ee   :  { %v340_v27 = vsel %vm339_vm9, 1.0, %v1450_v2  ;;  %v337_v29 = vmul.f32 %v336_v24, %v1625_v8 }
 0x7ef   :  { %v330_v25 = vadd.f32 %v329_v23, %v325_v22  ;;  %v341_v32 = vmul.f32 %v340_v27, %v1630_v12 }
 0x7f1   :  { %v334_v28 = vadd.f32 %v333_v26, %v330_v25 }
 0x7f3   :  { %v338_v30 = vadd.f32 %v337_v29, %v334_v28 }
 0x7f5   :  { %v342_v38 = vadd.f32 %v341_v32, %v338_v30 }
 0x7f7   :  { %v370_v39 = vadd.f32 %v1307_v37, %v342_v38 }
 0x7f9   :  { %v391_v43 = vadd.f32 %v388_v41, %v370_v39 }
 0x7fb   :  { %1369 = vtanh.f32 %v391_v43  ;;  %v1309_v47 = vmul.f32 -1.442695, %v391_v43 }
 0x7fd   :  { %1371 = vpow2.f32 %v1309_v47 }
 0x801   :  { %v1370_v44 = vpop.eup %1369 }
 0x802   :  { %414 = vrot.lane.b32.xlu0 %v1370_v44, %s1451_s8 }
 0x803   :  { %v1372_v48 = vpop.eup %1371 }
 0x804   :  { %v395_v49 = vadd.f32 1.0, %v1372_v48 }
 0x806   :  { %1373 = vrcp.f32 %v395_v49  ;;  %v407_v56 = vand.u32 2147483648, %v395_v49  ;;  %vm401_vm11 = vweird.f32 %v395_v49  ;;  %v405_v31 = vand.u32 2147483647, %v395_v49 }
 0x808   :  { %v408_v62 = vor.u32 1.1754944e-38, %v407_v56  ;;  %vm406_vm13 = vcmp.eq.f32.partialorder %v405_v31, 8.507059e+37 }
 0x80c   :  { %v1374_v50 = vpop.eup %1373 }
 0x80d   :  { %v397_v51 = vmul.f32 %v1374_v50, %v395_v49  ;;  %vm402_vm10 = vweird.f32 %v1374_v50 }
 0x80e   :  { %vm403_vm12 = vmor %vm401_vm11, %vm402_vm10 }
 0x80f   :  { %v398_v53 = vsub.f32 1.0, %v397_v51  ;;  %v1313_v51 = vld [vmem:[%s1999_s0 + $0x18] sm:$0xff] }
 0x811   :  { %v399_v54 = vmul.f32 %v1374_v50, %v398_v53 }
 0x813   :  { %v400_v55 = vadd.f32 %v1374_v50, %v399_v54 }
 0x815   :  { %v404_v58 = vsel %vm403_vm12, %v1374_v50, %v400_v55 }
 0x816   :  { %v409_v6 = vsel %vm406_vm13, %v408_v62, %v404_v58 }
 0x817   :  { %v412_v9 = vmul.f32 %v409_v6, %v1642_v52 }
 0x874   :  { %v415_v5 = vpop.permute.xlu0 %414 }
 0x875   :  { %v417_v7 = vmul.f32 %v415_v5, %v409_v6 }
 0x877   :  { %419 = vrot.lane.b32.xlu2 %v417_v7, %s1452_s9 }
 0x8d1   :  { %v420_v10 = vpop.permute.xlu2 %419 }
 0x8d2   :  { %v1684_v11 = vadd.f32 %v420_v10, %v412_v9 }
 0x8d4   :  { %1375 = vtanh.f32 %v1684_v11 }
 0x8da   :  { %v1376_v13 = vpop.eup %1375 }
 0x8db   :  { %425 = vrot.lane.b32.xlu1 %v1376_v13, %s1451_s8 }
 0x94d   :  { %v426_v14 = vpop.permute.xlu1 %425 }
 0x94e   :  { %v428_v15 = vmul.f32 %v426_v14, %v409_v6 }
 0x950   :  { %430 = vrot.lane.b32.xlu0 %v428_v15, %s1452_s9 }
 0x9c2   :  { %v431_v16 = vpop.permute.xlu0 %430 }
 0x9c3   :  { %1310 = vmatmul.msk.f32.vlgmr.msrb.gmra.mxu1 %vm27_vm0, %v431_v16  ;;  %1314 = vmatmul.msk.f32.vlgmr.msrb.gmra.mxu2 %vm27_vm0, %v431_v16 }
 0x9c4   :  { %1050 = vmatpush.msrb.mxu1 %v1551_v33  ;;  %1138 = vmatpush.msrb.mxu2 %v1493_v0 }
 0x9c6   :  { %1051 = vmatpush.msrb.mxu1 %v1556_v34  ;;  %1139 = vmatpush.msrb.mxu2 %v1498_v1 }
 0x9c8   :  { %1052 = vmatpush.msrb.mxu1 %v1563_v35  ;;  %1140 = vmatpush.msrb.mxu2 %v1509_v3 }
 0x9ca   :  { %1053 = vmatpush.msrb.mxu1 %v1570_v36  ;;  %1141 = vmatpush.msrb.mxu2 %v1516_v4 }
 0xa40   :  { %v451_v52 = vpop.f32.mrf.mxu1 }
 0xa41   :  { %v1700_v17 = vadd.f32 %v1598_v40, %v451_v52 }
 0xa43   :  { %v454_v18 = vsel %vm147_vm5, %v1700_v17, -inf }
 0xa44   :  { %455 = vmax.xlane.f32.xlu2 %v454_v18 }
 0xa46   :  { %v539_v55 = vpop.f32.mrf.mxu2 }
 0xab7   :  { %v1704_v0 = vpop.xlane.xlu2 %455 }
 0xab8   :  { %vm457_vm14 = vcmp.eq.f32.partialorder %v1700_v17, %v1704_v0 }
 0xab9   :  { %v458_v1 = vsel %vm457_vm14, %v1605_v45, 5 }
 0xaba   :  { %v459_v3 = vsel %vm147_vm5, %v458_v1, 2147483647 }
 0xabb   :  { %v461_v19 = vshra.s32 %v459_v3, 16  ;;  %v460_v4 = vand.u32 65535, %v459_v3 }
 0xabd   :  { %v463_v20 = vcvt.s32.f32 %v461_v19  ;;  %v462_v22 = vcvt.s32.f32 %v460_v4 }
 0xabf   :  { %464 = vmin.xlane.f32.xlu0 %v463_v20 }
 0xb32   :  { %v465_v21 = vpop.xlane.xlu0 %464 }
 0xb33   :  { %vm466_vm15 = vcmp.eq.f32.partialorder %v463_v20, %v465_v21  ;;  %v471_v24 = vcvt.f32.s32 %v465_v21 }
 0xb34   :  { %v467_v23 = vsel %vm466_vm15, %v462_v22, inf }
 0xb35   :  { %468 = vmin.xlane.f32.xlu1 %v467_v23  ;;  %v472_v26 = vshll.u32 %v471_v24, 16 }
 0xba8   :  { %v469_v25 = vpop.xlane.xlu1 %468 }
 0xba9   :  { %v470_v27 = vcvt.f32.s32 %v469_v25 }
 0xbab   :  { %v473_v28 = vadd.s32 %v472_v26, %v470_v27 }
 0xbad   :  { %vm474_vm1 = vcmp.eq.s32.totalorder %v473_v28, 0  ;;  %vm478_vm2 = vcmp.eq.s32.totalorder %v473_v28, 1  ;;  %vm482_vm3 = vcmp.eq.s32.totalorder %v473_v28, 2  ;;  %vm486_vm4 = vcmp.eq.s32.totalorder %v473_v28, 3 }
 0xbae   :  { %v475_v29 = vsel %vm474_vm1, 1.0, %v1450_v2  ;;  %v479_v30 = vsel %vm478_vm2, 1.0, %v1450_v2  ;;  %v483_v32 = vsel %vm482_vm3, 1.0, %v1450_v2  ;;  %v487_v39 = vsel %vm486_vm4, 1.0, %v1450_v2 }
 0xbaf   :  { %v476_v37 = vmul.f32 %v475_v29, %v1616_v60  ;;  %v480_v38 = vmul.f32 %v479_v30, %v1618_v61  ;;  %vm490_vm6 = vcmp.eq.s32.totalorder %v473_v28, 4  ;;  %v484_v43 = vmul.f32 %v483_v32, %v1620_v63 }
 0xbb0   :  { %v491_v44 = vsel %vm490_vm6, 1.0, %v1450_v2  ;;  %v488_v48 = vmul.f32 %v487_v39, %v1625_v8 }
 0xbb1   :  { %v481_v41 = vadd.f32 %v480_v38, %v476_v37  ;;  %v492_v50 = vmul.f32 %v491_v44, %v1630_v12 }
 0xbb3   :  { %v485_v47 = vadd.f32 %v484_v43, %v481_v41 }
 0xbb5   :  { %v489_v49 = vadd.f32 %v488_v48, %v485_v47 }
 0xbb7   :  { %v493_v53 = vadd.f32 %v492_v50, %v489_v49 }
 0xbb9   :  { %v521_v54 = vadd.f32 %v1313_v51, %v493_v53 }
 0xbbb   :  { %v542_v56 = vadd.f32 %v539_v55, %v521_v54 }
 0xbbd   :  { %1377 = vtanh.f32 %v542_v56  ;;  %v1315_v58 = vmul.f32 -1.442695, %v542_v56 }
 0xbbf   :  { %1379 = vpow2.f32 %v1315_v58 }
 0xbc3   :  { %v1378_v31 = vpop.eup %1377 }
 0xbc4   :  { %565 = vrot.lane.b32.xlu2 %v1378_v31, %s1451_s8 }
 0xbc5   :  { %v1380_v62 = vpop.eup %1379 }
 0xbc6   :  { %v546_v5 = vadd.f32 1.0, %v1380_v62 }
 0xbc8   :  { %1381 = vrcp.f32 %v546_v5  ;;  %v558_v14 = vand.u32 2147483648, %v546_v5  ;;  %vm552_vm8 = vweird.f32 %v546_v5  ;;  %v556_v15 = vand.u32 2147483647, %v546_v5 }
 0xbca   :  { %v559_v52 = vor.u32 1.1754944e-38, %v558_v14  ;;  %vm557_vm10 = vcmp.eq.f32.partialorder %v556_v15, 8.507059e+37 }
 0xbce   :  { %v1382_v6 = vpop.eup %1381 }
 0xbcf   :  { %v548_v7 = vmul.f32 %v1382_v6, %v546_v5  ;;  %vm553_vm7 = vweird.f32 %v1382_v6  ;;  %v1319_v5 = vld [vmem:[%s1999_s0 + $0x20] sm:$0xff] }
 0xbd0   :  { %vm554_vm9 = vmor %vm552_vm8, %vm553_vm7 }
 0xbd1   :  { %v549_v9 = vsub.f32 1.0, %v548_v7 }
 0xbd3   :  { %v550_v10 = vmul.f32 %v1382_v6, %v549_v9 }
 0xbd5   :  { %v551_v13 = vadd.f32 %v1382_v6, %v550_v10 }
 0xbd7   :  { %v555_v16 = vsel %vm554_vm9, %v1382_v6, %v551_v13 }
 0xbd8   :  { %v560_v1 = vsel %vm557_vm10, %v559_v52, %v555_v16 }
 0xbd9   :  { %v563_v19 = vmul.f32 %v560_v1, %v1684_v11 }
 0xc1e   :  { %v566_v18 = vpop.permute.xlu2 %565 }
 0xc1f   :  { %v568_v3 = vmul.f32 %v566_v18, %v560_v1 }
 0xc21   :  { %570 = vrot.lane.b32.xlu0 %v568_v3, %s1452_s9 }
 0xc93   :  { %v571_v20 = vpop.permute.xlu0 %570 }
 0xc94   :  { %v1726_v4 = vadd.f32 %v571_v20, %v563_v19 }
 0xc96   :  { %1383 = vtanh.f32 %v1726_v4 }
 0xc9c   :  { %v1384_v21 = vpop.eup %1383 }
 0xc9d   :  { %576 = vrot.lane.b32.xlu1 %v1384_v21, %s1451_s8 }
 0xd0f   :  { %v577_v22 = vpop.permute.xlu1 %576 }
 0xd10   :  { %v579_v23 = vmul.f32 %v577_v22, %v560_v1 }
 0xd12   :  { %581 = vrot.lane.b32.xlu0 %v579_v23, %s1452_s9 }
 0xd84   :  { %v582_v24 = vpop.permute.xlu0 %581 }
 0xd85   :  { %1316 = vmatmul.msk.f32.vlgmr.msrb.gmra.mxu3 %vm27_vm0, %v582_v24  ;;  %1320 = vmatmul.msk.f32.vlgmr.msra.gmra.mxu0 %vm27_vm0, %v582_v24 }
 0xd86   :  { %1201 = vmatpush.msrb.mxu3 %v1551_v33 }
 0xd88   :  { %1202 = vmatpush.msrb.mxu3 %v1556_v34 }
 0xd8a   :  { %1203 = vmatpush.msrb.mxu3 %v1563_v35 }
 0xd8c   :  { %1204 = vmatpush.msrb.mxu3 %v1570_v36 }
 0xe02   :  { %v690_v9 = vpop.f32.mrf.mxu0 }
 0xe08   :  { %v602_v11 = vpop.f32.mrf.mxu3 }
 0xe09   :  { %v1738_v25 = vadd.f32 %v1598_v40, %v602_v11 }
 0xe0b   :  { %v605_v26 = vsel %vm147_vm5, %v1738_v25, -inf }
 0xe0c   :  { %606 = vmax.xlane.f32.xlu2 %v605_v26 }
 0xe7f   :  { %v1742_v27 = vpop.xlane.xlu2 %606 }
 0xe80   :  { %vm608_vm11 = vcmp.eq.f32.partialorder %v1738_v25, %v1742_v27 }
 0xe81   :  { %v609_v33 = vsel %vm608_vm11, %v1605_v45, 5 }
 0xe82   :  { %v610_v34 = vsel %vm147_vm5, %v609_v33, 2147483647 }
 0xe83   :  { %v612_v35 = vshra.s32 %v610_v34, 16  ;;  %v611_v36 = vand.u32 65535, %v610_v34 }
 0xe85   :  { %v614_v28 = vcvt.s32.f32 %v612_v35  ;;  %v613_v30 = vcvt.s32.f32 %v611_v36 }
 0xe87   :  { %615 = vmin.xlane.f32.xlu1 %v614_v28 }
 0xefa   :  { %v616_v29 = vpop.xlane.xlu1 %615 }
 0xefb   :  { %vm617_vm12 = vcmp.eq.f32.partialorder %v614_v28, %v616_v29  ;;  %v622_v37 = vcvt.f32.s32 %v616_v29 }
 0xefc   :  { %v618_v32 = vsel %vm617_vm12, %v613_v30, inf }
 0xefd   :  { %619 = vmin.xlane.f32.xlu0 %v618_v32  ;;  %v623_v39 = vshll.u32 %v622_v37, 16 }
 0xf70   :  { %v620_v38 = vpop.xlane.xlu0 %619 }
 0xf71   :  { %v621_v41 = vcvt.f32.s32 %v620_v38 }
 0xf73   :  { %v624_v43 = vadd.s32 %v623_v39, %v621_v41 }
 0xf75   :  { %vm625_vm13 = vcmp.eq.s32.totalorder %v624_v43, 0  ;;  %vm629_vm14 = vcmp.eq.s32.totalorder %v624_v43, 1  ;;  %vm633_vm15 = vcmp.eq.s32.totalorder %v624_v43, 2  ;;  %vm637_vm1 = vcmp.eq.s32.totalorder %v624_v43, 3 }
 0xf76   :  { %v626_v44 = vsel %vm625_vm13, 1.0, %v1450_v2  ;;  %v630_v47 = vsel %vm629_vm14, 1.0, %v1450_v2  ;;  %v634_v48 = vsel %vm633_vm15, 1.0, %v1450_v2  ;;  %v638_v51 = vsel %vm637_vm1, 1.0, %v1450_v2 }
 0xf77   :  { %v627_v49 = vmul.f32 %v626_v44, %v1616_v60  ;;  %v631_v50 = vmul.f32 %v630_v47, %v1618_v61  ;;  %vm641_vm2 = vcmp.eq.s32.totalorder %v624_v43, 4  ;;  %v635_v54 = vmul.f32 %v634_v48, %v1620_v63 }
 0xf78   :  { %v642_v55 = vsel %vm641_vm2, 1.0, %v1450_v2  ;;  %v639_v31 = vmul.f32 %v638_v51, %v1625_v8 }
 0xf79   :  { %v632_v53 = vadd.f32 %v631_v50, %v627_v49  ;;  %v643_v62 = vmul.f32 %v642_v55, %v1630_v12 }
 0xf7b   :  { %v636_v56 = vadd.f32 %v635_v54, %v632_v53 }
 0xf7d   :  { %v640_v58 = vadd.f32 %v639_v31, %v636_v56 }
 0xf7f   :  { %v644_v6 = vadd.f32 %v643_v62, %v640_v58 }
 0xf81   :  { %v672_v7 = vadd.f32 %v1319_v5, %v644_v6 }
 0xf83   :  { %v693_v10 = vadd.f32 %v690_v9, %v672_v7 }
 0xf85   :  { %1385 = vtanh.f32 %v693_v10  ;;  %v1321_v14 = vmul.f32 -1.442695, %v693_v10 }
 0xf87   :  { %1387 = vpow2.f32 %v1321_v14 }
 0xf8b   :  { %v1386_v13 = vpop.eup %1385 }
 0xf8c   :  { %716 = vrot.lane.b32.xlu2 %v1386_v13, %s1451_s8 }
 0xf8d   :  { %v1388_v15 = vpop.eup %1387 }
 0xf8e   :  { %v697_v16 = vadd.f32 1.0, %v1388_v15 }
 0xf90   :  { %1389 = vrcp.f32 %v697_v16  ;;  %v709_v20 = vand.u32 2147483648, %v697_v16  ;;  %vm703_vm4 = vweird.f32 %v697_v16  ;;  %v707_v21 = vand.u32 2147483647, %v697_v16 }
 0xf92   :  { %v710_v23 = vor.u32 1.1754944e-38, %v709_v20  ;;  %vm708_vm7 = vcmp.eq.f32.partialorder %v707_v21, 8.507059e+37 }
 0xf96   :  { %v1390_v52 = vpop.eup %1389 }
 0xf97   :  { %v699_v18 = vmul.f32 %v1390_v52, %v697_v16  ;;  %vm704_vm3 = vweird.f32 %v1390_v52 }
 0xf98   :  { %vm705_vm6 = vmor %vm703_vm4, %vm704_vm3 }
 0xf99   :  { %v700_v1 = vsub.f32 1.0, %v699_v18  ;;  %v1325_v18 = vld [vmem:[%s1999_s0 + $0x28] sm:$0xff] }
 0xf9b   :  { %v701_v3 = vmul.f32 %v1390_v52, %v700_v1 }
 0xf9d   :  { %v702_v19 = vadd.f32 %v1390_v52, %v701_v3 }
 0xf9f   :  { %v706_v22 = vsel %vm705_vm6, %v1390_v52, %v702_v19 }
 0xfa0   :  { %v711_v11 = vsel %vm708_vm7, %v710_v23, %v706_v22 }
 0xfa1   :  { %v714_v33 = vmul.f32 %v711_v11, %v1726_v4 }
 0xfe6   :  { %v717_v24 = vpop.permute.xlu2 %716 }
 0xfe7   :  { %v719_v26 = vmul.f32 %v717_v24, %v711_v11 }
 0xfe9   :  { %721 = vrot.lane.b32.xlu1 %v719_v26, %s1452_s9 }
0x105b   :  { %v722_v34 = vpop.permute.xlu1 %721 }
0x105c   :  { %v1764_v35 = vadd.f32 %v722_v34, %v714_v33 }
0x105e   :  { %1391 = vtanh.f32 %v1764_v35 }
0x1064   :  { %v1392_v28 = vpop.eup %1391 }
0x1065   :  { %727 = vrot.lane.b32.xlu0 %v1392_v28, %s1451_s8 }
0x10d7   :  { %v728_v36 = vpop.permute.xlu0 %727 }
0x10d8   :  { %v730_v29 = vmul.f32 %v728_v36, %v711_v11 }
0x10da   :  { %732 = vrot.lane.b32.xlu2 %v730_v29, %s1452_s9 }
0x1134   :  { %v733_v30 = vpop.permute.xlu2 %732 }
0x1135   :  { %1322 = vmatmul.msk.f32.vlgmr.msra.gmra.mxu1 %vm27_vm0, %v733_v30  ;;  %1326 = vmatmul.msk.f32.vlgmr.msra.gmra.mxu2 %vm27_vm0, %v733_v30 }
0x11b2   :  { %v753_v32 = vpop.f32.mrf.mxu1 }
0x11b3   :  { %v1772_v4 = vadd.f32 %v1598_v40, %v753_v32 }
0x11b5   :  { %v756_v37 = vsel %vm147_vm5, %v1772_v4, -inf }
0x11b6   :  { %757 = vmax.xlane.f32.xlu0 %v756_v37 }
0x11b8   :  { %v841_v19 = vpop.f32.mrf.mxu2 }
0x1229   :  { %v1776_v38 = vpop.xlane.xlu0 %757 }
0x122a   :  { %vm759_vm8 = vcmp.eq.f32.partialorder %v1772_v4, %v1776_v38 }
0x122b   :  { %v760_v39 = vsel %vm759_vm8, %v1605_v45, 5 }
0x122c   :  { %v761_v41 = vsel %vm147_vm5, %v760_v39, 2147483647 }
0x122d   :  { %v763_v43 = vshra.s32 %v761_v41, 16  ;;  %v762_v47 = vand.u32 65535, %v761_v41 }
0x122f   :  { %v765_v44 = vcvt.s32.f32 %v763_v43  ;;  %v764_v49 = vcvt.s32.f32 %v762_v47 }
0x1231   :  { %766 = vmin.xlane.f32.xlu1 %v765_v44 }
0x12a4   :  { %v767_v48 = vpop.xlane.xlu1 %766 }
0x12a5   :  { %vm768_vm9 = vcmp.eq.f32.partialorder %v765_v44, %v767_v48  ;;  %v773_v51 = vcvt.f32.s32 %v767_v48 }
0x12a6   :  { %v769_v50 = vsel %vm768_vm9, %v764_v49, inf }
0x12a7   :  { %770 = vmin.xlane.f32.xlu2 %v769_v50  ;;  %v774_v54 = vshll.u32 %v773_v51, 16 }
0x131a   :  { %v771_v53 = vpop.xlane.xlu2 %770 }
0x131b   :  { %v772_v55 = vcvt.f32.s32 %v771_v53 }
0x131d   :  { %v775_v56 = vadd.s32 %v774_v54, %v772_v55 }
0x131f   :  { %vm776_vm10 = vcmp.eq.s32.totalorder %v775_v56, 0  ;;  %vm780_vm11 = vcmp.eq.s32.totalorder %v775_v56, 1  ;;  %vm784_vm12 = vcmp.eq.s32.totalorder %v775_v56, 2  ;;  %vm788_vm13 = vcmp.eq.s32.totalorder %v775_v56, 3 }
0x1320   :  { %v777_v31 = vsel %vm776_vm10, 1.0, %v1450_v2  ;;  %v781_v58 = vsel %vm780_vm11, 1.0, %v1450_v2  ;;  %v785_v62 = vsel %vm784_vm12, 1.0, %v1450_v2  ;;  %v789_v7 = vsel %vm788_vm13, 1.0, %v1450_v2 }
0x1321   :  { %v778_v5 = vmul.f32 %v777_v31, %v1616_v60  ;;  %v782_v6 = vmul.f32 %v781_v58, %v1618_v61  ;;  %vm792_vm14 = vcmp.eq.s32.totalorder %v775_v56, 4  ;;  %v786_v10 = vmul.f32 %v785_v62, %v1620_v63 }
0x1322   :  { %v793_v13 = vsel %vm792_vm14, 1.0, %v1450_v2  ;;  %v790_v15 = vmul.f32 %v789_v7, %v1625_v8 }
0x1323   :  { %v783_v9 = vadd.f32 %v782_v6, %v778_v5  ;;  %v794_v52 = vmul.f32 %v793_v13, %v1630_v12 }
0x1325   :  { %v787_v14 = vadd.f32 %v786_v10, %v783_v9 }
0x1327   :  { %v791_v16 = vadd.f32 %v790_v15, %v787_v14 }
0x1329   :  { %v795_v1 = vadd.f32 %v794_v52, %v791_v16 }
0x132b   :  { %v823_v3 = vadd.f32 %v1325_v18, %v795_v1 }
0x132d   :  { %v844_v20 = vadd.f32 %v841_v19, %v823_v3 }
0x132f   :  { %1393 = vtanh.f32 %v844_v20  ;;  %v1327_v22 = vmul.f32 -1.442695, %v844_v20 }
0x1331   :  { %1395 = vpow2.f32 %v1327_v22 }
0x1335   :  { %v1394_v21 = vpop.eup %1393 }
0x1336   :  { %867 = vrot.lane.b32.xlu0 %v1394_v21, %s1451_s8 }
0x1337   :  { %v1396_v23 = vpop.eup %1395 }
0x1338   :  { %v848_v24 = vadd.f32 1.0, %v1396_v23 }
0x133a   :  { %1397 = vrcp.f32 %v848_v24  ;;  %v860_v36 = vand.u32 2147483648, %v848_v24  ;;  %vm854_vm1 = vweird.f32 %v848_v24  ;;  %v858_v29 = vand.u32 2147483647, %v848_v24 }
0x133c   :  { %v861_v32 = vor.u32 1.1754944e-38, %v860_v36  ;;  %vm859_vm3 = vcmp.eq.f32.partialorder %v858_v29, 8.507059e+37 }
0x1340   :  { %v1398_v11 = vpop.eup %1397 }
0x1341   :  { %v850_v26 = vmul.f32 %v1398_v11, %v848_v24  ;;  %vm855_vm15 = vweird.f32 %v1398_v11 }
0x1342   :  { %vm856_vm2 = vmor %vm854_vm1, %vm855_vm15 }
0x1343   :  { %v851_v33 = vsub.f32 1.0, %v850_v26 }
0x1345   :  { %v852_v34 = vmul.f32 %v1398_v11, %v851_v33  ;;  %v1331_v33 = vld [vmem:[%s1999_s0 + $0x30] sm:$0xff] }
0x1347   :  { %v853_v28 = vadd.f32 %v1398_v11, %v852_v34 }
0x1349   :  { %v857_v30 = vsel %vm856_vm2, %v1398_v11, %v853_v28 }
0x134a   :  { %v862_v39 = vsel %vm859_vm3, %v861_v32, %v857_v30 }
0x134b   :  { %v865_v43 = vmul.f32 %v862_v39, %v1764_v35 }
0x13a8   :  { %v868_v37 = vpop.permute.xlu0 %867 }
0x13a9   :  { %v870_v41 = vmul.f32 %v868_v37, %v862_v39 }
0x13ab   :  { %872 = vrot.lane.b32.xlu2 %v870_v41, %s1452_s9 }
0x1405   :  { %v873_v44 = vpop.permute.xlu2 %872 }
0x1406   :  { %v1798_v47 = vadd.f32 %v873_v44, %v865_v43 }
0x1408   :  { %1399 = vtanh.f32 %v1798_v47 }
0x140e   :  { %v1400_v48 = vpop.eup %1399 }
0x140f   :  { %878 = vrot.lane.b32.xlu1 %v1400_v48, %s1451_s8 }
0x1481   :  { %v879_v49 = vpop.permute.xlu1 %878 }
0x1482   :  { %v881_v50 = vmul.f32 %v879_v49, %v862_v39 }
0x1484   :  { %883 = vrot.lane.b32.xlu0 %v881_v50, %s1452_s9 }
0x14f6   :  { %v884_v51 = vpop.permute.xlu0 %883 }
0x14f7   :  { %1328 = vmatmul.msk.f32.vlgmr.msra.gmra.mxu3 %vm27_vm0, %v884_v51  ;;  %1332 = vmatmul.msk.f32.vlgmr.msrb.gmra.mxu0 %vm27_vm0, %v884_v51 }
0x1574   :  { %v992_v36 = vpop.f32.mrf.mxu0 }
0x157a   :  { %v904_v53 = vpop.f32.mrf.mxu3 }
0x157b   :  { %v1806_v35 = vadd.f32 %v1598_v40, %v904_v53 }
0x157d   :  { %v907_v54 = vsel %vm147_vm5, %v1806_v35, -inf }
0x157e   :  { %908 = vmax.xlane.f32.xlu2 %v907_v54 }
0x15f1   :  { %v1810_v55 = vpop.xlane.xlu2 %908 }
0x15f2   :  { %vm910_vm4 = vcmp.eq.f32.partialorder %v1806_v35, %v1810_v55 }
0x15f3   :  { %v911_v56 = vsel %vm910_vm4, %v1605_v45, 5 }
0x15f4   :  { %v912_v31 = vsel %vm147_vm5, %v911_v56, 2147483647 }
0x15f5   :  { %v914_v58 = vshra.s32 %v912_v31, 16  ;;  %v913_v5 = vand.u32 65535, %v912_v31 }
0x15f7   :  { %v916_v62 = vcvt.s32.f32 %v914_v58  ;;  %v915_v40 = vcvt.s32.f32 %v913_v5 }
0x15f9   :  { %917 = vmin.xlane.f32.xlu0 %v916_v62 }
0x166c   :  { %v918_v6 = vpop.xlane.xlu0 %917 }
0x166d   :  { %vm919_vm6 = vcmp.eq.f32.partialorder %v916_v62, %v918_v6  ;;  %v924_v9 = vcvt.f32.s32 %v918_v6 }
0x166e   :  { %v920_v7 = vsel %vm919_vm6, %v915_v40, inf }
0x166f   :  { %921 = vmin.xlane.f32.xlu1 %v920_v7  ;;  %v925_v13 = vshll.u32 %v924_v9, 16 }
0x16e2   :  { %v922_v10 = vpop.xlane.xlu1 %921 }
0x16e3   :  { %v923_v14 = vcvt.f32.s32 %v922_v10 }
0x16e5   :  { %v926_v15 = vadd.s32 %v925_v13, %v923_v14 }
0x16e7   :  { %vm927_vm7 = vcmp.eq.s32.totalorder %v926_v15, 0  ;;  %vm931_vm8 = vcmp.eq.s32.totalorder %v926_v15, 1  ;;  %vm935_vm9 = vcmp.eq.s32.totalorder %v926_v15, 2  ;;  %vm939_vm10 = vcmp.eq.s32.totalorder %v926_v15, 3 }
0x16e8   :  { %v928_v16 = vsel %vm927_vm7, 1.0, %v1450_v2  ;;  %v932_v52 = vsel %vm931_vm8, 1.0, %v1450_v2  ;;  %v936_v18 = vsel %vm935_vm9, 1.0, %v1450_v2  ;;  %v940_v19 = vsel %vm939_vm10, 1.0, %v1450_v2 }
0x16e9   :  { %v929_v1 = vmul.f32 %v928_v16, %v1616_v60  ;;  %v933_v3 = vmul.f32 %v932_v52, %v1618_v61  ;;  %vm943_vm11 = vcmp.eq.s32.totalorder %v926_v15, 4  ;;  %v937_v21 = vmul.f32 %v936_v18, %v1620_v63 }
0x16ea   :  { %v944_v22 = vsel %vm943_vm11, 1.0, %v1450_v2  ;;  %v941_v24 = vmul.f32 %v940_v19, %v1625_v8 }
0x16eb   :  { %v934_v20 = vadd.f32 %v933_v3, %v929_v1  ;;  %v945_v26 = vmul.f32 %v944_v22, %v1630_v12 }
0x16ed   :  { %v938_v23 = vadd.f32 %v937_v21, %v934_v20 }
0x16ef   :  { %v942_v11 = vadd.f32 %v941_v24, %v938_v23 }
0x16f1   :  { %v946_v34 = vadd.f32 %v945_v26, %v942_v11 }
0x16f3   :  { %v974_v28 = vadd.f32 %v1331_v33, %v946_v34 }
0x16f5   :  { %v995_v29 = vadd.f32 %v992_v36, %v974_v28 }
0x16f7   :  { %1401 = vtanh.f32 %v995_v29  ;;  %v1333_v32 = vmul.f32 -1.442695, %v995_v29 }
0x16f9   :  { %1403 = vpow2.f32 %v1333_v32 }
0x16fd   :  { %v1402_v30 = vpop.eup %1401 }
0x16fe   :  { %1018 = vrot.lane.b32.xlu2 %v1402_v30, %s1451_s8 }
0x16ff   :  { %v1404_v37 = vpop.eup %1403 }
0x1700   :  { %v999_v39 = vadd.f32 1.0, %v1404_v37 }
0x1702   :  { %1405 = vrcp.f32 %v999_v39  ;;  %v1011_v50 = vand.u32 2147483648, %v999_v39  ;;  %vm1005_vm13 = vweird.f32 %v999_v39  ;;  %v1009_v51 = vand.u32 2147483647, %v999_v39 }
0x1704   :  { %v1012_v54 = vor.u32 1.1754944e-38, %v1011_v50  ;;  %vm1010_vm15 = vcmp.eq.f32.partialorder %v1009_v51, 8.507059e+37 }
0x1708   :  { %v1406_v41 = vpop.eup %1405 }
0x1709   :  { %v1001_v43 = vmul.f32 %v1406_v41, %v999_v39  ;;  %vm1006_vm12 = vweird.f32 %v1406_v41 }
0x170a   :  { %vm1007_vm14 = vmor %vm1005_vm13, %vm1006_vm12 }
0x170b   :  { %v1002_v44 = vsub.f32 1.0, %v1001_v43 }
0x170d   :  { %v1003_v48 = vmul.f32 %v1406_v41, %v1002_v44 }
0x170f   :  { %v1004_v49 = vadd.f32 %v1406_v41, %v1003_v48 }
0x1711   :  { %v1008_v53 = vsel %vm1007_vm14, %v1406_v41, %v1004_v49  ;;  %vm33_vm14 = vcmask 7168  }
0x1712   :  { %v1013_v31 = vsel %vm1010_vm15, %v1012_v54, %v1008_v53  ;;  %34 = vst.msk [vmem:[#allocation5] sm:$0xff] %vm33_vm14, %v1450_v2 }
0x1713   :  { %v1016_v62 = vmul.f32 %v1013_v31, %v1798_v47  ;;  %v1842_v47 = vld [vmem:[%s2000_s5] ss:$0 sm:$0xff] }
0x1758   :  { %v1019_v56 = vpop.permute.xlu2 %1018 }
0x1759   :  { %v1021_v58 = vmul.f32 %v1019_v56, %v1013_v31 }
0x175b   :  { %1023 = vrot.lane.b32.xlu0 %v1021_v58, %s1452_s9 }
0x17cd   :  { %v1024_v5 = vpop.permute.xlu0 %1023 }
0x17ce   :  { %v1832_v6 = vadd.f32 %v1024_v5, %v1016_v62 }
0x17d0   :  { %1407 = vtanh.f32 %v1832_v6 }
0x17d6   :  { %v1408_v40 = vpop.eup %1407 }
0x17d7   :  { %1029 = vrot.lane.b32.xlu1 %v1408_v40, %s1451_s8 }
0x1849   :  { %v1030_v7 = vpop.permute.xlu1 %1029 }
0x184a   :  { %v1032_v9 = vmul.f32 %v1030_v7, %v1013_v31 }
0x184c   :  { %1034 = vrot.lane.b32.xlu0 %v1032_v9, %s1452_s9 }
0x18be   :  { %v1035_v10 = vpop.permute.xlu0 %1034 }
0x18bf   :  { %1334 = vmatmul.msk.f32.vlgmr.msrb.gmra.mxu1 %vm27_vm0, %v1035_v10  ;;  %1338 = vmatmul.msk.f32.vlgmr.msrb.gmra.mxu2 %vm27_vm0, %v1035_v10 }
0x193c   :  { %v1055_v13 = vpop.f32.mrf.mxu1 }
0x193d   :  { %v1845_v14 = vadd.f32 %v1842_v47, %v1055_v13 }
0x193f   :  { %v1058_v15 = vsel %vm147_vm5, %v1845_v14, -inf }
0x1940   :  { %1059 = vmax.xlane.f32.xlu2 %v1058_v15 }
0x1942   :  { %v1143_v51 = vpop.f32.mrf.mxu2 }
0x19b3   :  { %v1849_v16 = vpop.xlane.xlu2 %1059 }
0x19b4   :  { %vm1061_vm1 = vcmp.eq.f32.partialorder %v1845_v14, %v1849_v16 }
0x19b5   :  { %v1062_v52 = vsel %vm1061_vm1, %v1605_v45, 5 }
0x19b6   :  { %v1063_v18 = vsel %vm147_vm5, %v1062_v52, 2147483647 }
0x19b7   :  { %v1065_v1 = vshra.s32 %v1063_v18, 16  ;;  %v1064_v19 = vand.u32 65535, %v1063_v18 }
0x19b9   :  { %v1067_v3 = vcvt.s32.f32 %v1065_v1  ;;  %v1066_v21 = vcvt.s32.f32 %v1064_v19  ;;  %v193_v1 = vld [vmem:[%s2002_s1] sm:$0xff] }
0x19ba   :  { %vm212_vm1 = vcmp.ne.s32.totalorder %v193_v1, 0 }
0x19bb   :  { %1068 = vmin.xlane.f32.xlu1 %v1067_v3 }
0x1a2e   :  { %v1069_v20 = vpop.xlane.xlu1 %1068 }
0x1a2f   :  { %vm1070_vm2 = vcmp.eq.f32.partialorder %v1067_v3, %v1069_v20  ;;  %v1075_v23 = vcvt.f32.s32 %v1069_v20  ;;  %v345_v3 = vsub.f32 %v1658_v57, %v1662_v59  ;;  %v496_v20 = vsub.f32 %v1700_v17, %v1704_v0 }
0x1a30   :  { %v1071_v22 = vsel %vm1070_vm2, %v1066_v21, inf }
0x1a31   :  { %1072 = vmin.xlane.f32.xlu0 %v1071_v22  ;;  %v1076_v11 = vshll.u32 %v1075_v23, 16  ;;  %v346_v19 = vmul.f32 1.442695, %v345_v3  ;;  %v497_v21 = vmul.f32 1.442695, %v496_v20 }
0x1aa4   :  { %v1073_v24 = vpop.xlane.xlu0 %1072 }
0x1aa5   :  { %v1074_v26 = vcvt.f32.s32 %v1073_v24 }
0x1aa7   :  { %v1077_v33 = vadd.s32 %v1076_v11, %v1074_v26 }
0x1aa9   :  { %vm1078_vm3 = vcmp.eq.s32.totalorder %v1077_v33, 0  ;;  %vm1082_vm4 = vcmp.eq.s32.totalorder %v1077_v33, 1  ;;  %vm1086_vm6 = vcmp.eq.s32.totalorder %v1077_v33, 2  ;;  %vm1090_vm7 = vcmp.eq.s32.totalorder %v1077_v33, 3 }
0x1aaa   :  { %v1079_v34 = vsel %vm1078_vm3, 1.0, %v1450_v2  ;;  %v1083_v28 = vsel %vm1082_vm4, 1.0, %v1450_v2  ;;  %v1087_v36 = vsel %vm1086_vm6, 1.0, %v1450_v2  ;;  %v1091_v32 = vsel %vm1090_vm7, 1.0, %v1450_v2 }
0x1aab   :  { %v1080_v29 = vmul.f32 %v1079_v34, %v1616_v60  ;;  %v1084_v30 = vmul.f32 %v1083_v28, %v1618_v61  ;;  %vm1094_vm8 = vcmp.eq.s32.totalorder %v1077_v33, 4  ;;  %v1088_v39 = vmul.f32 %v1087_v36, %v1620_v63  ;;  %v1337_v60 = vld [vmem:[%s1999_s0 + $0x38] sm:$0xff] }
0x1aac   :  { %v1095_v41 = vsel %vm1094_vm8, 1.0, %v1450_v2  ;;  %v1092_v44 = vmul.f32 %v1091_v32, %v1625_v8  ;;  %v1453_v8 = vmov 0   ;;  %v194_v36 = vsub.f32 %v1601_v42, %v1607_v46 }
0x1aad   :  { %v1085_v37 = vadd.f32 %v1084_v30, %v1080_v29  ;;  %v1096_v49 = vmul.f32 %v1095_v41, %v1630_v12  ;;  %1348 = vset.pattern.permute.xlu1 %v1453_v8  ;;  %1349 = vset.pattern.permute.xlu0 %v1453_v8 }
0x1aae   :  { %1350 = vset.pattern.permute.xlu2 %v1453_v8  ;;  %v195_v29 = vmul.f32 1.442695, %v194_v36 }
0x1aaf   :  { %v1089_v43 = vadd.f32 %v1088_v39, %v1085_v37  ;;  %v1893_v37 = vld [vmem:[%s2002_s1 + $0x28] sm:$0xff] }
0x1ab1   :  { %v1093_v48 = vadd.f32 %v1092_v44, %v1089_v43 }
0x1ab3   :  { %v1097_v50 = vadd.f32 %v1096_v49, %v1093_v48 }
0x1ab5   :  { %v1125_v61 = vadd.f32 %v1337_v60, %v1097_v50 }
0x1ab7   :  { %v1146_v53 = vadd.f32 %v1143_v51, %v1125_v61 }
0x1ab9   :  { %1409 = vtanh.f32 %v1146_v53  ;;  %v1339_v63 = vmul.f32 -1.442695, %v1146_v53 }
0x1abb   :  { %1411 = vpow2.f32 %v1339_v63  ;;  %v1300_v63 = vsel %vm212_vm1, 1.0, %v1450_v2 }
0x1abf   :  { %v1410_v54 = vpop.eup %1409 }
0x1ac0   :  { %1169 = vrot.lane.b32.xlu2 %v1410_v54, %s1451_s8 }
0x1ac1   :  { %v1412_v56 = vpop.eup %1411 }
0x1ac2   :  { %v1150_v31 = vadd.f32 1.0, %v1412_v56 }
0x1ac4   :  { %1413 = vrcp.f32 %v1150_v31  ;;  %v1162_v7 = vand.u32 2147483648, %v1150_v31  ;;  %vm1156_vm10 = vweird.f32 %v1150_v31  ;;  %v1160_v9 = vand.u32 2147483647, %v1150_v31 }
0x1ac5   :  { %1415 = vpow2.f32 %v346_v19 }
0x1ac6   :  { %v1163_v13 = vor.u32 1.1754944e-38, %v1162_v7  ;;  %vm1161_vm12 = vcmp.eq.f32.partialorder %v1160_v9, 8.507059e+37  ;;  %1417 = vpow2.f32 %v497_v21  ;;  %v1317_v21 = vld [vmem:[%s2002_s1 + $0x18] sm:$0xff] }
0x1ac7   :  { %vm665_vm7 = vcmp.ne.s32.totalorder %v1317_v21, 0 }
0x1aca   :  { %v1414_v12 = vpop.eup %1413 }
0x1acb   :  { %v1152_v58 = vmul.f32 %v1414_v12, %v1150_v31  ;;  %vm1157_vm9 = vweird.f32 %v1414_v12  ;;  %v1416_v22 = vpop.eup %1415 }
0x1acc   :  { %vm1158_vm11 = vmor %vm1156_vm10, %vm1157_vm9  ;;  %v348_v23 = vsel %vm147_vm5, %v1416_v22, 0.0  ;;  %v1418_v24 = vpop.eup %1417 }
0x1acd   :  { %v1153_v62 = vsub.f32 1.0, %v1152_v58  ;;  %v499_v11 = vsel %vm147_vm5, %v1418_v24, 0.0 }
0x1acf   :  { %v1154_v5 = vmul.f32 %v1414_v12, %v1153_v62 }
0x1ad1   :  { %v1155_v40 = vadd.f32 %v1414_v12, %v1154_v5 }
0x1ad3   :  { %v1159_v10 = vsel %vm1158_vm11, %v1414_v12, %v1155_v40  ;;  %v50_v40 = vld [vmem:[#allocation5] sm:$0xff] }
0x1ad4   :  { %v1164_v52 = vsel %vm1161_vm12, %v1163_v13, %v1159_v10 }
0x1ad5   :  { %v1167_v26 = vmul.f32 %v1164_v52, %v1832_v6  ;;  %v1305_v6 = vld [vmem:[%s2002_s1 + $0x8] sm:$0xff] }
0x1ad6   :  { %vm363_vm2 = vcmp.ne.s32.totalorder %v1305_v6, 0 }
0x1ad7   :  { %v1306_v7 = vsel %vm363_vm2, 1.0, %v1450_v2 }
0x1b1a   :  { %v1170_v15 = vpop.permute.xlu2 %1169 }
0x1b1b   :  { %v1172_v18 = vmul.f32 %v1170_v15, %v1164_v52 }
0x1b1d   :  { %1174 = vrot.lane.b32.xlu1 %v1172_v18, %s1452_s9 }
0x1b25   :  { %204 = vperm.xlu1 %1348, %v193_v1  }
0x1b4f   :  { %349 = vadd.xlane.f32.xlu1 %v348_v23 }
0x1b57   :  { %500 = vadd.xlane.f32.xlu1 %v499_v11  ;;  %v798_v11 = vsub.f32 %v1772_v4, %v1776_v38 }
0x1b8f   :  { %v1175_v33 = vpop.permute.xlu1 %1174 }
0x1b90   :  { %v1880_v34 = vadd.f32 %v1175_v33, %v1167_v26  ;;  %v799_v26 = vmul.f32 1.442695, %v798_v11 }
0x1b92   :  { %1419 = vtanh.f32 %v1880_v34 }
0x1b93   :  { %1421 = vpow2.f32 %v195_v29 }
0x1b97   :  { %v205_v43 = vpop.permute.xlu1 %204 }
0x1b98   :  { %v1420_v28 = vpop.eup %1419  ;;  %vm206_vm13 = vcmp.eq.s32.totalorder %v1605_v45, %v205_v43 }
0x1b99   :  { %1180 = vrot.lane.b32.xlu0 %v1420_v28, %s1451_s8  ;;  %v1422_v30 = vpop.eup %1421  ;;  %v207_v44 = vsel %vm206_vm13, %v1601_v42, 0.0  ;;  %v1908_v42 = vld [vmem:[%s2002_s1 + $0x10] sm:$0xff]  ;;  %v1100_v28 = vsub.f32 %v1845_v14, %v1849_v16 }
0x1b9a   :  { %v197_v32 = vsel %vm147_vm5, %v1422_v30, 0.0  ;;  %v208_v48 = vsel %vm147_vm5, %v207_v44, 0.0  ;;  %vm514_vm4 = vcmp.ne.s32.totalorder %v1908_v42, 0 }
0x1b9b   :  { %v1101_v36 = vmul.f32 1.442695, %v1100_v28  ;;  %v1312_v43 = vsel %vm514_vm4, 1.0, %v1450_v2 }
0x1bc2   :  { %v350_v12 = vpop.xlane.xlu1 %349 }
0x1bc3   :  { %198 = vadd.xlane.f32.xlu0 %v197_v32 }
0x1bca   :  { %v501_v32 = vpop.xlane.xlu1 %500 }
0x1bd7   :  { %355 = vperm.xlu0 %1349, %v1305_v6  }
0x1bdf   :  { %959 = vperm.xlu0 %1349, %v1893_v37  }
0x1c0b   :  { %v1181_v39 = vpop.permute.xlu0 %1180 }
0x1c0c   :  { %v1183_v41 = vmul.f32 %v1181_v39, %v1164_v52 }
0x1c0e   :  { %1185 = vrot.lane.b32.xlu2 %v1183_v41, %s1452_s9 }
0x1c36   :  { %v199_v49 = vpop.xlane.xlu0 %198 }
0x1c37   :  { %209 = vadd.xlane.f32.xlu2 %v208_v48  ;;  %1423 = vlog2.f32 %v199_v49 }
0x1c38   :  { %1425 = vlog2.f32 %v350_v12 }
0x1c3d   :  { %v1424_v53 = vpop.eup %1423 }
0x1c3e   :  { %v201_v54 = vmul.f32 0.6931472, %v1424_v53  ;;  %v1426_v58 = vpop.eup %1425 }
0x1c3f   :  { %v352_v62 = vmul.f32 0.6931472, %v1426_v58  ;;  %v1318_v58 = vsel %vm665_vm7, 1.0, %v1450_v2 }
0x1c41   :  { %v353_v5 = vadd.f32 %v352_v62, %v1662_v59 }
0x1c49   :  { %v356_v60 = vpop.permute.xlu0 %355 }
0x1c4a   :  { %vm357_vm15 = vcmp.eq.s32.totalorder %v1605_v45, %v356_v60 }
0x1c4b   :  { %v358_v50 = vsel %vm357_vm15, %v1658_v57, 0.0  ;;  %v202_v57 = vadd.f32 %v201_v54, %v1607_v46  ;;  %v647_v46 = vsub.f32 %v1738_v25, %v1742_v27  ;;  %v949_v54 = vsub.f32 %v1806_v35, %v1810_v55 }
0x1c4c   :  { %v359_v61 = vsel %vm147_vm5, %v358_v50, 0.0 }
0x1c4d   :  { %360 = vadd.xlane.f32.xlu2 %v359_v61  ;;  %v648_v18 = vmul.f32 1.442695, %v647_v46 }
0x1c4f   :  { %1427 = vpow2.f32 %v648_v18 }
0x1c50   :  { %1429 = vpow2.f32 %v799_v26 }
0x1c51   :  { %1431 = vpow2.f32 %v1101_v36 }
0x1c52   :  { %1433 = vlog2.f32 %v501_v32 }
0x1c55   :  { %v1428_v19 = vpop.eup %1427 }
0x1c56   :  { %v650_v20 = vsel %vm147_vm5, %v1428_v19, 0.0  ;;  %v1430_v33 = vpop.eup %1429 }
0x1c57   :  { %v1432_v29 = vpop.eup %1431 }
0x1c58   :  { %v1103_v30 = vsel %vm147_vm5, %v1432_v29, 0.0  ;;  %v1434_v6 = vpop.eup %1433 }
0x1c59   :  { %v503_v39 = vmul.f32 0.6931472, %v1434_v6 }
0x1c5b   :  { %v504_v41 = vadd.f32 %v503_v39, %v1704_v0  ;;  %v1955_v0 = vld [vmem:[%s2002_s1 + $0x30] sm:$0xff] }
0x1c5c   :  { %vm1118_vm13 = vcmp.ne.s32.totalorder %v1955_v0, 0 }
0x1c65   :  { %506 = vperm.xlu2 %1350, %v1908_v42   ;;  %v1323_v42 = vld [vmem:[%s2002_s1 + $0x20] sm:$0xff] }
0x1c66   :  { %vm816_vm12 = vcmp.ne.s32.totalorder %v1323_v42, 0 }
0x1c68   :  { %v1186_v51 = vpop.permute.xlu2 %1185 }
0x1c69   :  { %1275 = vst.msk [vmem:[#allocation2] sm:$0xff] %vm27_vm0, %v1186_v51  ;;  %1340 = vmatmul.msk.f32.vlgmr.msrb.gmra.mxu3 %vm27_vm0, %v1186_v51 }
0x1caa   :  { %v210_v56 = vpop.xlane.xlu2 %209 }
0x1cab   :  { %v211_v31 = vsub.f32 %v202_v57, %v210_v56  ;;  %v950_v57 = vmul.f32 1.442695, %v949_v54 }
0x1cad   :  { %v215_v8 = vmul.f32 %v1300_v63, %v211_v31  ;;  %1435 = vpow2.f32 %v950_v57 }
0x1caf   :  { %v216_v13 = vadd.f32 %v215_v8, %v50_v40  ;;  %v960_v8 = vpop.permute.xlu0 %959 }
0x1cb0   :  { %vm961_vm9 = vcmp.eq.s32.totalorder %v1605_v45, %v960_v8 }
0x1cc0   :  { %v361_v9 = vpop.xlane.xlu2 %360 }
0x1cc1   :  { %v362_v10 = vsub.f32 %v353_v5, %v361_v9 }
0x1cc3   :  { %v366_v15 = vmul.f32 %v1306_v7, %v362_v10 }
0x1cc5   :  { %v367_v52 = vadd.f32 %v366_v15, %v216_v13 }
0x1cc8   :  { %v507_v1 = vpop.permute.xlu2 %506 }
0x1cc9   :  { %vm508_vm3 = vcmp.eq.s32.totalorder %v1605_v45, %v507_v1 }
0x1cca   :  { %v509_v3 = vsel %vm508_vm3, %v1700_v17, 0.0  ;;  %v1934_v17 = vld [vmem:[%s2002_s1 + $0x38] sm:$0xff]  ;;  %s1454_s1 = smov 96  }
0x1ccb   :  { %v510_v59 = vsel %vm147_vm5, %v509_v3, 0.0  ;;  %vm1269_vm15 = vcmp.ne.s32.totalorder %v1934_v17, 0 }
0x1ccc   :  { %511 = vadd.xlane.f32.xlu1 %v510_v59  ;;  %v1342_v54 = vsel %vm1269_vm15, 1.0, %v1450_v2 }
0x1cd4   :  { %651 = vadd.xlane.f32.xlu1 %v650_v20 }
0x1cec   :  { %v1206_v22 = vpop.f32.mrf.mxu3 }
0x1ced   :  { %v1927_v23 = vadd.f32 %v1842_v47, %v1206_v22  ;;  %657 = vperm.xlu1 %1348, %v1317_v21   ;;  %v801_v47 = vsel %vm147_vm5, %v1430_v33, 0.0 }
0x1cef   :  { %v1209_v24 = vsel %vm147_vm5, %v1927_v23, -inf }
0x1cf0   :  { %1210 = vmax.xlane.f32.xlu0 %v1209_v24 }
0x1d04   :  { %1261 = vperm.xlu0 %1349, %v1934_v17  }
0x1d17   :  { %802 = vadd.xlane.f32.xlu1 %v801_v47 }
0x1d2e   :  { %1104 = vadd.xlane.f32.xlu0 %v1103_v30 }
0x1d3f   :  { %v512_v44 = vpop.xlane.xlu1 %511 }
0x1d40   :  { %v513_v48 = vsub.f32 %v504_v41, %v512_v44 }
0x1d42   :  { %v517_v49 = vmul.f32 %v1312_v43, %v513_v48 }
0x1d44   :  { %v518_v60 = vadd.f32 %v517_v49, %v367_v52  ;;  %v962_v52 = vsel %vm961_vm9, %v1806_v35, 0.0 }
0x1d45   :  { %v963_v18 = vsel %vm147_vm5, %v962_v52, 0.0 }
0x1d47   :  { %v652_v50 = vpop.xlane.xlu1 %651 }
0x1d48   :  { %1437 = vlog2.f32 %v652_v50 }
0x1d5f   :  { %v658_v61 = vpop.permute.xlu1 %657 }
0x1d60   :  { %vm659_vm6 = vcmp.eq.s32.totalorder %v1605_v45, %v658_v61 }
0x1d61   :  { %v660_v51 = vsel %vm659_vm6, %v1738_v25, 0.0  ;;  %v1436_v25 = vpop.eup %1435 }
0x1d62   :  { %v661_v53 = vsel %vm147_vm5, %v660_v51, 0.0  ;;  %v952_v63 = vsel %vm147_vm5, %v1436_v25, 0.0  ;;  %v1438_v56 = vpop.eup %1437 }
0x1d63   :  { %662 = vadd.xlane.f32.xlu2 %v661_v53  ;;  %v654_v31 = vmul.f32 0.6931472, %v1438_v56  ;;  %v1963_v9 = vpop.xlane.xlu0 %1210 }
0x1d64   :  { %v1251_v46 = vsub.f32 %v1927_v23, %v1963_v9 }
0x1d65   :  { %v655_v12 = vadd.f32 %v654_v31, %v1742_v27 }
0x1d66   :  { %v1252_v27 = vmul.f32 1.442695, %v1251_v46 }
0x1d68   :  { %1439 = vpow2.f32 %v1252_v27 }
0x1d6e   :  { %v1440_v1 = vpop.eup %1439 }
0x1d6f   :  { %v1254_v59 = vsel %vm147_vm5, %v1440_v1, 0.0 }
0x1d76   :  { %v1262_v19 = vpop.permute.xlu0 %1261 }
0x1d77   :  { %vm1263_vm11 = vcmp.eq.s32.totalorder %v1605_v45, %v1262_v19 }
0x1d78   :  { %v1264_v35 = vsel %vm1263_vm11, %v1927_v23, 0.0 }
0x1d79   :  { %v1265_v21 = vsel %vm147_vm5, %v1264_v35, 0.0 }
0x1d7b   :  { %808 = vperm.xlu2 %1350, %v1323_v42  }
0x1d83   :  { %1110 = vperm.xlu2 %1350, %v1955_v0  }
0x1d8a   :  { %v803_v22 = vpop.xlane.xlu1 %802 }
0x1d8b   :  { %1441 = vlog2.f32 %v803_v22 }
0x1d91   :  { %v1442_v11 = vpop.eup %1441 }
0x1dac   :  { %953 = vadd.xlane.f32.xlu2 %v952_v63 }
0x1dd6   :  { %v663_v62 = vpop.xlane.xlu2 %662 }
0x1dd7   :  { %v664_v5 = vsub.f32 %v655_v12, %v663_v62 }
0x1dd9   :  { %v668_v40 = vmul.f32 %v1318_v58, %v664_v5 }
0x1ddb   :  { %v669_v7 = vadd.f32 %v668_v40, %v518_v60  ;;  %v1336_v60 = vsel %vm1118_vm13, 1.0, %v1450_v2 }
0x1dde   :  { %v809_v10 = vpop.permute.xlu2 %808 }
0x1ddf   :  { %vm810_vm8 = vcmp.eq.s32.totalorder %v1605_v45, %v809_v10 }
0x1de0   :  { %v811_v13 = vsel %vm810_vm8, %v1772_v4, 0.0 }
0x1de1   :  { %v812_v15 = vsel %vm147_vm5, %v811_v13, 0.0 }
0x1de2   :  { %813 = vadd.xlane.f32.xlu1 %v812_v15 }
0x1de6   :  { %v1111_v3 = vpop.permute.xlu2 %1110 }
0x1de7   :  { %vm1112_vm10 = vcmp.eq.s32.totalorder %v1605_v45, %v1111_v3  ;;  %v1324_v45 = vsel %vm816_vm12, 1.0, %v1450_v2 }
0x1de8   :  { %v1113_v4 = vsel %vm1112_vm10, %v1845_v14, 0.0  ;;  %v805_v14 = vmul.f32 0.6931472, %v1442_v11 }
0x1de9   :  { %v1114_v20 = vsel %vm147_vm5, %v1113_v4, 0.0  ;;  %vm967_vm5 = vcmp.ne.s32.totalorder %v1893_v37, 0 }
0x1dea   :  { %964 = vadd.xlane.f32.xlu1 %v963_v18  ;;  %v806_v26 = vadd.f32 %v805_v14, %v1776_v38  ;;  %v1330_v32 = vsel %vm967_vm5, 1.0, %v1450_v2 }
0x1df2   :  { %1255 = vadd.xlane.f32.xlu1 %v1254_v59 }
0x1dfa   :  { %1115 = vadd.xlane.f32.xlu1 %v1114_v20 }
0x1e02   :  { %1266 = vadd.xlane.f32.xlu1 %v1265_v21 }
0x1e1b   :  { %1277 = vrot.lane.b32.xlu1 %v1880_v34, %s1454_s1  ;;  %v1105_v34 = vpop.xlane.xlu0 %1104 }
0x1e1f   :  { %v954_v24 = vpop.xlane.xlu2 %953 }
0x1e20   :  { %1443 = vlog2.f32 %v954_v24 }
0x1e21   :  { %1445 = vlog2.f32 %v1105_v34 }
0x1e26   :  { %v1444_v33 = vpop.eup %1443 }
0x1e27   :  { %v956_v28 = vmul.f32 0.6931472, %v1444_v33  ;;  %v1446_v43 = vpop.eup %1445 }
0x1e28   :  { %v1107_v48 = vmul.f32 0.6931472, %v1446_v43 }
0x1e29   :  { %v957_v30 = vadd.f32 %v956_v28, %v1810_v55 }
0x1e2a   :  { %v1108_v49 = vadd.f32 %v1107_v48, %v1849_v16 }
0x1e55   :  { %v814_v47 = vpop.xlane.xlu1 %813 }
0x1e56   :  { %v815_v23 = vsub.f32 %v806_v26, %v814_v47 }
0x1e58   :  { %v819_v36 = vmul.f32 %v1324_v45, %v815_v23 }
0x1e5a   :  { %v820_v29 = vadd.f32 %v819_v36, %v669_v7 }
0x1e5d   :  { %v965_v6 = vpop.xlane.xlu1 %964 }
0x1e5e   :  { %v966_v39 = vsub.f32 %v957_v30, %v965_v6 }
0x1e60   :  { %v970_v41 = vmul.f32 %v1330_v32, %v966_v39 }
0x1e62   :  { %v971_v38 = vadd.f32 %v970_v41, %v820_v29 }
0x1e65   :  { %v1256_v44 = vpop.xlane.xlu1 %1255 }
0x1e66   :  { %1447 = vlog2.f32 %v1256_v44 }
0x1e6c   :  { %v1448_v37 = vpop.eup %1447 }
0x1e6d   :  { %v1116_v50 = vpop.xlane.xlu1 %1115  ;;  %v1258_v61 = vmul.f32 0.6931472, %v1448_v37 }
0x1e6e   :  { %v1117_v55 = vsub.f32 %v1108_v49, %v1116_v50 }
0x1e6f   :  { %v1259_v42 = vadd.f32 %v1258_v61, %v1963_v9 }
0x1e70   :  { %v1121_v51 = vmul.f32 %v1336_v60, %v1117_v55 }
0x1e72   :  { %v1122_v53 = vadd.f32 %v1121_v51, %v971_v38 }
0x1e75   :  { %v1267_v57 = vpop.xlane.xlu1 %1266 }
0x1e76   :  { %v1268_v25 = vsub.f32 %v1259_v42, %v1267_v57 }
0x1e78   :  { %v1272_v63 = vmul.f32 %v1342_v54, %v1268_v25 }
0x1e7a   :  { %v1273_v0 = vadd.f32 %v1272_v63, %v1122_v53 }
0x1e7c   :  { %1289 = vperm.xlu2 %1350, %v1273_v0   ;;  %1283 = vst.msk [vmem:[#allocation5] sm:$0xff] %vm33_vm14, %v1273_v0 }
0x1e8d   :  { %v1278_v16 = vpop.permute.xlu1 %1277 }
0x1e8e   :  { %1280 = vst.msk [vmem:[#allocation3] sm:$0xff] %vm27_vm0, %v1278_v16 }
0x1ed6   :  { %v1290_v56 = vpop.permute.xlu2 %1289 }
0x1ed7   :  { %1292 = vst [vmem:[%s2003_s6] sm:$0xff] %v1290_v56 }

</bundles_post_ra>
